<compile_context>
chip_gen: v7x
topology: tpu7x:2x2x1
jax: 0.10.0
libtpu: 0.0.40
codegen_flags: <defaults>
</compile_context>

<pallas_src>
import functools

import jax
import jax.numpy as jnp
from jax.experimental import pallas as pl
from jax.experimental.pallas import tpu as pltpu

_K = 5            # conv kernel size
_P = _K // 2      # 'same' padding amount
_LAYER_ORDER = (("conv_1", True), ("conv_2", True),
                ("conv_3", True), ("output_layer", False))
_MAX_IMAGES_PER_STEP = 4   # lane-batch cap (keeps per-layer activations small)


def _ceil8(n):
    return ((n + 7) // 8) * 8


# --------------------------- fused Pallas kernel ------------------------------
def _fused_cnn2_kernel(x_ref, colm_ref, rowm_ref,
                       w1_ref, b1_ref, w2_ref, b2_ref,
                       w3_ref, b3_ref, w4_ref, b4_ref,
                       o_ref, patch_ref, part_ref, *, W, L):
    """All four conv layers for one lane-batched slab of images.

    x_ref    : (Cin_pad0, L)        input slab, L = B*H*W on lanes
    colm_ref : (5, L)               {0,1} column-validity mask per dw tap
    rowm_ref : (5, L)               {0,1} row-validity mask per dh tap
    w*_ref   : (5*Cout_pad, 5*Cin_pad)  stacked row-tap weights (MXU-ready)
    b*_ref   : (Cout_pad, 1)
    o_ref    : (1, L)               final prediction (lane dense)
    patch_ref: (5*32, L) VMEM       dw-only im2col scratch (reused per layer)
    part_ref : (5*32, L) VMEM       stacked row-tap partial outputs scratch
    """

    def conv_layer(act, w_ref, b_ref, relu):
        cin_p = act.shape[0]
        cout5 = w_ref.shape[0]
        cout_p = cout5 // _K

        # ---- dw-only im2col: 5 column taps (lane rolls + column mask) ----
        for kw in range(_K):
            dw = kw - _P
            if dw == 0:                                    # center: mask is all-ones
                patch_ref[kw * cin_p:(kw + 1) * cin_p, :] = act
            else:
                shifted = pltpu.roll(act, shift=(-dw) % L, axis=1)
                patch_ref[kw * cin_p:(kw + 1) * cin_p, :] = (
                    shifted * colm_ref[kw:kw + 1, :])

        # ---- one stacked MXU matmul: all 5 row taps at once ----
        # (5*Cout_pad, 5*Cin_pad) @ (5*Cin_pad, L) -> (5*Cout_pad, L)
        part_ref[0:cout5, :] = jnp.dot(
            w_ref[...], patch_ref[0:_K * cin_p, :],
            preferred_element_type=jnp.float32)

        # ---- combine 5 partials with a row shift (+-W, +-2W) + row mask ----
        out = part_ref[_P * cout_p:(_P + 1) * cout_p, :]   # kh = 2 (dh = 0)
        for kh in (0, 1, 3, 4):
            dh = kh - _P
            chunk = part_ref[kh * cout_p:(kh + 1) * cout_p, :]
            rolled = pltpu.roll(chunk, shift=(-dh * W) % L, axis=1)
            out = out + rolled * rowm_ref[kh:kh + 1, :]

        out = out + b_ref[...]                             # (Cout_pad, 1) broadcast
        if relu:
            out = jnp.maximum(out, 0.0)
        return out

    act = x_ref[...]                                       # (8,  L)
    act = conv_layer(act, w1_ref, b1_ref, True)            # (16, L)
    act = conv_layer(act, w2_ref, b2_ref, True)            # (32, L)
    act = conv_layer(act, w3_ref, b3_ref, True)            # (32, L)
    act = conv_layer(act, w4_ref, b4_ref, False)           # (8,  L); row 0 is real
    o_ref[...] = act[0:o_ref.shape[0], :].astype(o_ref.dtype)


# ---------------------- one-time parameter / mask packing ---------------------
def _make_masks(H, W):
    """Per-image validity masks for the flat (row-major) spatial axis."""
    HW = H * W
    p = jnp.arange(HW, dtype=jnp.int32)
    ii = p // W
    jj = p % W
    col_rows, row_rows = [], []
    for k in range(_K):
        d = k - _P
        col_rows.append(((jj + d >= 0) & (jj + d < W)).astype(jnp.float32))
        row_rows.append(((ii + d >= 0) & (ii + d < H)).astype(jnp.float32))
    return jnp.stack(col_rows, 0), jnp.stack(row_rows, 0)        # each (5, HW)


def prepare_cnn2(params, H, W):
    """Hoisted out of the forward path: pack OIHW conv weights into stacked
    row-tap matrices (5*Cout_pad, 5*Cin_pad); padded rows/cols and padded
    bias entries are exactly zero so padded channels stay zero through ReLU."""
    layers = []
    prev_cout_p = None
    for name, _relu in _LAYER_ORDER:
        w_oihw, b = params[name]                            # (cout, cin, 5, 5), (cout,)
        cout, cin = int(w_oihw.shape[0]), int(w_oihw.shape[1])
        cin_p = _ceil8(cin) if prev_cout_p is None else prev_cout_p
        cout_p = _ceil8(cout)
        w_pad = jnp.pad(w_oihw.astype(jnp.float32),
                        ((0, cout_p - cout), (0, cin_p - cin), (0, 0), (0, 0)))
        # (cout_p, cin_p, kh, kw) -> (kh, cout_p, kw, cin_p) -> (5*cout_p, 5*cin_p)
        # so  w_stk[kh*cout_p + co, kw*cin_p + ci] == w[co, ci, kh, kw]
        w_stk = jnp.transpose(w_pad, (2, 0, 3, 1)).reshape(_K * cout_p, _K * cin_p)
        bp = jnp.pad(b.astype(jnp.float32), (0, cout_p - cout)).reshape(cout_p, 1)
        layers.append((w_stk, bp))
        prev_cout_p = cout_p
    col_mask, row_mask = _make_masks(H, W)
    return {"col_mask": col_mask, "row_mask": row_mask, "layers": tuple(layers)}


# ---------------------------------- forward -----------------------------------
def cnn2_forward(prepped, x_nchw, images_per_step=None):
    """x_nchw: (N, Cin, H, W) float32 -> (N, 1, H, W) float32."""
    N, C, H, W = x_nchw.shape
    HW = H * W
    layers = prepped["layers"]
    (w1, b1), (w2, b2), (w3, b3), (w4, b4) = layers
    cin_p0 = w1.shape[1] // _K
    max_cin_p = max(w.shape[1] // _K for w, _ in layers)    # 32
    max_cout_p = max(w.shape[0] // _K for w, _ in layers)   # 32

    # Lane-batch B images per grid step while keeping >=2 grid steps when
    # N >= 2 (v7x has 2 TensorCores; a single step leaves one idle).
    if images_per_step is None:
        images_per_step = max(1, min(_MAX_IMAGES_PER_STEP, N // 2))
    B = images_per_step
    steps = -(-N // B)
    Np = steps * B
    L = B * HW

    # (N, C, H, W) -> (steps, cin_p0, B*HW): images concatenated on the lane axis.
    x = x_nchw.reshape(N, C, HW).astype(jnp.float32)
    x = jnp.pad(x, ((0, Np - N), (0, cin_p0 - C), (0, 0)))
    x = x.reshape(steps, B, cin_p0, HW).transpose(0, 2, 1, 3).reshape(steps, cin_p0, L)

    # Per-image masks tiled across the lane-batched slab; the masks zero every
    # roll-wrapped position, so cross-image bleed is impossible.
    col_mask = jnp.tile(prepped["col_mask"], (1, B))        # (5, L)
    row_mask = jnp.tile(prepped["row_mask"], (1, B))        # (5, L)

    def full(arr):
        return pl.BlockSpec(arr.shape, lambda s: (0, 0))

    flops = 2 * sum(w.shape[0] * w.shape[1] for w, _ in layers) * L * steps
    bytes_accessed = (sum(w.size + b.size for w, b in layers) * 4
                      + (col_mask.size + row_mask.size) * 4
                      + x.size * 4 + steps * L * 4)

    kernel = functools.partial(_fused_cnn2_kernel, W=W, L=L)
    out = pl.pallas_call(
        kernel,
        out_shape=jax.ShapeDtypeStruct((steps, 1, L), jnp.float32),
        grid_spec=pltpu.PrefetchScalarGridSpec(
            num_scalar_prefetch=0,
            grid=(steps,),
            in_specs=[
                pl.BlockSpec((None, cin_p0, L), lambda s: (s, 0, 0)),
                full(col_mask), full(row_mask),
                full(w1), full(b1),
                full(w2), full(b2),
                full(w3), full(b3),
                full(w4), full(b4),
            ],
            out_specs=pl.BlockSpec((None, 1, L), lambda s: (s, 0, 0)),
            scratch_shapes=[
                pltpu.VMEM((_K * max_cin_p, L), jnp.float32),   # dw-only im2col patch
                pltpu.VMEM((_K * max_cout_p, L), jnp.float32),  # stacked row-tap partials
            ],
        ),
        compiler_params=pltpu.CompilerParams(
            dimension_semantics=("parallel",),
            vmem_limit_bytes=32 * 1024 * 1024),
        cost_estimate=pl.CostEstimate(
            flops=int(flops), transcendentals=0,
            bytes_accessed=int(bytes_accessed)),
    )(x, col_mask, row_mask, w1, b1, w2, b2, w3, b3, w4, b4)

    out = out.reshape(steps, 1, B, HW).transpose(0, 2, 1, 3).reshape(Np, 1, HW)
    return out[:N].reshape(N, 1, H, W)


# ---------------- parameter init (deterministic, PyTorch Conv2d shapes) -------
def _init_conv(key, cin, cout, k=5):
    kw_, kb_ = jax.random.split(key)
    fan_in = cin * k * k
    bound = 1.0 / (fan_in ** 0.5)
    w = jax.random.uniform(kw_, (cout, cin, k, k), jnp.float32, -bound, bound)  # OIHW
    b = jax.random.uniform(kb_, (cout,), jnp.float32, -bound, bound)
    return w, b


def init_cnn2_params(key, n_in_channels=2):
    keys = jax.random.split(key, 4)
    return {
        "conv_1": _init_conv(keys[0], n_in_channels, 16),
        "conv_2": _init_conv(keys[1], 16, 32),
        "conv_3": _init_conv(keys[2], 32, 32),
        "output_layer": _init_conv(keys[3], 32, 1),
    }


# ---------------- plain-JAX reference for verification ------------------------
def cnn2_reference(params, x_nchw):
    def conv(x, w, b):
        y = jax.lax.conv_general_dilated(
            x, w, window_strides=(1, 1), padding=((2, 2), (2, 2)),
            dimension_numbers=("NCHW", "OIHW", "NCHW"),
            precision=jax.lax.Precision.HIGHEST)
        return y + b[None, :, None, None]
    x = jax.nn.relu(conv(x_nchw, *params["conv_1"]))
    x = jax.nn.relu(conv(x, *params["conv_2"]))
    x = jax.nn.relu(conv(x, *params["conv_3"]))
    return conv(x, *params["output_layer"])


if __name__ == "__main__":
    key = jax.random.PRNGKey(0)
    k_params, k_x = jax.random.split(key)

    N, C, H, W = 2, 2, 16, 16                                # small NCHW input
    x = jax.random.normal(k_x, (N, C, H, W), dtype=jnp.float32)
    params = init_cnn2_params(k_params, n_in_channels=C)
    prepped = prepare_cnn2(params, H, W)                     # one-time packing

    out = jax.block_until_ready(jax.jit(cnn2_forward)(prepped, x))

    ref = jax.block_until_ready(cnn2_reference(params, x))
    assert out.shape == (N, 1, H, W), out.shape
    max_err = float(jnp.max(jnp.abs(out - ref)))
    assert jnp.allclose(out, ref, atol=2e-4, rtol=1e-3), max_err

    print("KERNEL_OK")
</pallas_src>

<mosaic_0001>
module attributes {stable_mosaic.version = 11 : i64} {
  func.func @_fused_cnn2_kernel(%arg0: i32, %arg1: memref<1x8x256xf32, #tpu.memory_space<vmem>>, %arg2: memref<5x256xf32, #tpu.memory_space<vmem>>, %arg3: memref<5x256xf32, #tpu.memory_space<vmem>>, %arg4: memref<80x40xf32, #tpu.memory_space<vmem>>, %arg5: memref<16x1xf32, #tpu.memory_space<vmem>>, %arg6: memref<160x80xf32, #tpu.memory_space<vmem>>, %arg7: memref<32x1xf32, #tpu.memory_space<vmem>>, %arg8: memref<160x160xf32, #tpu.memory_space<vmem>>, %arg9: memref<32x1xf32, #tpu.memory_space<vmem>>, %arg10: memref<40x160xf32, #tpu.memory_space<vmem>>, %arg11: memref<8x1xf32, #tpu.memory_space<vmem>>, %arg12: memref<1x1x256xf32, #tpu.memory_space<vmem>>, %arg13: memref<160x256xf32, #tpu.memory_space<vmem>>, %arg14: memref<160x256xf32, #tpu.memory_space<vmem>>) attributes {dimension_semantics = [#tpu.dimension_semantics<parallel>], iteration_bounds = array<i64: 2>, scalar_prefetch = 0 : i64, scratch_operands = 2 : i64, tpu.core_type = #tpu.core_type<tc>, window_params = [{transform_indices = @transform_0, window_bounds = array<i64: 1, 8, 256>}, {pipeline_mode = #tpu.pipeline_mode<synchronous>, transform_indices = @transform_1, window_bounds = array<i64: 5, 256>}, {pipeline_mode = #tpu.pipeline_mode<synchronous>, transform_indices = @transform_2, window_bounds = array<i64: 5, 256>}, {pipeline_mode = #tpu.pipeline_mode<synchronous>, transform_indices = @transform_3, window_bounds = array<i64: 80, 40>}, {pipeline_mode = #tpu.pipeline_mode<synchronous>, transform_indices = @transform_4, window_bounds = array<i64: 16, 1>}, {pipeline_mode = #tpu.pipeline_mode<synchronous>, transform_indices = @transform_5, window_bounds = array<i64: 160, 80>}, {pipeline_mode = #tpu.pipeline_mode<synchronous>, transform_indices = @transform_6, window_bounds = array<i64: 32, 1>}, {pipeline_mode = #tpu.pipeline_mode<synchronous>, transform_indices = @transform_7, window_bounds = array<i64: 160, 160>}, {pipeline_mode = #tpu.pipeline_mode<synchronous>, transform_indices = @transform_8, window_bounds = array<i64: 32, 1>}, {pipeline_mode = #tpu.pipeline_mode<synchronous>, transform_indices = @transform_9, window_bounds = array<i64: 40, 160>}, {pipeline_mode = #tpu.pipeline_mode<synchronous>, transform_indices = @transform_10, window_bounds = array<i64: 8, 1>}, {transform_indices = @transform_11, window_bounds = array<i64: 1, 1, 256>}]} {
    %c0 = arith.constant 0 : index
    %c0_0 = arith.constant 0 : index
    %c0_1 = arith.constant 0 : index
    %0 = vector.load %arg1[%c0, %c0_0, %c0_1] : memref<1x8x256xf32, #tpu.memory_space<vmem>>, vector<1x8x256xf32>
    %1 = vector.shape_cast %0 : vector<1x8x256xf32> to vector<8x256xf32>
    %c2_i32 = arith.constant 2 : i32
    %2 = tpu.dynamic_rotate %1 by %c2_i32 dim 1 : vector<8x256xf32>, i32 -> vector<8x256xf32>
    %c0_2 = arith.constant 0 : index
    %c0_3 = arith.constant 0 : index
    %3 = vector.load %arg2[%c0_2, %c0_3] : memref<5x256xf32, #tpu.memory_space<vmem>>, vector<1x256xf32>
    %4 = vector.broadcast %3 : vector<1x256xf32> to vector<8x256xf32>
    %5 = arith.mulf %2, %4 : vector<8x256xf32>
    %c0_4 = arith.constant 0 : index
    %c0_5 = arith.constant 0 : index
    %6 = vector.load %arg13[%c0_4, %c0_5] : memref<160x256xf32, #tpu.memory_space<vmem>>, vector<8x256xf32>
    tpu.vector_store %arg13[%c0_4, %c0_5], %5 {strides = array<i32>} : memref<160x256xf32, #tpu.memory_space<vmem>>, vector<8x256xf32>,
    %c1_i32 = arith.constant 1 : i32
    %7 = tpu.dynamic_rotate %1 by %c1_i32 dim 1 : vector<8x256xf32>, i32 -> vector<8x256xf32>
    %c1 = arith.constant 1 : index
    %c0_6 = arith.constant 0 : index
    %8 = vector.load %arg2[%c1, %c0_6] : memref<5x256xf32, #tpu.memory_space<vmem>>, vector<1x256xf32>
    %9 = vector.broadcast %8 : vector<1x256xf32> to vector<8x256xf32>
    %10 = arith.mulf %7, %9 : vector<8x256xf32>
    %c8 = arith.constant 8 : index
    %c0_7 = arith.constant 0 : index
    %11 = vector.load %arg13[%c8, %c0_7] : memref<160x256xf32, #tpu.memory_space<vmem>>, vector<8x256xf32>
    tpu.vector_store %arg13[%c8, %c0_7], %10 {strides = array<i32>} : memref<160x256xf32, #tpu.memory_space<vmem>>, vector<8x256xf32>,
    %c16 = arith.constant 16 : index
    %c0_8 = arith.constant 0 : index
    %12 = vector.load %arg13[%c16, %c0_8] : memref<160x256xf32, #tpu.memory_space<vmem>>, vector<8x256xf32>
    tpu.vector_store %arg13[%c16, %c0_8], %1 {strides = array<i32>} : memref<160x256xf32, #tpu.memory_space<vmem>>, vector<8x256xf32>,
    %c255_i32 = arith.constant 255 : i32
    %13 = tpu.dynamic_rotate %1 by %c255_i32 dim 1 : vector<8x256xf32>, i32 -> vector<8x256xf32>
    %c3 = arith.constant 3 : index
    %c0_9 = arith.constant 0 : index
    %14 = vector.load %arg2[%c3, %c0_9] : memref<5x256xf32, #tpu.memory_space<vmem>>, vector<1x256xf32>
    %15 = vector.broadcast %14 : vector<1x256xf32> to vector<8x256xf32>
    %16 = arith.mulf %13, %15 : vector<8x256xf32>
    %c24 = arith.constant 24 : index
    %c0_10 = arith.constant 0 : index
    %17 = vector.load %arg13[%c24, %c0_10] : memref<160x256xf32, #tpu.memory_space<vmem>>, vector<8x256xf32>
    tpu.vector_store %arg13[%c24, %c0_10], %16 {strides = array<i32>} : memref<160x256xf32, #tpu.memory_space<vmem>>, vector<8x256xf32>,
    %c254_i32 = arith.constant 254 : i32
    %18 = tpu.dynamic_rotate %1 by %c254_i32 dim 1 : vector<8x256xf32>, i32 -> vector<8x256xf32>
    %c4 = arith.constant 4 : index
    %c0_11 = arith.constant 0 : index
    %19 = vector.load %arg2[%c4, %c0_11] : memref<5x256xf32, #tpu.memory_space<vmem>>, vector<1x256xf32>
    %20 = vector.broadcast %19 : vector<1x256xf32> to vector<8x256xf32>
    %21 = arith.mulf %18, %20 : vector<8x256xf32>
    %c32 = arith.constant 32 : index
    %c0_12 = arith.constant 0 : index
    %22 = vector.load %arg13[%c32, %c0_12] : memref<160x256xf32, #tpu.memory_space<vmem>>, vector<8x256xf32>
    tpu.vector_store %arg13[%c32, %c0_12], %21 {strides = array<i32>} : memref<160x256xf32, #tpu.memory_space<vmem>>, vector<8x256xf32>,
    %c0_13 = arith.constant 0 : index
    %c0_14 = arith.constant 0 : index
    %23 = vector.load %arg4[%c0_13, %c0_14] : memref<80x40xf32, #tpu.memory_space<vmem>>, vector<80x40xf32>
    %c0_15 = arith.constant 0 : index
    %c0_16 = arith.constant 0 : index
    %24 = vector.load %arg13[%c0_15, %c0_16] : memref<160x256xf32, #tpu.memory_space<vmem>>, vector<40x256xf32>
    %cst = arith.constant dense<0.000000e+00> : vector<80x256xf32>
    %25 = tpu.matmul %23, %24, %cst {dimension_numbers = #tpu.dot_dimension_numbers<[1], [0], [0], [1], [0, 0, 1, 1], [], []>} : vector<80x40xf32>, vector<40x256xf32>, vector<80x256xf32> -> vector<80x256xf32>
    %c0_17 = arith.constant 0 : index
    %c0_18 = arith.constant 0 : index
    %26 = vector.load %arg14[%c0_17, %c0_18] : memref<160x256xf32, #tpu.memory_space<vmem>>, vector<80x256xf32>
    tpu.vector_store %arg14[%c0_17, %c0_18], %25 {strides = array<i32>} : memref<160x256xf32, #tpu.memory_space<vmem>>, vector<80x256xf32>,
    %c32_19 = arith.constant 32 : index
    %c0_20 = arith.constant 0 : index
    %27 = vector.load %arg14[%c32_19, %c0_20] : memref<160x256xf32, #tpu.memory_space<vmem>>, vector<16x256xf32>
    %c0_21 = arith.constant 0 : index
    %c0_22 = arith.constant 0 : index
    %28 = vector.load %arg14[%c0_21, %c0_22] : memref<160x256xf32, #tpu.memory_space<vmem>>, vector<16x256xf32>
    %c32_i32 = arith.constant 32 : i32
    %29 = tpu.dynamic_rotate %28 by %c32_i32 dim 1 : vector<16x256xf32>, i32 -> vector<16x256xf32>
    %c0_23 = arith.constant 0 : index
    %c0_24 = arith.constant 0 : index
    %30 = vector.load %arg3[%c0_23, %c0_24] : memref<5x256xf32, #tpu.memory_space<vmem>>, vector<1x256xf32>
    %31 = vector.broadcast %30 : vector<1x256xf32> to vector<16x256xf32>
    %32 = arith.mulf %29, %31 : vector<16x256xf32>
    %33 = arith.addf %27, %32 : vector<16x256xf32>
    %c16_25 = arith.constant 16 : index
    %c0_26 = arith.constant 0 : index
    %34 = vector.load %arg14[%c16_25, %c0_26] : memref<160x256xf32, #tpu.memory_space<vmem>>, vector<16x256xf32>
    %c16_i32 = arith.constant 16 : i32
    %35 = tpu.dynamic_rotate %34 by %c16_i32 dim 1 : vector<16x256xf32>, i32 -> vector<16x256xf32>
    %c1_27 = arith.constant 1 : index
    %c0_28 = arith.constant 0 : index
    %36 = vector.load %arg3[%c1_27, %c0_28] : memref<5x256xf32, #tpu.memory_space<vmem>>, vector<1x256xf32>
    %37 = vector.broadcast %36 : vector<1x256xf32> to vector<16x256xf32>
    %38 = arith.mulf %35, %37 : vector<16x256xf32>
    %39 = arith.addf %33, %38 : vector<16x256xf32>
    %c48 = arith.constant 48 : index
    %c0_29 = arith.constant 0 : index
    %40 = vector.load %arg14[%c48, %c0_29] : memref<160x256xf32, #tpu.memory_space<vmem>>, vector<16x256xf32>
    %c240_i32 = arith.constant 240 : i32
    %41 = tpu.dynamic_rotate %40 by %c240_i32 dim 1 : vector<16x256xf32>, i32 -> vector<16x256xf32>
    %c3_30 = arith.constant 3 : index
    %c0_31 = arith.constant 0 : index
    %42 = vector.load %arg3[%c3_30, %c0_31] : memref<5x256xf32, #tpu.memory_space<vmem>>, vector<1x256xf32>
    %43 = vector.broadcast %42 : vector<1x256xf32> to vector<16x256xf32>
    %44 = arith.mulf %41, %43 : vector<16x256xf32>
    %45 = arith.addf %39, %44 : vector<16x256xf32>
    %c64 = arith.constant 64 : index
    %c0_32 = arith.constant 0 : index
    %46 = vector.load %arg14[%c64, %c0_32] : memref<160x256xf32, #tpu.memory_space<vmem>>, vector<16x256xf32>
    %c224_i32 = arith.constant 224 : i32
    %47 = tpu.dynamic_rotate %46 by %c224_i32 dim 1 : vector<16x256xf32>, i32 -> vector<16x256xf32>
    %c4_33 = arith.constant 4 : index
    %c0_34 = arith.constant 0 : index
    %48 = vector.load %arg3[%c4_33, %c0_34] : memref<5x256xf32, #tpu.memory_space<vmem>>, vector<1x256xf32>
    %49 = vector.broadcast %48 : vector<1x256xf32> to vector<16x256xf32>
    %50 = arith.mulf %47, %49 : vector<16x256xf32>
    %51 = arith.addf %45, %50 : vector<16x256xf32>
    %c0_35 = arith.constant 0 : index
    %c0_36 = arith.constant 0 : index
    %52 = vector.load %arg5[%c0_35, %c0_36] : memref<16x1xf32, #tpu.memory_space<vmem>>, vector<16x1xf32>
    %53 = vector.broadcast %52 : vector<16x1xf32> to vector<16x256xf32>
    %54 = arith.addf %51, %53 : vector<16x256xf32>
    %cst_37 = arith.constant 0.000000e+00 : f32
    %55 = vector.broadcast %cst_37 : f32 to vector<16x256xf32>
    %56 = arith.maximumf %54, %55 : vector<16x256xf32>
    %c2_i32_38 = arith.constant 2 : i32
    %57 = tpu.dynamic_rotate %56 by %c2_i32_38 dim 1 : vector<16x256xf32>, i32 -> vector<16x256xf32>
    %c0_39 = arith.constant 0 : index
    %c0_40 = arith.constant 0 : index
    %58 = vector.load %arg2[%c0_39, %c0_40] : memref<5x256xf32, #tpu.memory_space<vmem>>, vector<1x256xf32>
    %59 = vector.broadcast %58 : vector<1x256xf32> to vector<16x256xf32>
    %60 = arith.mulf %57, %59 : vector<16x256xf32>
    %c0_41 = arith.constant 0 : index
    %c0_42 = arith.constant 0 : index
    %61 = vector.load %arg13[%c0_41, %c0_42] : memref<160x256xf32, #tpu.memory_space<vmem>>, vector<16x256xf32>
    tpu.vector_store %arg13[%c0_41, %c0_42], %60 {strides = array<i32>} : memref<160x256xf32, #tpu.memory_space<vmem>>, vector<16x256xf32>,
    %c1_i32_43 = arith.constant 1 : i32
    %62 = tpu.dynamic_rotate %56 by %c1_i32_43 dim 1 : vector<16x256xf32>, i32 -> vector<16x256xf32>
    %c1_44 = arith.constant 1 : index
    %c0_45 = arith.constant 0 : index
    %63 = vector.load %arg2[%c1_44, %c0_45] : memref<5x256xf32, #tpu.memory_space<vmem>>, vector<1x256xf32>
    %64 = vector.broadcast %63 : vector<1x256xf32> to vector<16x256xf32>
    %65 = arith.mulf %62, %64 : vector<16x256xf32>
    %c16_46 = arith.constant 16 : index
    %c0_47 = arith.constant 0 : index
    %66 = vector.load %arg13[%c16_46, %c0_47] : memref<160x256xf32, #tpu.memory_space<vmem>>, vector<16x256xf32>
    tpu.vector_store %arg13[%c16_46, %c0_47], %65 {strides = array<i32>} : memref<160x256xf32, #tpu.memory_space<vmem>>, vector<16x256xf32>,
    %c32_48 = arith.constant 32 : index
    %c0_49 = arith.constant 0 : index
    %67 = vector.load %arg13[%c32_48, %c0_49] : memref<160x256xf32, #tpu.memory_space<vmem>>, vector<16x256xf32>
    tpu.vector_store %arg13[%c32_48, %c0_49], %56 {strides = array<i32>} : memref<160x256xf32, #tpu.memory_space<vmem>>, vector<16x256xf32>,
    %c255_i32_50 = arith.constant 255 : i32
    %68 = tpu.dynamic_rotate %56 by %c255_i32_50 dim 1 : vector<16x256xf32>, i32 -> vector<16x256xf32>
    %c3_51 = arith.constant 3 : index
    %c0_52 = arith.constant 0 : index
    %69 = vector.load %arg2[%c3_51, %c0_52] : memref<5x256xf32, #tpu.memory_space<vmem>>, vector<1x256xf32>
    %70 = vector.broadcast %69 : vector<1x256xf32> to vector<16x256xf32>
    %71 = arith.mulf %68, %70 : vector<16x256xf32>
    %c48_53 = arith.constant 48 : index
    %c0_54 = arith.constant 0 : index
    %72 = vector.load %arg13[%c48_53, %c0_54] : memref<160x256xf32, #tpu.memory_space<vmem>>, vector<16x256xf32>
    tpu.vector_store %arg13[%c48_53, %c0_54], %71 {strides = array<i32>} : memref<160x256xf32, #tpu.memory_space<vmem>>, vector<16x256xf32>,
    %c254_i32_55 = arith.constant 254 : i32
    %73 = tpu.dynamic_rotate %56 by %c254_i32_55 dim 1 : vector<16x256xf32>, i32 -> vector<16x256xf32>
    %c4_56 = arith.constant 4 : index
    %c0_57 = arith.constant 0 : index
    %74 = vector.load %arg2[%c4_56, %c0_57] : memref<5x256xf32, #tpu.memory_space<vmem>>, vector<1x256xf32>
    %75 = vector.broadcast %74 : vector<1x256xf32> to vector<16x256xf32>
    %76 = arith.mulf %73, %75 : vector<16x256xf32>
    %c64_58 = arith.constant 64 : index
    %c0_59 = arith.constant 0 : index
    %77 = vector.load %arg13[%c64_58, %c0_59] : memref<160x256xf32, #tpu.memory_space<vmem>>, vector<16x256xf32>
    tpu.vector_store %arg13[%c64_58, %c0_59], %76 {strides = array<i32>} : memref<160x256xf32, #tpu.memory_space<vmem>>, vector<16x256xf32>,
    %c0_60 = arith.constant 0 : index
    %c0_61 = arith.constant 0 : index
    %78 = vector.load %arg6[%c0_60, %c0_61] : memref<160x80xf32, #tpu.memory_space<vmem>>, vector<160x80xf32>
    %c0_62 = arith.constant 0 : index
    %c0_63 = arith.constant 0 : index
    %79 = vector.load %arg13[%c0_62, %c0_63] : memref<160x256xf32, #tpu.memory_space<vmem>>, vector<80x256xf32>
    %cst_64 = arith.constant dense<0.000000e+00> : vector<160x256xf32>
    %80 = tpu.matmul %78, %79, %cst_64 {dimension_numbers = #tpu.dot_dimension_numbers<[1], [0], [0], [1], [0, 0, 1, 1], [], []>} : vector<160x80xf32>, vector<80x256xf32>, vector<160x256xf32> -> vector<160x256xf32>
    %c0_65 = arith.constant 0 : index
    %c0_66 = arith.constant 0 : index
    %81 = vector.load %arg14[%c0_65, %c0_66] : memref<160x256xf32, #tpu.memory_space<vmem>>, vector<160x256xf32>
    tpu.vector_store %arg14[%c0_65, %c0_66], %80 {strides = array<i32>} : memref<160x256xf32, #tpu.memory_space<vmem>>, vector<160x256xf32>,
    %c64_67 = arith.constant 64 : index
    %c0_68 = arith.constant 0 : index
    %82 = vector.load %arg14[%c64_67, %c0_68] : memref<160x256xf32, #tpu.memory_space<vmem>>, vector<32x256xf32>
    %c0_69 = arith.constant 0 : index
    %c0_70 = arith.constant 0 : index
    %83 = vector.load %arg14[%c0_69, %c0_70] : memref<160x256xf32, #tpu.memory_space<vmem>>, vector<32x256xf32>
    %c32_i32_71 = arith.constant 32 : i32
    %84 = tpu.dynamic_rotate %83 by %c32_i32_71 dim 1 : vector<32x256xf32>, i32 -> vector<32x256xf32>
    %c0_72 = arith.constant 0 : index
    %c0_73 = arith.constant 0 : index
    %85 = vector.load %arg3[%c0_72, %c0_73] : memref<5x256xf32, #tpu.memory_space<vmem>>, vector<1x256xf32>
    %86 = vector.broadcast %85 : vector<1x256xf32> to vector<32x256xf32>
    %87 = arith.mulf %84, %86 : vector<32x256xf32>
    %88 = arith.addf %82, %87 : vector<32x256xf32>
    %c32_74 = arith.constant 32 : index
    %c0_75 = arith.constant 0 : index
    %89 = vector.load %arg14[%c32_74, %c0_75] : memref<160x256xf32, #tpu.memory_space<vmem>>, vector<32x256xf32>
    %c16_i32_76 = arith.constant 16 : i32
    %90 = tpu.dynamic_rotate %89 by %c16_i32_76 dim 1 : vector<32x256xf32>, i32 -> vector<32x256xf32>
    %c1_77 = arith.constant 1 : index
    %c0_78 = arith.constant 0 : index
    %91 = vector.load %arg3[%c1_77, %c0_78] : memref<5x256xf32, #tpu.memory_space<vmem>>, vector<1x256xf32>
    %92 = vector.broadcast %91 : vector<1x256xf32> to vector<32x256xf32>
    %93 = arith.mulf %90, %92 : vector<32x256xf32>
    %94 = arith.addf %88, %93 : vector<32x256xf32>
    %c96 = arith.constant 96 : index
    %c0_79 = arith.constant 0 : index
    %95 = vector.load %arg14[%c96, %c0_79] : memref<160x256xf32, #tpu.memory_space<vmem>>, vector<32x256xf32>
    %c240_i32_80 = arith.constant 240 : i32
    %96 = tpu.dynamic_rotate %95 by %c240_i32_80 dim 1 : vector<32x256xf32>, i32 -> vector<32x256xf32>
    %c3_81 = arith.constant 3 : index
    %c0_82 = arith.constant 0 : index
    %97 = vector.load %arg3[%c3_81, %c0_82] : memref<5x256xf32, #tpu.memory_space<vmem>>, vector<1x256xf32>
    %98 = vector.broadcast %97 : vector<1x256xf32> to vector<32x256xf32>
    %99 = arith.mulf %96, %98 : vector<32x256xf32>
    %100 = arith.addf %94, %99 : vector<32x256xf32>
    %c128 = arith.constant 128 : index
    %c0_83 = arith.constant 0 : index
    %101 = vector.load %arg14[%c128, %c0_83] : memref<160x256xf32, #tpu.memory_space<vmem>>, vector<32x256xf32>
    %c224_i32_84 = arith.constant 224 : i32
    %102 = tpu.dynamic_rotate %101 by %c224_i32_84 dim 1 : vector<32x256xf32>, i32 -> vector<32x256xf32>
    %c4_85 = arith.constant 4 : index
    %c0_86 = arith.constant 0 : index
    %103 = vector.load %arg3[%c4_85, %c0_86] : memref<5x256xf32, #tpu.memory_space<vmem>>, vector<1x256xf32>
    %104 = vector.broadcast %103 : vector<1x256xf32> to vector<32x256xf32>
    %105 = arith.mulf %102, %104 : vector<32x256xf32>
    %106 = arith.addf %100, %105 : vector<32x256xf32>
    %c0_87 = arith.constant 0 : index
    %c0_88 = arith.constant 0 : index
    %107 = vector.load %arg7[%c0_87, %c0_88] : memref<32x1xf32, #tpu.memory_space<vmem>>, vector<32x1xf32>
    %108 = vector.broadcast %107 : vector<32x1xf32> to vector<32x256xf32>
    %109 = arith.addf %106, %108 : vector<32x256xf32>
    %cst_89 = arith.constant 0.000000e+00 : f32
    %110 = vector.broadcast %cst_89 : f32 to vector<32x256xf32>
    %111 = arith.maximumf %109, %110 : vector<32x256xf32>
    %c2_i32_90 = arith.constant 2 : i32
    %112 = tpu.dynamic_rotate %111 by %c2_i32_90 dim 1 : vector<32x256xf32>, i32 -> vector<32x256xf32>
    %c0_91 = arith.constant 0 : index
    %c0_92 = arith.constant 0 : index
    %113 = vector.load %arg2[%c0_91, %c0_92] : memref<5x256xf32, #tpu.memory_space<vmem>>, vector<1x256xf32>
    %114 = vector.broadcast %113 : vector<1x256xf32> to vector<32x256xf32>
    %115 = arith.mulf %112, %114 : vector<32x256xf32>
    %c0_93 = arith.constant 0 : index
    %c0_94 = arith.constant 0 : index
    %116 = vector.load %arg13[%c0_93, %c0_94] : memref<160x256xf32, #tpu.memory_space<vmem>>, vector<32x256xf32>
    tpu.vector_store %arg13[%c0_93, %c0_94], %115 {strides = array<i32>} : memref<160x256xf32, #tpu.memory_space<vmem>>, vector<32x256xf32>,
    %c1_i32_95 = arith.constant 1 : i32
    %117 = tpu.dynamic_rotate %111 by %c1_i32_95 dim 1 : vector<32x256xf32>, i32 -> vector<32x256xf32>
    %c1_96 = arith.constant 1 : index
    %c0_97 = arith.constant 0 : index
    %118 = vector.load %arg2[%c1_96, %c0_97] : memref<5x256xf32, #tpu.memory_space<vmem>>, vector<1x256xf32>
    %119 = vector.broadcast %118 : vector<1x256xf32> to vector<32x256xf32>
    %120 = arith.mulf %117, %119 : vector<32x256xf32>
    %c32_98 = arith.constant 32 : index
    %c0_99 = arith.constant 0 : index
    %121 = vector.load %arg13[%c32_98, %c0_99] : memref<160x256xf32, #tpu.memory_space<vmem>>, vector<32x256xf32>
    tpu.vector_store %arg13[%c32_98, %c0_99], %120 {strides = array<i32>} : memref<160x256xf32, #tpu.memory_space<vmem>>, vector<32x256xf32>,
    %c64_100 = arith.constant 64 : index
    %c0_101 = arith.constant 0 : index
    %122 = vector.load %arg13[%c64_100, %c0_101] : memref<160x256xf32, #tpu.memory_space<vmem>>, vector<32x256xf32>
    tpu.vector_store %arg13[%c64_100, %c0_101], %111 {strides = array<i32>} : memref<160x256xf32, #tpu.memory_space<vmem>>, vector<32x256xf32>,
    %c255_i32_102 = arith.constant 255 : i32
    %123 = tpu.dynamic_rotate %111 by %c255_i32_102 dim 1 : vector<32x256xf32>, i32 -> vector<32x256xf32>
    %c3_103 = arith.constant 3 : index
    %c0_104 = arith.constant 0 : index
    %124 = vector.load %arg2[%c3_103, %c0_104] : memref<5x256xf32, #tpu.memory_space<vmem>>, vector<1x256xf32>
    %125 = vector.broadcast %124 : vector<1x256xf32> to vector<32x256xf32>
    %126 = arith.mulf %123, %125 : vector<32x256xf32>
    %c96_105 = arith.constant 96 : index
    %c0_106 = arith.constant 0 : index
    %127 = vector.load %arg13[%c96_105, %c0_106] : memref<160x256xf32, #tpu.memory_space<vmem>>, vector<32x256xf32>
    tpu.vector_store %arg13[%c96_105, %c0_106], %126 {strides = array<i32>} : memref<160x256xf32, #tpu.memory_space<vmem>>, vector<32x256xf32>,
    %c254_i32_107 = arith.constant 254 : i32
    %128 = tpu.dynamic_rotate %111 by %c254_i32_107 dim 1 : vector<32x256xf32>, i32 -> vector<32x256xf32>
    %c4_108 = arith.constant 4 : index
    %c0_109 = arith.constant 0 : index
    %129 = vector.load %arg2[%c4_108, %c0_109] : memref<5x256xf32, #tpu.memory_space<vmem>>, vector<1x256xf32>
    %130 = vector.broadcast %129 : vector<1x256xf32> to vector<32x256xf32>
    %131 = arith.mulf %128, %130 : vector<32x256xf32>
    %c128_110 = arith.constant 128 : index
    %c0_111 = arith.constant 0 : index
    %132 = vector.load %arg13[%c128_110, %c0_111] : memref<160x256xf32, #tpu.memory_space<vmem>>, vector<32x256xf32>
    tpu.vector_store %arg13[%c128_110, %c0_111], %131 {strides = array<i32>} : memref<160x256xf32, #tpu.memory_space<vmem>>, vector<32x256xf32>,
    %c0_112 = arith.constant 0 : index
    %c0_113 = arith.constant 0 : index
    %133 = vector.load %arg8[%c0_112, %c0_113] : memref<160x160xf32, #tpu.memory_space<vmem>>, vector<160x160xf32>
    %c0_114 = arith.constant 0 : index
    %c0_115 = arith.constant 0 : index
    %134 = vector.load %arg13[%c0_114, %c0_115] : memref<160x256xf32, #tpu.memory_space<vmem>>, vector<160x256xf32>
    %cst_116 = arith.constant dense<0.000000e+00> : vector<160x256xf32>
    %135 = tpu.matmul %133, %134, %cst_116 {dimension_numbers = #tpu.dot_dimension_numbers<[1], [0], [0], [1], [0, 0, 1, 1], [], []>} : vector<160x160xf32>, vector<160x256xf32>, vector<160x256xf32> -> vector<160x256xf32>
    %c0_117 = arith.constant 0 : index
    %c0_118 = arith.constant 0 : index
    %136 = vector.load %arg14[%c0_117, %c0_118] : memref<160x256xf32, #tpu.memory_space<vmem>>, vector<160x256xf32>
    tpu.vector_store %arg14[%c0_117, %c0_118], %135 {strides = array<i32>} : memref<160x256xf32, #tpu.memory_space<vmem>>, vector<160x256xf32>,
    %c64_119 = arith.constant 64 : index
    %c0_120 = arith.constant 0 : index
    %137 = vector.load %arg14[%c64_119, %c0_120] : memref<160x256xf32, #tpu.memory_space<vmem>>, vector<32x256xf32>
    %c0_121 = arith.constant 0 : index
    %c0_122 = arith.constant 0 : index
    %138 = vector.load %arg14[%c0_121, %c0_122] : memref<160x256xf32, #tpu.memory_space<vmem>>, vector<32x256xf32>
    %c32_i32_123 = arith.constant 32 : i32
    %139 = tpu.dynamic_rotate %138 by %c32_i32_123 dim 1 : vector<32x256xf32>, i32 -> vector<32x256xf32>
    %c0_124 = arith.constant 0 : index
    %c0_125 = arith.constant 0 : index
    %140 = vector.load %arg3[%c0_124, %c0_125] : memref<5x256xf32, #tpu.memory_space<vmem>>, vector<1x256xf32>
    %141 = vector.broadcast %140 : vector<1x256xf32> to vector<32x256xf32>
    %142 = arith.mulf %139, %141 : vector<32x256xf32>
    %143 = arith.addf %137, %142 : vector<32x256xf32>
    %c32_126 = arith.constant 32 : index
    %c0_127 = arith.constant 0 : index
    %144 = vector.load %arg14[%c32_126, %c0_127] : memref<160x256xf32, #tpu.memory_space<vmem>>, vector<32x256xf32>
    %c16_i32_128 = arith.constant 16 : i32
    %145 = tpu.dynamic_rotate %144 by %c16_i32_128 dim 1 : vector<32x256xf32>, i32 -> vector<32x256xf32>
    %c1_129 = arith.constant 1 : index
    %c0_130 = arith.constant 0 : index
    %146 = vector.load %arg3[%c1_129, %c0_130] : memref<5x256xf32, #tpu.memory_space<vmem>>, vector<1x256xf32>
    %147 = vector.broadcast %146 : vector<1x256xf32> to vector<32x256xf32>
    %148 = arith.mulf %145, %147 : vector<32x256xf32>
    %149 = arith.addf %143, %148 : vector<32x256xf32>
    %c96_131 = arith.constant 96 : index
    %c0_132 = arith.constant 0 : index
    %150 = vector.load %arg14[%c96_131, %c0_132] : memref<160x256xf32, #tpu.memory_space<vmem>>, vector<32x256xf32>
    %c240_i32_133 = arith.constant 240 : i32
    %151 = tpu.dynamic_rotate %150 by %c240_i32_133 dim 1 : vector<32x256xf32>, i32 -> vector<32x256xf32>
    %c3_134 = arith.constant 3 : index
    %c0_135 = arith.constant 0 : index
    %152 = vector.load %arg3[%c3_134, %c0_135] : memref<5x256xf32, #tpu.memory_space<vmem>>, vector<1x256xf32>
    %153 = vector.broadcast %152 : vector<1x256xf32> to vector<32x256xf32>
    %154 = arith.mulf %151, %153 : vector<32x256xf32>
    %155 = arith.addf %149, %154 : vector<32x256xf32>
    %c128_136 = arith.constant 128 : index
    %c0_137 = arith.constant 0 : index
    %156 = vector.load %arg14[%c128_136, %c0_137] : memref<160x256xf32, #tpu.memory_space<vmem>>, vector<32x256xf32>
    %c224_i32_138 = arith.constant 224 : i32
    %157 = tpu.dynamic_rotate %156 by %c224_i32_138 dim 1 : vector<32x256xf32>, i32 -> vector<32x256xf32>
    %c4_139 = arith.constant 4 : index
    %c0_140 = arith.constant 0 : index
    %158 = vector.load %arg3[%c4_139, %c0_140] : memref<5x256xf32, #tpu.memory_space<vmem>>, vector<1x256xf32>
    %159 = vector.broadcast %158 : vector<1x256xf32> to vector<32x256xf32>
    %160 = arith.mulf %157, %159 : vector<32x256xf32>
    %161 = arith.addf %155, %160 : vector<32x256xf32>
    %c0_141 = arith.constant 0 : index
    %c0_142 = arith.constant 0 : index
    %162 = vector.load %arg9[%c0_141, %c0_142] : memref<32x1xf32, #tpu.memory_space<vmem>>, vector<32x1xf32>
    %163 = vector.broadcast %162 : vector<32x1xf32> to vector<32x256xf32>
    %164 = arith.addf %161, %163 : vector<32x256xf32>
    %cst_143 = arith.constant 0.000000e+00 : f32
    %165 = vector.broadcast %cst_143 : f32 to vector<32x256xf32>
    %166 = arith.maximumf %164, %165 : vector<32x256xf32>
    %c2_i32_144 = arith.constant 2 : i32
    %167 = tpu.dynamic_rotate %166 by %c2_i32_144 dim 1 : vector<32x256xf32>, i32 -> vector<32x256xf32>
    %c0_145 = arith.constant 0 : index
    %c0_146 = arith.constant 0 : index
    %168 = vector.load %arg2[%c0_145, %c0_146] : memref<5x256xf32, #tpu.memory_space<vmem>>, vector<1x256xf32>
    %169 = vector.broadcast %168 : vector<1x256xf32> to vector<32x256xf32>
    %170 = arith.mulf %167, %169 : vector<32x256xf32>
    %c0_147 = arith.constant 0 : index
    %c0_148 = arith.constant 0 : index
    %171 = vector.load %arg13[%c0_147, %c0_148] : memref<160x256xf32, #tpu.memory_space<vmem>>, vector<32x256xf32>
    tpu.vector_store %arg13[%c0_147, %c0_148], %170 {strides = array<i32>} : memref<160x256xf32, #tpu.memory_space<vmem>>, vector<32x256xf32>,
    %c1_i32_149 = arith.constant 1 : i32
    %172 = tpu.dynamic_rotate %166 by %c1_i32_149 dim 1 : vector<32x256xf32>, i32 -> vector<32x256xf32>
    %c1_150 = arith.constant 1 : index
    %c0_151 = arith.constant 0 : index
    %173 = vector.load %arg2[%c1_150, %c0_151] : memref<5x256xf32, #tpu.memory_space<vmem>>, vector<1x256xf32>
    %174 = vector.broadcast %173 : vector<1x256xf32> to vector<32x256xf32>
    %175 = arith.mulf %172, %174 : vector<32x256xf32>
    %c32_152 = arith.constant 32 : index
    %c0_153 = arith.constant 0 : index
    %176 = vector.load %arg13[%c32_152, %c0_153] : memref<160x256xf32, #tpu.memory_space<vmem>>, vector<32x256xf32>
    tpu.vector_store %arg13[%c32_152, %c0_153], %175 {strides = array<i32>} : memref<160x256xf32, #tpu.memory_space<vmem>>, vector<32x256xf32>,
    %c64_154 = arith.constant 64 : index
    %c0_155 = arith.constant 0 : index
    %177 = vector.load %arg13[%c64_154, %c0_155] : memref<160x256xf32, #tpu.memory_space<vmem>>, vector<32x256xf32>
    tpu.vector_store %arg13[%c64_154, %c0_155], %166 {strides = array<i32>} : memref<160x256xf32, #tpu.memory_space<vmem>>, vector<32x256xf32>,
    %c255_i32_156 = arith.constant 255 : i32
    %178 = tpu.dynamic_rotate %166 by %c255_i32_156 dim 1 : vector<32x256xf32>, i32 -> vector<32x256xf32>
    %c3_157 = arith.constant 3 : index
    %c0_158 = arith.constant 0 : index
    %179 = vector.load %arg2[%c3_157, %c0_158] : memref<5x256xf32, #tpu.memory_space<vmem>>, vector<1x256xf32>
    %180 = vector.broadcast %179 : vector<1x256xf32> to vector<32x256xf32>
    %181 = arith.mulf %178, %180 : vector<32x256xf32>
    %c96_159 = arith.constant 96 : index
    %c0_160 = arith.constant 0 : index
    %182 = vector.load %arg13[%c96_159, %c0_160] : memref<160x256xf32, #tpu.memory_space<vmem>>, vector<32x256xf32>
    tpu.vector_store %arg13[%c96_159, %c0_160], %181 {strides = array<i32>} : memref<160x256xf32, #tpu.memory_space<vmem>>, vector<32x256xf32>,
    %c254_i32_161 = arith.constant 254 : i32
    %183 = tpu.dynamic_rotate %166 by %c254_i32_161 dim 1 : vector<32x256xf32>, i32 -> vector<32x256xf32>
    %c4_162 = arith.constant 4 : index
    %c0_163 = arith.constant 0 : index
    %184 = vector.load %arg2[%c4_162, %c0_163] : memref<5x256xf32, #tpu.memory_space<vmem>>, vector<1x256xf32>
    %185 = vector.broadcast %184 : vector<1x256xf32> to vector<32x256xf32>
    %186 = arith.mulf %183, %185 : vector<32x256xf32>
    %c128_164 = arith.constant 128 : index
    %c0_165 = arith.constant 0 : index
    %187 = vector.load %arg13[%c128_164, %c0_165] : memref<160x256xf32, #tpu.memory_space<vmem>>, vector<32x256xf32>
    tpu.vector_store %arg13[%c128_164, %c0_165], %186 {strides = array<i32>} : memref<160x256xf32, #tpu.memory_space<vmem>>, vector<32x256xf32>,
    %c0_166 = arith.constant 0 : index
    %c0_167 = arith.constant 0 : index
    %188 = vector.load %arg10[%c0_166, %c0_167] : memref<40x160xf32, #tpu.memory_space<vmem>>, vector<40x160xf32>
    %c0_168 = arith.constant 0 : index
    %c0_169 = arith.constant 0 : index
    %189 = vector.load %arg13[%c0_168, %c0_169] : memref<160x256xf32, #tpu.memory_space<vmem>>, vector<160x256xf32>
    %cst_170 = arith.constant dense<0.000000e+00> : vector<40x256xf32>
    %190 = tpu.matmul %188, %189, %cst_170 {dimension_numbers = #tpu.dot_dimension_numbers<[1], [0], [0], [1], [0, 0, 1, 1], [], []>} : vector<40x160xf32>, vector<160x256xf32>, vector<40x256xf32> -> vector<40x256xf32>
    %c0_171 = arith.constant 0 : index
    %c0_172 = arith.constant 0 : index
    %191 = vector.load %arg14[%c0_171, %c0_172] : memref<160x256xf32, #tpu.memory_space<vmem>>, vector<40x256xf32>
    tpu.vector_store %arg14[%c0_171, %c0_172], %190 {strides = array<i32>} : memref<160x256xf32, #tpu.memory_space<vmem>>, vector<40x256xf32>,
    %c16_173 = arith.constant 16 : index
    %c0_174 = arith.constant 0 : index
    %192 = vector.load %arg14[%c16_173, %c0_174] : memref<160x256xf32, #tpu.memory_space<vmem>>, vector<8x256xf32>
    %c0_175 = arith.constant 0 : index
    %c0_176 = arith.constant 0 : index
    %193 = vector.load %arg14[%c0_175, %c0_176] : memref<160x256xf32, #tpu.memory_space<vmem>>, vector<8x256xf32>
    %c32_i32_177 = arith.constant 32 : i32
    %194 = tpu.dynamic_rotate %193 by %c32_i32_177 dim 1 : vector<8x256xf32>, i32 -> vector<8x256xf32>
    %c0_178 = arith.constant 0 : index
    %c0_179 = arith.constant 0 : index
    %195 = vector.load %arg3[%c0_178, %c0_179] : memref<5x256xf32, #tpu.memory_space<vmem>>, vector<1x256xf32>
    %196 = vector.broadcast %195 : vector<1x256xf32> to vector<8x256xf32>
    %197 = arith.mulf %194, %196 : vector<8x256xf32>
    %198 = arith.addf %192, %197 : vector<8x256xf32>
    %c8_180 = arith.constant 8 : index
    %c0_181 = arith.constant 0 : index
    %199 = vector.load %arg14[%c8_180, %c0_181] : memref<160x256xf32, #tpu.memory_space<vmem>>, vector<8x256xf32>
    %c16_i32_182 = arith.constant 16 : i32
    %200 = tpu.dynamic_rotate %199 by %c16_i32_182 dim 1 : vector<8x256xf32>, i32 -> vector<8x256xf32>
    %c1_183 = arith.constant 1 : index
    %c0_184 = arith.constant 0 : index
    %201 = vector.load %arg3[%c1_183, %c0_184] : memref<5x256xf32, #tpu.memory_space<vmem>>, vector<1x256xf32>
    %202 = vector.broadcast %201 : vector<1x256xf32> to vector<8x256xf32>
    %203 = arith.mulf %200, %202 : vector<8x256xf32>
    %204 = arith.addf %198, %203 : vector<8x256xf32>
    %c24_185 = arith.constant 24 : index
    %c0_186 = arith.constant 0 : index
    %205 = vector.load %arg14[%c24_185, %c0_186] : memref<160x256xf32, #tpu.memory_space<vmem>>, vector<8x256xf32>
    %c240_i32_187 = arith.constant 240 : i32
    %206 = tpu.dynamic_rotate %205 by %c240_i32_187 dim 1 : vector<8x256xf32>, i32 -> vector<8x256xf32>
    %c3_188 = arith.constant 3 : index
    %c0_189 = arith.constant 0 : index
    %207 = vector.load %arg3[%c3_188, %c0_189] : memref<5x256xf32, #tpu.memory_space<vmem>>, vector<1x256xf32>
    %208 = vector.broadcast %207 : vector<1x256xf32> to vector<8x256xf32>
    %209 = arith.mulf %206, %208 : vector<8x256xf32>
    %210 = arith.addf %204, %209 : vector<8x256xf32>
    %c32_190 = arith.constant 32 : index
    %c0_191 = arith.constant 0 : index
    %211 = vector.load %arg14[%c32_190, %c0_191] : memref<160x256xf32, #tpu.memory_space<vmem>>, vector<8x256xf32>
    %c224_i32_192 = arith.constant 224 : i32
    %212 = tpu.dynamic_rotate %211 by %c224_i32_192 dim 1 : vector<8x256xf32>, i32 -> vector<8x256xf32>
    %c4_193 = arith.constant 4 : index
    %c0_194 = arith.constant 0 : index
    %213 = vector.load %arg3[%c4_193, %c0_194] : memref<5x256xf32, #tpu.memory_space<vmem>>, vector<1x256xf32>
    %214 = vector.broadcast %213 : vector<1x256xf32> to vector<8x256xf32>
    %215 = arith.mulf %212, %214 : vector<8x256xf32>
    %216 = arith.addf %210, %215 : vector<8x256xf32>
    %c0_195 = arith.constant 0 : index
    %c0_196 = arith.constant 0 : index
    %217 = vector.load %arg11[%c0_195, %c0_196] : memref<8x1xf32, #tpu.memory_space<vmem>>, vector<8x1xf32>
    %218 = vector.broadcast %217 : vector<8x1xf32> to vector<8x256xf32>
    %219 = arith.addf %216, %218 : vector<8x256xf32>
    %220 = vector.extract_strided_slice %219 {offsets = [0, 0], sizes = [1, 256], strides = [1, 1]} : vector<8x256xf32> to vector<1x256xf32>
    %c0_197 = arith.constant 0 : index
    %c0_198 = arith.constant 0 : index
    %c0_199 = arith.constant 0 : index
    %221 = vector.load %arg12[%c0_197, %c0_198, %c0_199] : memref<1x1x256xf32, #tpu.memory_space<vmem>>, vector<1x1x256xf32>
    %222 = vector.shape_cast %221 : vector<1x1x256xf32> to vector<1x256xf32>
    %223 = vector.shape_cast %220 : vector<1x256xf32> to vector<1x1x256xf32>
    tpu.vector_store %arg12[%c0_197, %c0_198, %c0_199], %223 {strides = array<i32>} : memref<1x1x256xf32, #tpu.memory_space<vmem>>, vector<1x1x256xf32>,
    return
  }
  func.func @transform_0(%arg0: i32) -> (i32, i32, i32) {
    %c0_i32 = arith.constant 0 : i32
    %c0_i32_0 = arith.constant 0 : i32
    %c0_i32_1 = arith.constant 0 : i32
    return %arg0, %c0_i32, %c0_i32_0 : i32, i32, i32
  }
  func.func @transform_1(%arg0: i32) -> (i32, i32) {
    %c0_i32 = arith.constant 0 : i32
    %c0_i32_0 = arith.constant 0 : i32
    %c0_i32_1 = arith.constant 0 : i32
    return %c0_i32, %c0_i32_0 : i32, i32
  }
  func.func @transform_2(%arg0: i32) -> (i32, i32) {
    %c0_i32 = arith.constant 0 : i32
    %c0_i32_0 = arith.constant 0 : i32
    %c0_i32_1 = arith.constant 0 : i32
    return %c0_i32, %c0_i32_0 : i32, i32
  }
  func.func @transform_3(%arg0: i32) -> (i32, i32) {
    %c0_i32 = arith.constant 0 : i32
    %c0_i32_0 = arith.constant 0 : i32
    %c0_i32_1 = arith.constant 0 : i32
    return %c0_i32, %c0_i32_0 : i32, i32
  }
  func.func @transform_4(%arg0: i32) -> (i32, i32) {
    %c0_i32 = arith.constant 0 : i32
    %c0_i32_0 = arith.constant 0 : i32
    %c0_i32_1 = arith.constant 0 : i32
    return %c0_i32, %c0_i32_0 : i32, i32
  }
  func.func @transform_5(%arg0: i32) -> (i32, i32) {
    %c0_i32 = arith.constant 0 : i32
    %c0_i32_0 = arith.constant 0 : i32
    %c0_i32_1 = arith.constant 0 : i32
    return %c0_i32, %c0_i32_0 : i32, i32
  }
  func.func @transform_6(%arg0: i32) -> (i32, i32) {
    %c0_i32 = arith.constant 0 : i32
    %c0_i32_0 = arith.constant 0 : i32
    %c0_i32_1 = arith.constant 0 : i32
    return %c0_i32, %c0_i32_0 : i32, i32
  }
  func.func @transform_7(%arg0: i32) -> (i32, i32) {
    %c0_i32 = arith.constant 0 : i32
    %c0_i32_0 = arith.constant 0 : i32
    %c0_i32_1 = arith.constant 0 : i32
    return %c0_i32, %c0_i32_0 : i32, i32
  }
  func.func @transform_8(%arg0: i32) -> (i32, i32) {
    %c0_i32 = arith.constant 0 : i32
    %c0_i32_0 = arith.constant 0 : i32
    %c0_i32_1 = arith.constant 0 : i32
    return %c0_i32, %c0_i32_0 : i32, i32
  }
  func.func @transform_9(%arg0: i32) -> (i32, i32) {
    %c0_i32 = arith.constant 0 : i32
    %c0_i32_0 = arith.constant 0 : i32
    %c0_i32_1 = arith.constant 0 : i32
    return %c0_i32, %c0_i32_0 : i32, i32
  }
  func.func @transform_10(%arg0: i32) -> (i32, i32) {
    %c0_i32 = arith.constant 0 : i32
    %c0_i32_0 = arith.constant 0 : i32
    %c0_i32_1 = arith.constant 0 : i32
    return %c0_i32, %c0_i32_0 : i32, i32
  }
  func.func @transform_11(%arg0: i32) -> (i32, i32, i32) {
    %c0_i32 = arith.constant 0 : i32
    %c0_i32_0 = arith.constant 0 : i32
    %c0_i32_1 = arith.constant 0 : i32
    return %arg0, %c0_i32, %c0_i32_0 : i32, i32, i32
  }
}

</mosaic_0001>

<bundles_post_ra>
// kernel: cnn2_forward.1
= control target key start
LH: loop header
LB: loop body
LE: loop exit
PB: predicated region body
PF: predicated region fallthrough
CT: control target
= control target key end

     0   :  { %16 = vsyncpa [#allocation5], 0  ;;  %s4953_s0 = inlined_call_operand.vmem [shape: f32[2,8,256], index: 0, kind: input, shape index: {}]   ;;  %s4954_s1 = inlined_call_operand.vmem [shape: f32[5,256], index: 1, kind: input, shape index: {}]   ;;  %s4955_s2 = inlined_call_operand.vmem [shape: f32[5,256], index: 2, kind: input, shape index: {}]   ;;  %s4956_s3 = inlined_call_operand.vmem [shape: f32[80,40], index: 3, kind: input, shape index: {}]   ;;  %s4957_s4 = inlined_call_operand.vmem [shape: f32[16,1], index: 4, kind: input, shape index: {}]   ;;  %s4958_s5 = inlined_call_operand.hbm [shape: f32[160,80], index: 5, kind: input, shape index: {}]   ;;  %s4959_s6 = inlined_call_operand.vmem [shape: f32[32,1], index: 6, kind: input, shape index: {}]   ;;  %s4960_s7 = inlined_call_operand.vmem [shape: f32[160,160], index: 7, kind: input, shape index: {}]   ;;  %s4961_s8 = inlined_call_operand.vmem [shape: f32[32,1], index: 8, kind: input, shape index: {}]   ;;  %s4962_s9 = inlined_call_operand.hbm [shape: f32[40,160], index: 9, kind: input, shape index: {}]   ;;  %s4963_s10 = inlined_call_operand.vmem [shape: f32[8,1], index: 10, kind: input, shape index: {}]   ;;  %s4964_s11 = inlined_call_operand.vmem [shape: f32[2,1,256], index: 11, kind: output, shape index: {}]  }
   0x1   :  { %17 = vsyncpa [#allocation7], 0  ;;  %s3490_s17 = smov 0  }
   0x2 LB: > { %s3413_s18 = smov [#allocation4]   ;;  %s3496_s20 = sadd.s32 4294967295, %s3411_s17   ;;  %s3411_s17 = sphi %s3490_s17, %s23_s17  }
   0x3   : > { %s314_s19 = sshll.u32 %s3413_s18, 4  ;;  %p3095_p0 = scmp.ge.s32.totalorder %s3411_s17, 1  ;;  %s315_s19 = int_to_ptr.vmem [resolvable:$true] %s314_s19 }
   0x4   : > { %p290_p1 = scmp.lt.s32.totalorder %s3411_s17, 3  ;;  %p4965_p3 = scmp.eq.s32.totalorder %s3496_s20, 0 }
   0x5   : > { %s3414_s22 = smov [#allocation6]   ;;  %s3341_s27 = scalar_lea.hbm %s4958_s5, 2560 }
   0x6   : > { %p3500_p2 = pnand %p3095_p0, %p290_p1  ;;  %s336_s23 = sshll.u32 %s3414_s22, 4  ;;  %s3513_s23 = int_to_ptr.vmem [resolvable:$true] %s336_s23 }
   0x7   : > { %p3342_p6 = scmp.ne.s32.totalorder %s4958_s5, %s3341_s27  ;;  %p3348_p10 = scmp.lt.u32.totalorder %s3341_s27, %s4958_s5 }
   0x8   : > { %s4969_s21 = scalar_select %p3500_p2, 1, 0 }
   0x9   : > { %p3303_p4 = pneg %p3500_p2 }
   0xb   : > { %p3509_p5 = pnand %p4965_p3, %p3303_p4 }
   0xd   : > { %p3343_p7 = pneg %p3509_p5 }
   0xf   : > { %p3344_p8 = pnand %p3343_p7, %p3342_p6 }
  0x11   : > { %p3345_p9 = pneg %p3344_p8 }
  0x13   : > { %p3350_p11 = pnand %p3348_p10, %p3345_p9 }
  0x15   : > { %3353 = shalt.err (!%p3350_p11)
}
  0x16   : > { %s3354_s13 = scalar_lea.vmem %s315_s19, 2560  ;;  %p3362_p1 = scmp.lt.s32.totalorder %s315_s19, %s315_s19 }
  0x17   : > { %p3355_p12 = scmp.ne.s32.totalorder %s315_s19, %s3354_s13  ;;  %p3363_p4 = scmp.lt.s32.totalorder %s3354_s13, %s3354_s13 }
  0x19   : > { %p3357_p13 = pnand %p3355_p12, %p3343_p7  ;;  %p3364_p3 = por %p3363_p4, %p3362_p1 }
  0x1b   : > { %p3358_p0 = pneg %p3357_p13 }
  0x1d   : > { %p3365_p2 = pnand %p3364_p3, %p3358_p0 }
  0x1f   : > { %3368 = shalt.err (!%p3365_p2)
}
  0x20   : > { %s3415_s14 = smov 128   ;;  %s3416_s15 = smov 8  }
  0x21   : > { %3306 = dma.hbm_to_vmem [thread:$0]  (!%p3509_p5), %s4958_s5, 2560, %s315_s19, [#allocation5], %s3415_s14, %s3415_s14, %s3416_s15  }
  0x22   : > { %s3369_s26 = scalar_lea.hbm %s4962_s9, 1280 }
  0x23   : > { %p3370_p6 = scmp.ne.s32.totalorder %s4962_s9, %s3369_s26  ;;  %p3376_p8 = scmp.lt.u32.totalorder %s3369_s26, %s4962_s9 }
  0x25   : > { %p3372_p2 = pnand %p3370_p6, %p3343_p7 }
  0x27   : > { %p3373_p3 = pneg %p3372_p2 }
  0x29   : > { %p3378_p9 = pnand %p3376_p8, %p3373_p3 }
  0x2b   : > { %3381 = shalt.err (!%p3378_p9)
}
  0x2c   : > { %s3382_s19 = scalar_lea.vmem %s3513_s23, 1280  ;;  %p3390_p13 = scmp.lt.s32.totalorder %s3513_s23, %s3513_s23 }
  0x2d   : > { %p3383_p10 = scmp.ne.s32.totalorder %s3513_s23, %s3382_s19  ;;  %p3391_p0 = scmp.lt.s32.totalorder %s3382_s19, %s3382_s19 }
  0x2f   : > { %p3385_p11 = pnand %p3383_p10, %p3343_p7  ;;  %p3392_p1 = por %p3391_p0, %p3390_p13 }
  0x31   : > { %p3386_p12 = pneg %p3385_p11 }
  0x33   : > { %p3393_p4 = pnand %p3392_p1, %p3386_p12 }
  0x35   : > { %3396 = shalt.err (!%p3393_p4)
}
  0x36   : > { %s3417_s12 = smov 256   ;;  %s3418_s13 = smov 16  }
  0x37   : > { %3309 = dma.hbm_to_vmem [thread:$0]  (!%p3509_p5), %s4962_s9, 1280, %s3513_s23, [#allocation7], %s3417_s12, %s3417_s12, %s3418_s13  }
  0x38   : > { %p4971_p6 = scmp.ne.s32.totalorder %s4969_s21, 0 }
  0x39   : > { %p4972_p7 = scmp.eq.s32.totalorder (!%p4971_p6), %s3496_s20, 0 }
  0x3a   : > { %363 = sbr.rel (%p4971_p6) target bundleno = 2280 (0x8e8), region = 64 }
  0x41   : > { %3402 = dma.done.wait (%p4972_p7), [#allocation5], 2560   ;;  %p4973_p2 = pmov %p4972_p7 }
  0x43   : > { %3404 = vsyncadd (%p4973_p2), [#allocation5], 4294964736  ;;  %p4974_p3 = pmov %p4973_p2 }
  0x44   : > { %p4975_p8 = pmov %p4973_p2 }
  0x45   : > { %3406 = dma.done.wait (%p4974_p3), [#allocation7], 1280  }
  0x46   : > { %3408 = vsyncadd (%p4975_p8), [#allocation7], 4294966016  ;;  %p406_p9 = scmp.lt.s32.totalorder %s3496_s20, 1  ;;  %s3419_s18 = smov 1   ;;  %v3421_v2 = vmov 0.0   ;;  %v867_v3 = vld [vmem:[%s4957_s4] sm:$0xff]  ;;  %v421_v6 = vlaneseq }
  0x47   : > { %s3420_s22 = smov 2   ;;  %631 = vmatprep.mubr.f32.mxu0 %v3421_v2  ;;  %1184 = vmatprep.mubr.f32.mxu1 %v3421_v2  ;;  %s3422_s25 = smov 127   ;;  %v868_v4 = vld [vmem:[%s4957_s4 + $0x8] sm:$0xff]  ;;  %v3424_v5 = vmov 0   ;;  %v516_v51 = vld [vmem:[%s4956_s3] sm:$0xff]  ;;  %vm536_vm4 = vcmask 326656  }
  0x48   : > { %s4978_s20 = smov (!%p406_p9, %s3496_s20), 1  ;;  %s4967_s26 = smov 126   ;;  %3339 = vset.pattern.permute.xlu0 %v3424_v5  ;;  %3340 = vset.pattern.permute.xlu1 %v3424_v5  ;;  %v3609_v7 = vshrl.u32 %v421_v6, 7  ;;  %v3612_v8 = vand.u32 127, %v421_v6  ;;  %v517_v52 = vld [vmem:[%s4956_s3 + $0x8] sm:$0xff]  ;;  %v518_v53 = vld [vmem:[%s4956_s3 + $0x10] sm:$0xff] }
  0x49   : > { %s3186_s21 = sshll.u32 %s4978_s20, 4  ;;  %v426_v11 = vld [vmem:[%s4954_s1] ss:$8 sm:$0x3]  ;;  %v519_v54 = vld [vmem:[%s4956_s3 + $0x18] sm:$0xff]  ;;  %v522_v57 = vld [vmem:[%s4956_s3 + $0x30] sm:$0xff] }
  0x4a   : > { %s410_s16 = scalar_lea.vmem %s4953_s0, %s3186_s21  ;;  %v3615_v9 = vsub.s32 0, %v3609_v7  ;;  %v3618_v10 = vsub.s32 1, %v3609_v7  ;;  %v3105_v12 = vld [vmem:[%s4954_s1 + $0x1] ss:$8 sm:$0x3]  ;;  %vm446_vm0 = vcmp.lt.s32.totalorder %v3612_v8, 1 }
  0x4b   : > { %v3580_v0 = vld [vmem:[%s410_s16] sm:$0xff]  ;;  %v3586_v1 = vld [vmem:[%s410_s16 + $0x8] sm:$0xff]  ;;  %vm423_vm1 = vcmp.lt.s32.totalorder %v3612_v8, 2  ;;  %vm472_vm2 = vcmp.lt.s32.totalorder %v3612_v8, 127  ;;  %vm496_vm3 = vcmp.lt.s32.totalorder %v3612_v8, 126  ;;  %v523_v58 = vld [vmem:[%s4956_s3 + $0x38] sm:$0xff] }
  0x4c   : > { %442 = vrot.lane.b32.xlu1 %v3580_v0, %s3419_s18  ;;  %417 = vrot.lane.b32.xlu0 %v3580_v0, %s3420_s22  ;;  %v3106_v15 = vld [vmem:[%s4954_s1 + $0x3] ss:$8 sm:$0x3]  ;;  %v435_v16 = vrot.slane %v426_v11, %v3618_v10  ;;  %v459_v17 = vrot.slane %v3105_v12, %v3618_v10  ;;  %v431_v18 = vrot.slane %v426_v11, %v3615_v9  ;;  %v3107_v32 = vld [vmem:[%s4954_s1 + $0x4] ss:$8 sm:$0x3] }
  0x4d   : > { %v455_v19 = vrot.slane %v3105_v12, %v3615_v9  ;;  %v481_v22 = vrot.slane %v3106_v15, %v3615_v9  ;;  %v485_v23 = vrot.slane %v3106_v15, %v3618_v10  ;;  %v509_v41 = vrot.slane %v3107_v32, %v3618_v10  ;;  %v520_v55 = vld [vmem:[%s4956_s3 + $0x20] sm:$0xff]  ;;  %v521_v56 = vld [vmem:[%s4956_s3 + $0x28] sm:$0xff]  ;;  %s3425_s13 = smov 32   ;;  %s3426_s14 = smov 16  }
  0x4e   : > { %v505_v42 = vrot.slane %v3107_v32, %v3615_v9  ;;  %v524_v59 = vld [vmem:[%s4956_s3 + $0x40] sm:$0xff]  ;;  %v525_v60 = vld [vmem:[%s4956_s3 + $0x48] sm:$0xff]  ;;  %s3427_s15 = smov 112   ;;  %s3428_s21 = smov 96   ;;  %vm728_vm5 = vcmp.lt.s32.totalorder %v3612_v8, 32  ;;  %vm765_vm6 = vcmp.lt.s32.totalorder %v3612_v8, 16 }
  0x4f   : > { %v733_v32 = vld [vmem:[%s4955_s2] ss:$8 sm:$0x3]  ;;  %vm803_vm7 = vcmp.lt.s32.totalorder %v3612_v8, 112  ;;  %vm841_vm8 = vcmp.lt.s32.totalorder %v3612_v8, 96  ;;  %vm1059_vm9 = vcmask 654336  }
  0x50   : > { %444 = vrot.lane.b32.xlu1 %v3586_v1, %s3419_s18  ;;  %419 = vrot.lane.b32.xlu0 %v3586_v1, %s3420_s22  ;;  %s4976_s16 = smov 126   ;;  %vm1929_vm10 = vcmask 261120   ;;  %vm3015_vm11 = vcmp.lt.s32.totalorder %v421_v6, 256 }
  0x54   : > { %470 = vrot.lane.b32.xlu1 %v3586_v1, %s3422_s25  ;;  %468 = vrot.lane.b32.xlu0 %v3580_v0, %s3422_s25 }
  0x58   : > { %494 = vrot.lane.b32.xlu1 %v3586_v1, %s4967_s26  ;;  %492 = vrot.lane.b32.xlu0 %v3580_v0, %s4967_s26 }
  0x5c   : > { %871 = vperm.xlu0 %3339, %v867_v3   ;;  %876 = vperm.xlu1 %3340, %v868_v4  }
  0xbe   : > { %v443_v13 = vpop.permute.xlu1 %442  ;;  %v418_v14 = vpop.permute.xlu0 %417 }
  0xc2   : > { %v445_v20 = vpop.permute.xlu1 %444  ;;  %v420_v21 = vpop.permute.xlu0 %419 }
  0xc3   : > { %v448_v24 = vsel %vm446_vm0, %v445_v20, %v443_v13  ;;  %v425_v25 = vsel %vm423_vm1, %v420_v21, %v418_v14  ;;  %v424_v26 = vsel %vm423_vm1, %v418_v14, %v420_v21  ;;  %v447_v27 = vsel %vm446_vm0, %v443_v13, %v445_v20 }
  0xc4   : > { %v439_v28 = vmul.f32 %v435_v16, %v424_v26  ;;  %v463_v29 = vmul.f32 %v459_v17, %v447_v27  ;;  %v438_v30 = vmul.f32 %v431_v18, %v425_v25  ;;  %v462_v31 = vmul.f32 %v455_v19, %v448_v24 }
  0xc6   : > { %v471_v33 = vpop.permute.xlu1 %470  ;;  %v469_v34 = vpop.permute.xlu0 %468  ;;  %v3187_v35 = vpack.c.bf16 %v463_v29, %v439_v28  ;;  %v3189_v36 = vpack.c.bf16 %v462_v31, %v438_v30 }
  0xc7   : > { %v473_v37 = vsel %vm472_vm2, %v469_v34, %v471_v33  ;;  %v474_v38 = vsel %vm472_vm2, %v471_v33, %v469_v34 }
  0xc8   : > { %v488_v39 = vmul.f32 %v481_v22, %v473_v37  ;;  %v489_v40 = vmul.f32 %v485_v23, %v474_v38  ;;  %3188 = vmatprep.subr.bf16.mxu0 %v3187_v35  ;;  %v738_v35 = vrot.slane %v733_v32, %v3615_v9  ;;  %v3118_v37 = vld [vmem:[%s4955_s2 + $0x1] ss:$8 sm:$0x3] }
  0xc9   : > { %3190 = vmatpush1.bf16.msra.mxu0 %v3189_v36  ;;  %v742_v36 = vrot.slane %v733_v32, %v3618_v10 }
  0xca   : > { %v495_v43 = vpop.permute.xlu1 %494  ;;  %v3191_v44 = vpack.c.bf16 %v489_v40, %v3586_v1  ;;  %v493_v45 = vpop.permute.xlu0 %492  ;;  %v3193_v46 = vpack.c.bf16 %v488_v39, %v3580_v0 }
  0xcb   : > { %v497_v47 = vsel %vm496_vm3, %v493_v45, %v495_v43  ;;  %v498_v48 = vsel %vm496_vm3, %v495_v43, %v493_v45  ;;  %v776_v43 = vrot.slane %v3118_v37, %v3615_v9  ;;  %v3119_v45 = vld [vmem:[%s4955_s2 + $0x3] ss:$8 sm:$0x3] }
  0xcc   : > { %3192 = vmatprep.subr.bf16.mxu0 %v3191_v44  ;;  %v513_v49 = vmul.f32 %v509_v41, %v498_v48  ;;  %v512_v50 = vmul.f32 %v505_v42, %v497_v47  ;;  %v780_v44 = vrot.slane %v3118_v37, %v3618_v10 }
  0xcd   : > { %3194 = vmatpush1.bf16.msra.mxu0 %v3193_v46 }
  0xce   : > { %575 = vmatprep.subr.mxu0 %v513_v49 }
  0xd1   : > { %576 = vmatpush1.msra.mxu0 %v512_v50 }
  0xd2   : > { %3108 = vmatmul.mubr.msk.f32.vlgmr.msra.gmra.mrb[0].mxu0 %vm536_vm4, %v516_v51 }
  0xd3   : > { %637 = vmatprep.mubr.f32.mxu0 %v3421_v2 }
  0xd6   : > { %3109 = vmatmul.mubr.msk.f32.gmra.mrb[2].mxu0 %vm536_vm4, %v517_v52 }
  0xd7   : > { %643 = vmatprep.mubr.f32.mxu0 %v3421_v2 }
  0xda   : > { %3110 = vmatmul.mubr.msk.f32.gmra.mrb[4].mxu0 %vm536_vm4, %v518_v53 }
  0xdb   : > { %649 = vmatprep.mubr.f32.mxu0 %v3421_v2  ;;  %v3735_v23 = vpop.permute.xlu0 %871  ;;  %v3737_v24 = vpop.permute.xlu1 %876 }
  0xde   : > { %3111 = vmatmul.mubr.msk.f32.gmra.mrb[6].mxu0 %vm536_vm4, %v519_v54 }
  0xdf   : > { %655 = vmatprep.mubr.f32.mxu0 %v3421_v2 }
  0xe2   : > { %3112 = vmatmul.mubr.msk.f32.gmra.mrb[8].mxu0 %vm536_vm4, %v520_v55  ;;  %v814_v55 = vrot.slane %v3119_v45, %v3615_v9 }
  0xe3   : > { %661 = vmatprep.mubr.f32.mxu0 %v3421_v2 }
  0xe6   : > { %3113 = vmatmul.mubr.msk.f32.gmra.mrb[10].mxu0 %vm536_vm4, %v521_v56  ;;  %v818_v56 = vrot.slane %v3119_v45, %v3618_v10 }
  0xe7   : > { %667 = vmatprep.mubr.f32.mxu0 %v3421_v2 }
  0xea   : > { %3114 = vmatmul.mubr.msk.f32.gmra.mrb[12].mxu0 %vm536_vm4, %v522_v57 }
  0xeb   : > { %673 = vmatprep.mubr.f32.mxu0 %v3421_v2 }
  0xee   : > { %3115 = vmatmul.mubr.msk.f32.gmra.mrb[14].mxu0 %vm536_vm4, %v523_v58 }
  0xef   : > { %679 = vmatprep.mubr.f32.mxu0 %v3421_v2 }
  0xf2   : > { %3116 = vmatmul.mubr.msk.f32.gmra.mrb[16].mxu0 %vm536_vm4, %v524_v59 }
  0xf3   : > { %685 = vmatprep.mubr.f32.mxu0 %v3421_v2 }
  0xf6   : > { %3117 = vmatmul.mubr.msk.f32.gmra.mrb[18].mxu0 %vm536_vm4, %v525_v60 }
 0x1a5   : > { %v633_v61 = vpop.f32.mrb[0].mxu0 }
 0x1a6   : > { %720 = vrot.lane.b32.xlu0 %v633_v61, %s3425_s13  ;;  %v635_v62 = vpop.f32.mrb[1].mxu0 }
 0x1a9   : > { %v639_v63 = vpop.f32.mrb[2].mxu0 }
 0x1aa   : > { %724 = vrot.lane.b32.xlu0 %v635_v62, %s3425_s13  ;;  %722 = vrot.lane.b32.xlu1 %v639_v63, %s3425_s13  ;;  %v641_v0 = vpop.f32.mrb[3].mxu0 }
 0x1ad   : > { %v645_v1 = vpop.f32.mrb[4].mxu0 }
 0x1ae   : > { %726 = vrot.lane.b32.xlu1 %v641_v0, %s3425_s13  ;;  %757 = vrot.lane.b32.xlu0 %v645_v1, %s3426_s14  ;;  %v647_v3 = vpop.f32.mrb[5].mxu0 }
 0x1b1   : > { %v651_v4 = vpop.f32.mrb[6].mxu0 }
 0x1b2   : > { %761 = vrot.lane.b32.xlu0 %v647_v3, %s3426_s14  ;;  %759 = vrot.lane.b32.xlu1 %v651_v4, %s3426_s14  ;;  %v653_v5 = vpop.f32.mrb[7].mxu0  ;;  %v3120_v3 = vld [vmem:[%s4955_s2 + $0x4] ss:$8 sm:$0x3] }
 0x1b5   : > { %v3718_v11 = vpop.f32.mrb[8].mxu0 }
 0x1b6   : > { %763 = vrot.lane.b32.xlu1 %v653_v5, %s3426_s14  ;;  %v3721_v12 = vpop.f32.mrb[9].mxu0 }
 0x1b9   : > { %v3723_v13 = vpop.f32.mrb[10].mxu0 }
 0x1ba   : > { %v3725_v14 = vpop.f32.mrb[11].mxu0 }
 0x1bd   : > { %v669_v15 = vpop.f32.mrb[12].mxu0 }
 0x1be   : > { %795 = vrot.lane.b32.xlu0 %v669_v15, %s3427_s15  ;;  %v671_v16 = vpop.f32.mrb[13].mxu0 }
 0x1c1   : > { %v675_v17 = vpop.f32.mrb[14].mxu0 }
 0x1c2   : > { %799 = vrot.lane.b32.xlu0 %v671_v16, %s3427_s15  ;;  %797 = vrot.lane.b32.xlu1 %v675_v17, %s3427_s15  ;;  %v677_v18 = vpop.f32.mrb[15].mxu0 }
 0x1c5   : > { %v681_v19 = vpop.f32.mrb[16].mxu0 }
 0x1c6   : > { %801 = vrot.lane.b32.xlu1 %v677_v18, %s3427_s15  ;;  %v683_v20 = vpop.f32.mrb[17].mxu0 }
 0x1c9   : > { %v687_v21 = vpop.f32.mrb[18].mxu0 }
 0x1ca   : > { %833 = vrot.lane.b32.xlu1 %v681_v19, %s3428_s21  ;;  %835 = vrot.lane.b32.xlu0 %v687_v21, %s3428_s21  ;;  %v689_v22 = vpop.f32.mrb[19].mxu0 }
 0x1ce   : > { %837 = vrot.lane.b32.xlu1 %v683_v20, %s3428_s21  ;;  %839 = vrot.lane.b32.xlu0 %v689_v22, %s3428_s21 }
 0x218   : > { %v721_v25 = vpop.permute.xlu0 %720 }
 0x21c   : > { %v723_v26 = vpop.permute.xlu1 %722  ;;  %v725_v27 = vpop.permute.xlu0 %724 }
 0x21d   : > { %v729_v38 = vsel %vm728_vm5, %v721_v25, %v725_v27  ;;  %v731_v39 = vsel %vm728_vm5, %v725_v27, %v721_v25  ;;  %v852_v25 = vrot.slane %v3120_v3, %v3615_v9 }
 0x21e   : > { %v745_v46 = vmul.f32 %v738_v35, %v731_v39  ;;  %v746_v47 = vmul.f32 %v742_v36, %v729_v38 }
 0x220   : > { %v727_v28 = vpop.permute.xlu1 %726  ;;  %v758_v29 = vpop.permute.xlu0 %757  ;;  %v749_v4 = vadd.f32 %v745_v46, %v3718_v11  ;;  %v750_v5 = vadd.f32 %v746_v47, %v3721_v12 }
 0x221   : > { %v730_v40 = vsel %vm728_vm5, %v723_v26, %v727_v28  ;;  %v732_v41 = vsel %vm728_vm5, %v727_v28, %v723_v26  ;;  %v856_v26 = vrot.slane %v3120_v3, %v3618_v10 }
 0x222   : > { %v747_v48 = vmul.f32 %v738_v35, %v732_v41  ;;  %v748_v49 = vmul.f32 %v742_v36, %v730_v40 }
 0x224   : > { %v760_v30 = vpop.permute.xlu1 %759  ;;  %v762_v31 = vpop.permute.xlu0 %761  ;;  %v751_v15 = vadd.f32 %v747_v48, %v3723_v13  ;;  %v752_v16 = vadd.f32 %v748_v49, %v3725_v14 }
 0x225   : > { %v766_v51 = vsel %vm765_vm6, %v758_v29, %v762_v31  ;;  %v768_v52 = vsel %vm765_vm6, %v762_v31, %v758_v29 }
 0x226   : > { %v783_v62 = vmul.f32 %v776_v43, %v768_v52  ;;  %v784_v63 = vmul.f32 %v780_v44, %v766_v51 }
 0x228   : > { %v764_v33 = vpop.permute.xlu1 %763  ;;  %v787_v27 = vadd.f32 %v783_v62, %v749_v4  ;;  %v788_v11 = vadd.f32 %v784_v63, %v750_v5 }
 0x229   : > { %v767_v53 = vsel %vm765_vm6, %v760_v30, %v764_v33  ;;  %v769_v54 = vsel %vm765_vm6, %v764_v33, %v760_v30 }
 0x22a   : > { %v785_v0 = vmul.f32 %v776_v43, %v769_v54  ;;  %v786_v1 = vmul.f32 %v780_v44, %v767_v53  ;;  %v1593_v53 = vld [vmem:[%s4959_s6] sm:$0xff]  ;;  %v1594_v54 = vld [vmem:[%s4959_s6 + $0x8] sm:$0xff] }
 0x22c   : > { %v789_v28 = vadd.f32 %v785_v0, %v751_v15  ;;  %v790_v12 = vadd.f32 %v786_v1, %v752_v16 }
 0x230   : > { %v796_v34 = vpop.permute.xlu0 %795 }
 0x234   : > { %v798_v42 = vpop.permute.xlu1 %797  ;;  %v800_v50 = vpop.permute.xlu0 %799 }
 0x235   : > { %v804_v58 = vsel %vm803_vm7, %v796_v34, %v800_v50  ;;  %v806_v59 = vsel %vm803_vm7, %v800_v50, %v796_v34 }
 0x236   : > { %v821_v17 = vmul.f32 %v814_v55, %v804_v58  ;;  %v822_v18 = vmul.f32 %v818_v56, %v806_v59 }
 0x238   : > { %v802_v57 = vpop.permute.xlu1 %801  ;;  %v825_v29 = vadd.f32 %v821_v17, %v787_v27  ;;  %v826_v13 = vadd.f32 %v822_v18, %v788_v11  ;;  %v3121_v18 = vld [vmem:[%s4954_s1 + $0x1] ss:$8 sm:$0x3] }
 0x239   : > { %v805_v60 = vsel %vm803_vm7, %v798_v42, %v802_v57  ;;  %v807_v61 = vsel %vm803_vm7, %v802_v57, %v798_v42  ;;  %v899_v57 = vld [vmem:[%s4954_s1] ss:$8 sm:$0x3] }
 0x23a   : > { %v823_v19 = vmul.f32 %v814_v55, %v805_v60  ;;  %v824_v20 = vmul.f32 %v818_v56, %v807_v61  ;;  %v1595_v55 = vld [vmem:[%s4959_s6 + $0x10] sm:$0xff]  ;;  %v1596_v56 = vld [vmem:[%s4959_s6 + $0x18] sm:$0xff]  ;;  %v908_v60 = vrot.slane %v899_v57, %v3618_v10  ;;  %v904_v61 = vrot.slane %v899_v57, %v3615_v9 }
 0x23c   : > { %v834_v21 = vpop.permute.xlu1 %833  ;;  %v836_v22 = vpop.permute.xlu0 %835  ;;  %v827_v30 = vadd.f32 %v823_v19, %v789_v28  ;;  %v828_v14 = vadd.f32 %v824_v20, %v790_v12 }
 0x240   : > { %v838_v31 = vpop.permute.xlu1 %837  ;;  %v840_v32 = vpop.permute.xlu0 %839 }
 0x241   : > { %v842_v33 = vsel %vm841_vm8, %v834_v21, %v838_v31  ;;  %v844_v34 = vsel %vm841_vm8, %v838_v31, %v834_v21  ;;  %v843_v35 = vsel %vm841_vm8, %v836_v22, %v840_v32  ;;  %v845_v36 = vsel %vm841_vm8, %v840_v32, %v836_v22 }
 0x242   : > { %v859_v37 = vmul.f32 %v852_v25, %v842_v33  ;;  %v860_v38 = vmul.f32 %v856_v26, %v844_v34  ;;  %v861_v39 = vmul.f32 %v852_v25, %v843_v35  ;;  %v862_v40 = vmul.f32 %v856_v26, %v845_v36  ;;  %v3122_v33 = vld [vmem:[%s4954_s1 + $0x3] ss:$8 sm:$0x3] }
 0x243   : > { %v936_v25 = vrot.slane %v3121_v18, %v3615_v9  ;;  %v940_v26 = vrot.slane %v3121_v18, %v3618_v10  ;;  %v1024_v18 = vld [vmem:[#allocation4 + $0x28] sm:$0xff] }
 0x244   : > { %v863_v41 = vadd.f32 %v859_v37, %v825_v29  ;;  %v864_v42 = vadd.f32 %v860_v38, %v826_v13  ;;  %v865_v43 = vadd.f32 %v861_v39, %v827_v30  ;;  %v866_v44 = vadd.f32 %v862_v40, %v828_v14 }
 0x245   : > { %v972_v38 = vrot.slane %v3122_v33, %v3615_v9  ;;  %v976_v39 = vrot.slane %v3122_v33, %v3618_v10 }
 0x246   : > { %v879_v45 = vadd.f32 %v3735_v23, %v863_v41  ;;  %v880_v46 = vadd.f32 %v3735_v23, %v864_v42  ;;  %v881_v47 = vadd.f32 %v3737_v24, %v865_v43  ;;  %v882_v48 = vadd.f32 %v3737_v24, %v866_v44 }
 0x248   : > { %v3803_v49 = vmax.f32 %v879_v45, 0.0  ;;  %v3805_v50 = vmax.f32 %v880_v46, 0.0  ;;  %v3807_v51 = vmax.f32 %v881_v47, 0.0  ;;  %v3809_v52 = vmax.f32 %v882_v48, 0.0 }
 0x24a   : > { %887 = vrot.lane.b32.xlu1 %v3803_v49, %s3420_s22  ;;  %889 = vrot.lane.b32.xlu0 %v3807_v51, %s3420_s22  ;;  %v3203_v23 = vpack.c.bf16 %v3809_v52, %v3805_v50  ;;  %v3205_v24 = vpack.c.bf16 %v3807_v51, %v3803_v49 }
 0x24e   : > { %891 = vrot.lane.b32.xlu1 %v3805_v50, %s3420_s22  ;;  %893 = vrot.lane.b32.xlu0 %v3809_v52, %s3420_s22 }
 0x252   : > { %919 = vrot.lane.b32.xlu1 %v3803_v49, %s3419_s18  ;;  %921 = vrot.lane.b32.xlu0 %v3807_v51, %s3419_s18 }
 0x256   : > { %923 = vrot.lane.b32.xlu1 %v3805_v50, %s3419_s18  ;;  %925 = vrot.lane.b32.xlu0 %v3809_v52, %s3419_s18 }
 0x25a   : > { %955 = vrot.lane.b32.xlu1 %v3803_v49, %s3422_s25  ;;  %957 = vrot.lane.b32.xlu0 %v3807_v51, %s3422_s25 }
 0x25e   : > { %959 = vrot.lane.b32.xlu1 %v3805_v50, %s3422_s25  ;;  %961 = vrot.lane.b32.xlu0 %v3809_v52, %s3422_s25 }
 0x262   : > { %987 = vrot.lane.b32.xlu1 %v3803_v49, %s4967_s26  ;;  %989 = vrot.lane.b32.xlu0 %v3807_v51, %s4967_s26 }
 0x266   : > { %991 = vrot.lane.b32.xlu1 %v3805_v50, %s4967_s26  ;;  %993 = vrot.lane.b32.xlu0 %v3809_v52, %s4967_s26  ;;  %v3123_v50 = vld [vmem:[%s4954_s1 + $0x4] ss:$8 sm:$0x3] }
 0x267   : > { %v1008_v57 = vrot.slane %v3123_v50, %v3618_v10 }
 0x26a   : > { %1599 = vperm.xlu1 %3340, %v1593_v53   ;;  %1604 = vperm.xlu0 %3339, %v1594_v54  }
 0x26e   : > { %1609 = vperm.xlu1 %3340, %v1595_v55   ;;  %1614 = vperm.xlu0 %3339, %v1596_v56   ;;  %v1004_v56 = vrot.slane %v3123_v50, %v3615_v9 }
 0x2bc   : > { %v888_v58 = vpop.permute.xlu1 %887  ;;  %v890_v59 = vpop.permute.xlu0 %889 }
 0x2c0   : > { %v892_v62 = vpop.permute.xlu1 %891  ;;  %v894_v63 = vpop.permute.xlu0 %893 }
 0x2c1   : > { %v897_v0 = vsel %vm423_vm1, %v892_v62, %v888_v58  ;;  %v898_v1 = vsel %vm423_vm1, %v894_v63, %v890_v59  ;;  %v895_v3 = vsel %vm423_vm1, %v888_v58, %v892_v62  ;;  %v896_v4 = vsel %vm423_vm1, %v890_v59, %v894_v63 }
 0x2c2   : > { %v912_v5 = vmul.f32 %v908_v60, %v895_v3  ;;  %v914_v15 = vmul.f32 %v908_v60, %v896_v4  ;;  %v911_v16 = vmul.f32 %v904_v61, %v897_v0  ;;  %v913_v17 = vmul.f32 %v904_v61, %v898_v1  ;;  %v1019_v4 = vld [vmem:[#allocation4] sm:$0xff] }
 0x2c4   : > { %v920_v19 = vpop.permute.xlu1 %919  ;;  %v922_v20 = vpop.permute.xlu0 %921  ;;  %v3195_v21 = vpack.c.bf16 %v914_v15, %v912_v5  ;;  %v3197_v22 = vpack.c.bf16 %v913_v17, %v911_v16  ;;  %v1020_v5 = vld [vmem:[#allocation4 + $0x8] sm:$0xff]  ;;  %v1021_v15 = vld [vmem:[#allocation4 + $0x10] sm:$0xff]  ;;  %v1022_v16 = vld [vmem:[#allocation4 + $0x18] sm:$0xff] }
 0x2c5   : > { %v1023_v17 = vld [vmem:[#allocation4 + $0x20] sm:$0xff] }
 0x2c6   : > { %3196 = vmatprep.subr.bf16.mxu1 %v3195_v21  ;;  %v1027_v21 = vld [vmem:[#allocation4 + $0x40] sm:$0xff] }
 0x2c7   : > { %3198 = vmatpush1.bf16.msra.mxu1 %v3197_v22  ;;  %v1028_v22 = vld [vmem:[#allocation4 + $0x48] sm:$0xff] }
 0x2c8   : > { %v924_v27 = vpop.permute.xlu1 %923  ;;  %v926_v11 = vpop.permute.xlu0 %925 }
 0x2c9   : > { %v927_v28 = vsel %vm446_vm0, %v920_v19, %v924_v27  ;;  %v929_v12 = vsel %vm446_vm0, %v924_v27, %v920_v19  ;;  %v928_v29 = vsel %vm446_vm0, %v922_v20, %v926_v11  ;;  %v930_v13 = vsel %vm446_vm0, %v926_v11, %v922_v20  ;;  %v1025_v19 = vld [vmem:[#allocation4 + $0x30] sm:$0xff]  ;;  %v1026_v20 = vld [vmem:[#allocation4 + $0x38] sm:$0xff]  ;;  %v1031_v27 = vld [vmem:[#allocation4 + $0x60] sm:$0xff] }
 0x2ca   : > { %v943_v30 = vmul.f32 %v936_v25, %v929_v12  ;;  %v944_v14 = vmul.f32 %v940_v26, %v927_v28  ;;  %v945_v31 = vmul.f32 %v936_v25, %v930_v13  ;;  %v946_v32 = vmul.f32 %v940_v26, %v928_v29  ;;  %v1029_v25 = vld [vmem:[#allocation4 + $0x50] sm:$0xff]  ;;  %v1030_v26 = vld [vmem:[#allocation4 + $0x58] sm:$0xff]  ;;  %v1032_v11 = vld [vmem:[#allocation4 + $0x68] sm:$0xff] }
 0x2cb   : > { %v1033_v28 = vld [vmem:[#allocation4 + $0x70] sm:$0xff]  ;;  %v1034_v12 = vld [vmem:[#allocation4 + $0x78] sm:$0xff]  ;;  %v1035_v29 = vld [vmem:[#allocation4 + $0x80] sm:$0xff] }
 0x2cc   : > { %v956_v34 = vpop.permute.xlu1 %955  ;;  %v958_v35 = vpop.permute.xlu0 %957  ;;  %v3199_v36 = vpack.c.bf16 %v946_v32, %v944_v14  ;;  %v3201_v37 = vpack.c.bf16 %v945_v31, %v943_v30  ;;  %v1036_v13 = vld [vmem:[#allocation4 + $0x88] sm:$0xff]  ;;  %v1037_v30 = vld [vmem:[#allocation4 + $0x90] sm:$0xff]  ;;  %v1038_v14 = vld [vmem:[#allocation4 + $0x98] sm:$0xff] }
 0x2ce   : > { %3200 = vmatprep.subr.bf16.mxu1 %v3199_v36 }
 0x2cf   : > { %3202 = vmatpush1.bf16.msra.mxu1 %v3201_v37 }
 0x2d0   : > { %v960_v40 = vpop.permute.xlu1 %959  ;;  %3204 = vmatprep.subr.bf16.mxu1 %v3203_v23  ;;  %v962_v41 = vpop.permute.xlu0 %961 }
 0x2d1   : > { %v963_v42 = vsel %vm472_vm2, %v956_v34, %v960_v40  ;;  %v965_v43 = vsel %vm472_vm2, %v960_v40, %v956_v34  ;;  %v964_v44 = vsel %vm472_vm2, %v958_v35, %v962_v41  ;;  %v966_v45 = vsel %vm472_vm2, %v962_v41, %v958_v35 }
 0x2d2   : > { %v979_v46 = vmul.f32 %v972_v38, %v963_v42  ;;  %v980_v47 = vmul.f32 %v976_v39, %v965_v43  ;;  %v981_v48 = vmul.f32 %v972_v38, %v964_v44  ;;  %v982_v53 = vmul.f32 %v976_v39, %v966_v45 }
 0x2d3   : > { %3206 = vmatpush1.bf16.msra.mxu1 %v3205_v24 }
 0x2d4   : > { %v988_v52 = vpop.permute.xlu1 %987  ;;  %v990_v23 = vpop.permute.xlu0 %989  ;;  %v3207_v54 = vpack.c.bf16 %v982_v53, %v980_v47  ;;  %v3209_v55 = vpack.c.bf16 %v981_v48, %v979_v46 }
 0x2d6   : > { %3208 = vmatprep.subr.bf16.mxu1 %v3207_v54 }
 0x2d7   : > { %3210 = vmatpush1.bf16.msra.mxu1 %v3209_v55 }
 0x2d8   : > { %v992_v58 = vpop.permute.xlu1 %991  ;;  %v994_v59 = vpop.permute.xlu0 %993 }
 0x2d9   : > { %v995_v49 = vsel %vm496_vm3, %v988_v52, %v992_v58  ;;  %v997_v51 = vsel %vm496_vm3, %v992_v58, %v988_v52  ;;  %v996_v24 = vsel %vm496_vm3, %v990_v23, %v994_v59  ;;  %v998_v60 = vsel %vm496_vm3, %v994_v59, %v990_v23 }
 0x2da   : > { %v1011_v61 = vmul.f32 %v1004_v56, %v995_v49  ;;  %v1012_v62 = vmul.f32 %v1008_v57, %v997_v51  ;;  %v1013_v63 = vmul.f32 %v1004_v56, %v996_v24  ;;  %v1014_v0 = vmul.f32 %v1008_v57, %v998_v60 }
 0x2dc   : > { %v3211_v1 = vpack.c.bf16 %v1014_v0, %v1012_v62  ;;  %v3213_v3 = vpack.c.bf16 %v1013_v63, %v1011_v61 }
 0x2de   : > { %3212 = vmatprep.subr.bf16.mxu1 %v3211_v1 }
 0x2df   : > { %3214 = vmatpush1.bf16.msra.mxu1 %v3213_v3 }
 0x2e2   : > { %3124 = vmatmul.mubr.msk.f32.vlgmr.msra.gmra.mrb[0].mxu1 %vm1059_vm9, %v1019_v4 }
 0x2e3   : > { %1190 = vmatprep.mubr.f32.mxu1 %v3421_v2 }
 0x2e6   : > { %3125 = vmatmul.mubr.msk.f32.gmra.mrb[2].mxu1 %vm1059_vm9, %v1020_v5 }
 0x2e7   : > { %1196 = vmatprep.mubr.f32.mxu1 %v3421_v2 }
 0x2e9   : > { %v4004_v5 = vpop.permute.xlu1 %1599 }
 0x2ea   : > { %3126 = vmatmul.mubr.msk.f32.gmra.mrb[4].mxu1 %vm1059_vm9, %v1021_v15  ;;  %v4006_v15 = vpop.permute.xlu0 %1604 }
 0x2eb   : > { %1202 = vmatprep.mubr.f32.mxu1 %v3421_v2 }
 0x2ee   : > { %3127 = vmatmul.mubr.msk.f32.gmra.mrb[6].mxu1 %vm1059_vm9, %v1022_v16  ;;  %v4008_v16 = vpop.permute.xlu1 %1609 }
 0x2ef   : > { %1208 = vmatprep.mubr.f32.mxu1 %v3421_v2 }
 0x2f2   : > { %3128 = vmatmul.mubr.msk.f32.gmra.mrb[8].mxu1 %vm1059_vm9, %v1023_v17  ;;  %v4010_v17 = vpop.permute.xlu0 %1614 }
 0x2f3   : > { %1214 = vmatprep.mubr.f32.mxu1 %v3421_v2 }
 0x2f6   : > { %3129 = vmatmul.mubr.msk.f32.gmra.mrb[10].mxu1 %vm1059_vm9, %v1024_v18 }
 0x2f7   : > { %1220 = vmatprep.mubr.f32.mxu1 %v3421_v2 }
 0x2fa   : > { %3130 = vmatmul.mubr.msk.f32.gmra.mrb[12].mxu1 %vm1059_vm9, %v1025_v19 }
 0x2fb   : > { %1226 = vmatprep.mubr.f32.mxu1 %v3421_v2 }
 0x2fe   : > { %3131 = vmatmul.mubr.msk.f32.gmra.mrb[14].mxu1 %vm1059_vm9, %v1026_v20 }
 0x2ff   : > { %1232 = vmatprep.mubr.f32.mxu1 %v3421_v2 }
 0x302   : > { %3132 = vmatmul.mubr.msk.f32.gmra.mrb[16].mxu1 %vm1059_vm9, %v1027_v21 }
 0x303   : > { %1238 = vmatprep.mubr.f32.mxu1 %v3421_v2 }
 0x306   : > { %3133 = vmatmul.mubr.msk.f32.gmra.mrb[18].mxu1 %vm1059_vm9, %v1028_v22 }
 0x307   : > { %1244 = vmatprep.mubr.f32.mxu1 %v3421_v2 }
 0x30a   : > { %3134 = vmatmul.mubr.msk.f32.gmra.mrb[20].mxu1 %vm1059_vm9, %v1029_v25 }
 0x30b   : > { %1250 = vmatprep.mubr.f32.mxu1 %v3421_v2 }
 0x30e   : > { %3135 = vmatmul.mubr.msk.f32.gmra.mrb[22].mxu1 %vm1059_vm9, %v1030_v26 }
 0x30f   : > { %1256 = vmatprep.mubr.f32.mxu1 %v3421_v2 }
 0x312   : > { %3136 = vmatmul.mubr.msk.f32.gmra.mrb[24].mxu1 %vm1059_vm9, %v1031_v27 }
 0x313   : > { %1262 = vmatprep.mubr.f32.mxu1 %v3421_v2 }
 0x316   : > { %3137 = vmatmul.mubr.msk.f32.gmra.mrb[26].mxu1 %vm1059_vm9, %v1032_v11 }
 0x317   : > { %1268 = vmatprep.mubr.f32.mxu1 %v3421_v2 }
 0x31a   : > { %3138 = vmatmul.mubr.msk.f32.gmra.mrb[28].mxu1 %vm1059_vm9, %v1033_v28 }
 0x31b   : > { %1274 = vmatprep.mubr.f32.mxu1 %v3421_v2 }
 0x31e   : > { %3139 = vmatmul.mubr.msk.f32.gmra.mrb[30].mxu1 %vm1059_vm9, %v1034_v12 }
 0x31f   : > { %1280 = vmatprep.mubr.f32.mxu1 %v3421_v2 }
 0x322   : > { %3140 = vmatmul.mubr.msk.f32.gmra.mrb[32].mxu1 %vm1059_vm9, %v1035_v29 }
 0x323   : > { %1286 = vmatprep.mubr.f32.mxu1 %v3421_v2 }
 0x326   : > { %3141 = vmatmul.mubr.msk.f32.gmra.mrb[34].mxu1 %vm1059_vm9, %v1036_v13 }
 0x327   : > { %1292 = vmatprep.mubr.f32.mxu1 %v3421_v2 }
 0x32a   : > { %3142 = vmatmul.mubr.msk.f32.gmra.mrb[36].mxu1 %vm1059_vm9, %v1037_v30 }
 0x32b   : > { %1298 = vmatprep.mubr.f32.mxu1 %v3421_v2 }
 0x32e   : > { %3143 = vmatmul.mubr.msk.f32.gmra.mrb[38].mxu1 %vm1059_vm9, %v1038_v14 }
 0x3b5   : > { %v1186_v31 = vpop.f32.mrb[0].mxu1 }
 0x3b6   : > { %1361 = vrot.lane.b32.xlu1 %v1186_v31, %s3425_s13  ;;  %v1188_v32 = vpop.f32.mrb[1].mxu1  ;;  %v1385_v31 = vld [vmem:[%s4955_s2] ss:$8 sm:$0x3] }
 0x3b9   : > { %v1192_v33 = vpop.f32.mrb[2].mxu1 }
 0x3ba   : > { %1369 = vrot.lane.b32.xlu1 %v1188_v32, %s3425_s13  ;;  %1363 = vrot.lane.b32.xlu0 %v1192_v33, %s3425_s13  ;;  %v1194_v34 = vpop.f32.mrb[3].mxu1 }
 0x3bd   : > { %v1198_v35 = vpop.f32.mrb[4].mxu1 }
 0x3be   : > { %1371 = vrot.lane.b32.xlu0 %v1194_v34, %s3425_s13  ;;  %1365 = vrot.lane.b32.xlu1 %v1198_v35, %s3425_s13  ;;  %v1200_v36 = vpop.f32.mrb[5].mxu1  ;;  %v1390_v34 = vrot.slane %v1385_v31, %v3615_v9 }
 0x3c1   : > { %v1204_v2 = vpop.f32.mrb[6].mxu1 }
 0x3c2   : > { %1373 = vrot.lane.b32.xlu1 %v1200_v36, %s3425_s13  ;;  %1367 = vrot.lane.b32.xlu0 %v1204_v2, %s3425_s13  ;;  %v1206_v37 = vpop.f32.mrb[7].mxu1 }
 0x3c5   : > { %v1210_v38 = vpop.f32.mrb[8].mxu1 }
 0x3c6   : > { %1375 = vrot.lane.b32.xlu0 %v1206_v37, %s3425_s13  ;;  %1421 = vrot.lane.b32.xlu1 %v1210_v38, %s3426_s14  ;;  %v1212_v39 = vpop.f32.mrb[9].mxu1  ;;  %v3144_v37 = vld [vmem:[%s4955_s2 + $0x1] ss:$8 sm:$0x3] }
 0x3c7   : > { %v3145_v38 = vld [vmem:[%s4955_s2 + $0x3] ss:$8 sm:$0x3] }
 0x3c9   : > { %v1216_v40 = vpop.f32.mrb[10].mxu1 }
 0x3ca   : > { %1429 = vrot.lane.b32.xlu1 %v1212_v39, %s3426_s14  ;;  %1423 = vrot.lane.b32.xlu0 %v1216_v40, %s3426_s14  ;;  %v1218_v41 = vpop.f32.mrb[11].mxu1  ;;  %v1394_v39 = vrot.slane %v1385_v31, %v3618_v10  ;;  %v3146_v40 = vld [vmem:[%s4955_s2 + $0x4] ss:$8 sm:$0x3] }
 0x3cd   : > { %v1222_v42 = vpop.f32.mrb[12].mxu1 }
 0x3ce   : > { %1431 = vrot.lane.b32.xlu0 %v1218_v41, %s3426_s14  ;;  %1425 = vrot.lane.b32.xlu1 %v1222_v42, %s3426_s14  ;;  %v1224_v43 = vpop.f32.mrb[13].mxu1 }
 0x3d1   : > { %v1228_v44 = vpop.f32.mrb[14].mxu1 }
 0x3d2   : > { %1433 = vrot.lane.b32.xlu1 %v1224_v43, %s3426_s14  ;;  %1427 = vrot.lane.b32.xlu0 %v1228_v44, %s3426_s14  ;;  %v1230_v45 = vpop.f32.mrb[15].mxu1  ;;  %v4037_v44 = vrot.slane %v3144_v37, %v3615_v9 }
 0x3d5   : > { %v3971_v46 = vpop.f32.mrb[16].mxu1 }
 0x3d6   : > { %1435 = vrot.lane.b32.xlu0 %v1230_v45, %s3426_s14  ;;  %v3974_v47 = vpop.f32.mrb[17].mxu1  ;;  %v4040_v45 = vrot.slane %v3144_v37, %v3618_v10 }
 0x3d9   : > { %v3976_v48 = vpop.f32.mrb[18].mxu1 }
 0x3da   : > { %v3978_v53 = vpop.f32.mrb[19].mxu1 }
 0x3dd   : > { %v3980_v50 = vpop.f32.mrb[20].mxu1 }
 0x3de   : > { %v3982_v52 = vpop.f32.mrb[21].mxu1 }
 0x3e1   : > { %v3984_v23 = vpop.f32.mrb[22].mxu1 }
 0x3e2   : > { %v3986_v54 = vpop.f32.mrb[23].mxu1 }
 0x3e5   : > { %v1258_v55 = vpop.f32.mrb[24].mxu1 }
 0x3e6   : > { %1481 = vrot.lane.b32.xlu1 %v1258_v55, %s3427_s15  ;;  %v1260_v56 = vpop.f32.mrb[25].mxu1  ;;  %v4043_v55 = vrot.slane %v3145_v38, %v3615_v9 }
 0x3e9   : > { %v1264_v57 = vpop.f32.mrb[26].mxu1 }
 0x3ea   : > { %1489 = vrot.lane.b32.xlu1 %v1260_v56, %s3427_s15  ;;  %1483 = vrot.lane.b32.xlu0 %v1264_v57, %s3427_s15  ;;  %v1266_v58 = vpop.f32.mrb[27].mxu1 }
 0x3ed   : > { %v1270_v59 = vpop.f32.mrb[28].mxu1 }
 0x3ee   : > { %1491 = vrot.lane.b32.xlu0 %v1266_v58, %s3427_s15  ;;  %1485 = vrot.lane.b32.xlu1 %v1270_v59, %s3427_s15  ;;  %v1272_v49 = vpop.f32.mrb[29].mxu1 }
 0x3f1   : > { %v1276_v51 = vpop.f32.mrb[30].mxu1 }
 0x3f2   : > { %1493 = vrot.lane.b32.xlu1 %v1272_v49, %s3427_s15  ;;  %1487 = vrot.lane.b32.xlu0 %v1276_v51, %s3427_s15  ;;  %v1278_v24 = vpop.f32.mrb[31].mxu1  ;;  %v4050_v49 = vrot.slane %v3145_v38, %v3618_v10  ;;  %v4053_v51 = vrot.slane %v3146_v40, %v3615_v9 }
 0x3f5   : > { %v1282_v60 = vpop.f32.mrb[32].mxu1 }
 0x3f6   : > { %1495 = vrot.lane.b32.xlu0 %v1278_v24, %s3427_s15  ;;  %1541 = vrot.lane.b32.xlu1 %v1282_v60, %s3428_s21  ;;  %v1284_v61 = vpop.f32.mrb[33].mxu1 }
 0x3f9   : > { %v1288_v62 = vpop.f32.mrb[34].mxu1 }
 0x3fa   : > { %1549 = vrot.lane.b32.xlu1 %v1284_v61, %s3428_s21  ;;  %1543 = vrot.lane.b32.xlu0 %v1288_v62, %s3428_s21  ;;  %v1290_v63 = vpop.f32.mrb[35].mxu1 }
 0x3fd   : > { %v1294_v0 = vpop.f32.mrb[36].mxu1 }
 0x3fe   : > { %1551 = vrot.lane.b32.xlu0 %v1290_v63, %s3428_s21  ;;  %1545 = vrot.lane.b32.xlu1 %v1294_v0, %s3428_s21  ;;  %v1296_v1 = vpop.f32.mrb[37].mxu1 }
 0x401   : > { %v1300_v3 = vpop.f32.mrb[38].mxu1 }
 0x402   : > { %1553 = vrot.lane.b32.xlu1 %v1296_v1, %s3428_s21  ;;  %1547 = vrot.lane.b32.xlu0 %v1300_v3, %s3428_s21  ;;  %v1302_v4 = vpop.f32.mrb[39].mxu1  ;;  %v4065_v3 = vrot.slane %v3146_v40, %v3618_v10 }
 0x406   : > { %1555 = vrot.lane.b32.xlu0 %v1302_v4, %s3428_s21 }
 0x428   : > { %v1362_v18 = vpop.permute.xlu1 %1361 }
 0x42c   : > { %v1364_v19 = vpop.permute.xlu0 %1363  ;;  %v1370_v20 = vpop.permute.xlu1 %1369 }
 0x42d   : > { %v1381_v35 = vsel %vm728_vm5, %v1370_v20, %v1362_v18  ;;  %v1377_v41 = vsel %vm728_vm5, %v1362_v18, %v1370_v20 }
 0x42e   : > { %v1397_v42 = vmul.f32 %v1390_v34, %v1381_v35  ;;  %v1398_v24 = vmul.f32 %v1394_v39, %v1377_v41 }
 0x430   : > { %v1372_v21 = vpop.permute.xlu0 %1371  ;;  %v1366_v22 = vpop.permute.xlu1 %1365  ;;  %v1405_v63 = vadd.f32 %v1397_v42, %v3971_v46  ;;  %v1406_v31 = vadd.f32 %v1398_v24, %v3974_v47 }
 0x431   : > { %v1382_v43 = vsel %vm728_vm5, %v1372_v21, %v1364_v19  ;;  %v1378_v58 = vsel %vm728_vm5, %v1364_v19, %v1372_v21 }
 0x432   : > { %v1399_v60 = vmul.f32 %v1390_v34, %v1382_v43  ;;  %v1400_v4 = vmul.f32 %v1394_v39, %v1378_v58 }
 0x434   : > { %v1368_v25 = vpop.permute.xlu0 %1367  ;;  %v1374_v26 = vpop.permute.xlu1 %1373  ;;  %v1407_v35 = vadd.f32 %v1399_v60, %v3976_v48 }
 0x435   : > { %v1383_v59 = vsel %vm728_vm5, %v1374_v26, %v1366_v22  ;;  %v1379_v61 = vsel %vm728_vm5, %v1366_v22, %v1374_v26 }
 0x436   : > { %v1401_v18 = vmul.f32 %v1390_v34, %v1383_v59  ;;  %v1402_v46 = vmul.f32 %v1394_v39, %v1379_v61 }
 0x438   : > { %v1376_v27 = vpop.permute.xlu0 %1375  ;;  %v1422_v11 = vpop.permute.xlu1 %1421  ;;  %v1409_v42 = vadd.f32 %v1401_v18, %v3980_v50  ;;  %v1410_v43 = vadd.f32 %v1402_v46, %v3982_v52 }
 0x439   : > { %v1384_v62 = vsel %vm728_vm5, %v1376_v27, %v1368_v25  ;;  %v1380_v0 = vsel %vm728_vm5, %v1368_v25, %v1376_v27 }
 0x43a   : > { %v1403_v26 = vmul.f32 %v1390_v34, %v1384_v62  ;;  %v1404_v37 = vmul.f32 %v1394_v39, %v1380_v0 }
 0x43c   : > { %v1424_v28 = vpop.permute.xlu0 %1423  ;;  %v1430_v12 = vpop.permute.xlu1 %1429  ;;  %v1411_v58 = vadd.f32 %v1403_v26, %v3984_v23 }
 0x43d   : > { %v1441_v1 = vsel %vm765_vm6, %v1430_v12, %v1422_v11  ;;  %v1437_v19 = vsel %vm765_vm6, %v1422_v11, %v1430_v12 }
 0x43e   : > { %v1457_v11 = vmul.f32 %v4037_v44, %v1441_v1  ;;  %v1458_v12 = vmul.f32 %v4040_v45, %v1437_v19 }
 0x440   : > { %v1432_v29 = vpop.permute.xlu0 %1431  ;;  %v1426_v13 = vpop.permute.xlu1 %1425  ;;  %v1466_v24 = vadd.f32 %v1458_v12, %v1406_v31 }
 0x441   : > { %v1442_v20 = vsel %vm765_vm6, %v1432_v29, %v1424_v28  ;;  %v1438_v25 = vsel %vm765_vm6, %v1424_v28, %v1432_v29  ;;  %v1408_v29 = vadd.f32 %v1400_v4, %v3978_v53  ;;  %v1412_v53 = vadd.f32 %v1404_v37, %v3986_v54 }
 0x442   : > { %v1459_v38 = vmul.f32 %v4037_v44, %v1442_v20  ;;  %v1460_v40 = vmul.f32 %v4040_v45, %v1438_v25 }
 0x444   : > { %v4012_v30 = vpop.permute.xlu0 %1427  ;;  %v1434_v14 = vpop.permute.xlu1 %1433  ;;  %v1467_v60 = vadd.f32 %v1459_v38, %v1407_v35  ;;  %v1468_v52 = vadd.f32 %v1460_v40, %v1408_v29 }
 0x445   : > { %v1443_v27 = vsel %vm765_vm6, %v1434_v14, %v1426_v13  ;;  %v1439_v47 = vsel %vm765_vm6, %v1426_v13, %v1434_v14  ;;  %v1465_v14 = vadd.f32 %v1457_v11, %v1405_v63 }
 0x446   : > { %v1461_v48 = vmul.f32 %v4037_v44, %v1443_v27  ;;  %v1462_v50 = vmul.f32 %v4040_v45, %v1439_v47 }
 0x448   : > { %v4017_v32 = vpop.permute.xlu0 %1435  ;;  %v1469_v61 = vadd.f32 %v1461_v48, %v1409_v42  ;;  %v1470_v46 = vadd.f32 %v1462_v50, %v1410_v43 }
 0x449   : > { %v1440_v26 = vsel %vm765_vm6, %v4012_v30, %v4017_v32 }
 0x44a   : > { %v1464_v48 = vmul.f32 %v4040_v45, %v1440_v26 }
 0x458   : > { %v1482_v33 = vpop.permute.xlu1 %1481 }
 0x45c   : > { %v1490_v36 = vpop.permute.xlu1 %1489  ;;  %v1484_v2 = vpop.permute.xlu0 %1483 }
 0x45d   : > { %v1497_v34 = vsel %vm803_vm7, %v1482_v33, %v1490_v36  ;;  %v1501_v28 = vsel %vm803_vm7, %v1490_v36, %v1482_v33 }
 0x45e   : > { %v1517_v36 = vmul.f32 %v4043_v55, %v1497_v34  ;;  %v1518_v59 = vmul.f32 %v4050_v49, %v1501_v28 }
 0x460   : > { %v1492_v56 = vpop.permute.xlu0 %1491  ;;  %v1486_v57 = vpop.permute.xlu1 %1485  ;;  %v1525_v63 = vadd.f32 %v1517_v36, %v1465_v14  ;;  %v1526_v18 = vadd.f32 %v1518_v59, %v1466_v24 }
 0x461   : > { %v1498_v33 = vsel %vm803_vm7, %v1484_v2, %v1492_v56  ;;  %v1502_v13 = vsel %vm803_vm7, %v1492_v56, %v1484_v2 }
 0x462   : > { %v1519_v23 = vmul.f32 %v4043_v55, %v1498_v33  ;;  %v1520_v1 = vmul.f32 %v4050_v49, %v1502_v13 }
 0x464   : > { %v1494_v21 = vpop.permute.xlu1 %1493  ;;  %v1488_v22 = vpop.permute.xlu0 %1487  ;;  %v1527_v25 = vadd.f32 %v1519_v23, %v1467_v60  ;;  %v1528_v12 = vadd.f32 %v1520_v1, %v1468_v52  ;;  %v1472_v52 = vadd.f32 %v1464_v48, %v1412_v53 }
 0x465   : > { %v1499_v62 = vsel %vm803_vm7, %v1486_v57, %v1494_v21  ;;  %v1503_v4 = vsel %vm803_vm7, %v1494_v21, %v1486_v57  ;;  %v1444_v57 = vsel %vm765_vm6, %v4017_v32, %v4012_v30 }
 0x466   : > { %v1521_v21 = vmul.f32 %v4043_v55, %v1499_v62  ;;  %v1522_v27 = vmul.f32 %v4050_v49, %v1503_v4  ;;  %v1463_v47 = vmul.f32 %v4037_v44, %v1444_v57 }
 0x468   : > { %v1496_v39 = vpop.permute.xlu0 %1495  ;;  %v1542_v41 = vpop.permute.xlu1 %1541  ;;  %v1530_v43 = vadd.f32 %v1522_v27, %v1470_v46  ;;  %v1850_v27 = vld [vmem:[%s4960_s7 + $0x8] sm:$0xff] }
 0x469   : > { %v1500_v38 = vsel %vm803_vm7, %v1488_v22, %v1496_v39  ;;  %v1504_v30 = vsel %vm803_vm7, %v1496_v39, %v1488_v22  ;;  %3150 = vmatprep.mubr.msk.f32.mxu0 %vm1929_vm10, %v1850_v27 }
 0x46a   : > { %v1523_v39 = vmul.f32 %v4043_v55, %v1500_v38  ;;  %v1524_v14 = vmul.f32 %v4050_v49, %v1504_v30  ;;  %v1471_v55 = vadd.f32 %v1463_v47, %v1411_v58  ;;  %v1657_v38 = vld [vmem:[%s4954_s1] ss:$8 sm:$0x3] }
 0x46b   : > { %v1662_v30 = vrot.slane %v1657_v38, %v3615_v9 }
 0x46c   : > { %v1550_v54 = vpop.permute.xlu1 %1549  ;;  %v1544_v0 = vpop.permute.xlu0 %1543  ;;  %v1531_v4 = vadd.f32 %v1523_v39, %v1471_v55 }
 0x46d   : > { %v1557_v2 = vsel %vm841_vm8, %v1542_v41, %v1550_v54  ;;  %v1561_v56 = vsel %vm841_vm8, %v1550_v54, %v1542_v41  ;;  %v1529_v41 = vadd.f32 %v1521_v21, %v1469_v61 }
 0x46e   : > { %v1577_v19 = vmul.f32 %v4053_v51, %v1557_v2  ;;  %v1578_v20 = vmul.f32 %v4065_v3, %v1561_v56  ;;  %v1532_v2 = vadd.f32 %v1524_v14, %v1472_v52 }
 0x470   : > { %v1585_v31 = vadd.f32 %v1577_v19, %v1525_v63  ;;  %v1586_v35 = vadd.f32 %v1578_v20, %v1526_v18  ;;  %v1552_v37 = vpop.permute.xlu0 %1551  ;;  %v1546_v11 = vpop.permute.xlu1 %1545 }
 0x471   : > { %v1558_v34 = vsel %vm841_vm8, %v1544_v0, %v1552_v37  ;;  %v1562_v28 = vsel %vm841_vm8, %v1552_v37, %v1544_v0  ;;  %v2464_v37 = vld [vmem:[%s4961_s8 + $0x8] sm:$0xff] }
 0x472   : > { %v1617_v32 = vadd.f32 %v4004_v5, %v1585_v31  ;;  %v1579_v29 = vmul.f32 %v4053_v51, %v1558_v34  ;;  %v1580_v40 = vmul.f32 %v4065_v3, %v1562_v28  ;;  %v1618_v42 = vadd.f32 %v4004_v5, %v1586_v35  ;;  %v2463_v31 = vld [vmem:[%s4961_s8] sm:$0xff]  ;;  %v2465_v35 = vld [vmem:[%s4961_s8 + $0x10] sm:$0xff] }
 0x474   : > { %v4136_v33 = vmax.f32 %v1617_v32, 0.0  ;;  %v1587_v36 = vadd.f32 %v1579_v29, %v1527_v25  ;;  %v1588_v59 = vadd.f32 %v1580_v40, %v1528_v12  ;;  %v1554_v13 = vpop.permute.xlu1 %1553  ;;  %v1548_v22 = vpop.permute.xlu0 %1547  ;;  %v4150_v49 = vmax.f32 %v1618_v42, 0.0 }
 0x475   : > { %v1559_v24 = vsel %vm841_vm8, %v1546_v11, %v1554_v13  ;;  %v1563_v44 = vsel %vm841_vm8, %v1554_v13, %v1546_v11  ;;  %v2466_v11 = vld [vmem:[%s4961_s8 + $0x18] sm:$0xff]  ;;  %v1666_v32 = vrot.slane %v1657_v38, %v3618_v10 }
 0x476   : > { %v1619_v45 = vadd.f32 %v4006_v15, %v1587_v36  ;;  %v1620_v5 = vadd.f32 %v4006_v15, %v1588_v59  ;;  %v1581_v60 = vmul.f32 %v4053_v51, %v1559_v24  ;;  %v1582_v50 = vmul.f32 %v4065_v3, %v1563_v44  ;;  %1633 = vrot.lane.b32.xlu1 %v4136_v33, %s3420_s22 }
 0x478   : > { %v4152_v61 = vmax.f32 %v1619_v45, 0.0  ;;  %v4154_v23 = vmax.f32 %v1620_v5, 0.0  ;;  %v1589_v62 = vadd.f32 %v1581_v60, %v1529_v41  ;;  %v1590_v54 = vadd.f32 %v1582_v50, %v1530_v43  ;;  %v1556_v0 = vpop.permute.xlu0 %1555 }
 0x479   : > { %v1560_v15 = vsel %vm841_vm8, %v1548_v22, %v1556_v0  ;;  %v1564_v1 = vsel %vm841_vm8, %v1556_v0, %v1548_v22 }
 0x47a   : > { %v1583_v58 = vmul.f32 %v4053_v51, %v1560_v15  ;;  %v1584_v53 = vmul.f32 %v4065_v3, %v1564_v1  ;;  %1641 = vrot.lane.b32.xlu1 %v4150_v49, %s3420_s22  ;;  %1635 = vrot.lane.b32.xlu0 %v4152_v61, %s3420_s22  ;;  %v3231_v56 = vpack.c.bf16 %v4154_v23, %v4150_v49 }
 0x47b   : > { %v3233_v63 = vpack.c.bf16 %v4152_v61, %v4136_v33  ;;  %v1621_v18 = vadd.f32 %v4008_v16, %v1589_v62  ;;  %v1622_v19 = vadd.f32 %v4008_v16, %v1590_v54  ;;  %v3147_v62 = vld [vmem:[%s4954_s1 + $0x1] ss:$8 sm:$0x3] }
 0x47c   : > { %v1591_v20 = vadd.f32 %v1583_v58, %v1531_v4  ;;  %v1592_v51 = vadd.f32 %v1584_v53, %v1532_v2  ;;  %v1718_v15 = vrot.slane %v3147_v62, %v3618_v10 }
 0x47d   : > { %v4178_v26 = vmax.f32 %v1621_v18, 0.0  ;;  %v4180_v57 = vmax.f32 %v1622_v19, 0.0 }
 0x47e   : > { %v1623_v3 = vadd.f32 %v4010_v17, %v1591_v20  ;;  %v1624_v46 = vadd.f32 %v4010_v17, %v1592_v51  ;;  %1685 = vrot.lane.b32.xlu1 %v4136_v33, %s3419_s18  ;;  %1643 = vrot.lane.b32.xlu0 %v4154_v23, %s3420_s22 }
 0x480   : > { %v4182_v21 = vmax.f32 %v1623_v3, 0.0  ;;  %v4184_v25 = vmax.f32 %v1624_v46, 0.0 }
 0x482   : > { %1693 = vrot.lane.b32.xlu1 %v4150_v49, %s3419_s18  ;;  %v3235_v16 = vpack.c.bf16 %v4184_v25, %v4180_v57  ;;  %v3237_v17 = vpack.c.bf16 %v4182_v21, %v4178_v26  ;;  %1687 = vrot.lane.b32.xlu0 %v4152_v61, %s3419_s18 }
 0x486   : > { %1745 = vrot.lane.b32.xlu1 %v4136_v33, %s3422_s25  ;;  %1695 = vrot.lane.b32.xlu0 %v4154_v23, %s3419_s18 }
 0x48a   : > { %1753 = vrot.lane.b32.xlu1 %v4150_v49, %s3422_s25  ;;  %1747 = vrot.lane.b32.xlu0 %v4152_v61, %s3422_s25 }
 0x48e   : > { %1637 = vrot.lane.b32.xlu1 %v4178_v26, %s3420_s22  ;;  %1755 = vrot.lane.b32.xlu0 %v4154_v23, %s3422_s25 }
 0x492   : > { %1645 = vrot.lane.b32.xlu1 %v4180_v57, %s3420_s22  ;;  %1639 = vrot.lane.b32.xlu0 %v4182_v21, %s3420_s22 }
 0x496   : > { %1689 = vrot.lane.b32.xlu1 %v4178_v26, %s3419_s18  ;;  %1647 = vrot.lane.b32.xlu0 %v4184_v25, %s3420_s22 }
 0x49a   : > { %1697 = vrot.lane.b32.xlu1 %v4180_v57, %s3419_s18  ;;  %1691 = vrot.lane.b32.xlu0 %v4182_v21, %s3419_s18 }
 0x49e   : > { %1797 = vrot.lane.b32.xlu1 %v4136_v33, %s4976_s16  ;;  %1699 = vrot.lane.b32.xlu0 %v4184_v25, %s3419_s18 }
 0x4a2   : > { %1749 = vrot.lane.b32.xlu1 %v4178_v26, %s3422_s25  ;;  %1799 = vrot.lane.b32.xlu0 %v4152_v61, %s4976_s16 }
 0x4a6   : > { %1757 = vrot.lane.b32.xlu1 %v4180_v57, %s3422_s25  ;;  %1807 = vrot.lane.b32.xlu0 %v4154_v23, %s4976_s16 }
 0x4aa   : > { %1805 = vrot.lane.b32.xlu1 %v4150_v49, %s4976_s16  ;;  %1751 = vrot.lane.b32.xlu0 %v4182_v21, %s3422_s25 }
 0x4ae   : > { %1801 = vrot.lane.b32.xlu1 %v4178_v26, %s4976_s16  ;;  %1759 = vrot.lane.b32.xlu0 %v4184_v25, %s3422_s25 }
 0x4b2   : > { %1809 = vrot.lane.b32.xlu1 %v4180_v57, %s4976_s16  ;;  %1803 = vrot.lane.b32.xlu0 %v4182_v21, %s4976_s16 }
 0x4b6   : > { %2469 = vperm.xlu1 %3340, %v2463_v31   ;;  %1811 = vrot.lane.b32.xlu0 %v4184_v25, %s4976_s16 }
 0x4ba   : > { %2479 = vperm.xlu1 %3340, %v2465_v35   ;;  %2474 = vperm.xlu0 %3339, %v2464_v37   ;;  %v1714_v35 = vrot.slane %v3147_v62, %v3615_v9 }
 0x4be   : > { %2484 = vperm.xlu0 %3339, %v2466_v11  }
 0x4e8   : > { %v1634_v12 = vpop.permute.xlu1 %1633 }
 0x4ec   : > { %v1642_v34 = vpop.permute.xlu1 %1641  ;;  %v1636_v28 = vpop.permute.xlu0 %1635 }
 0x4ed   : > { %v1649_v29 = vsel %vm423_vm1, %v1634_v12, %v1642_v34  ;;  %v1653_v40 = vsel %vm423_vm1, %v1642_v34, %v1634_v12 }
 0x4ee   : > { %v1669_v43 = vmul.f32 %v1662_v30, %v1653_v40  ;;  %v1670_v36 = vmul.f32 %v1666_v32, %v1649_v29 }
 0x4f0   : > { %v1686_v47 = vpop.permute.xlu1 %1685  ;;  %v1644_v48 = vpop.permute.xlu0 %1643 }
 0x4f1   : > { %v1650_v41 = vsel %vm423_vm1, %v1636_v28, %v1644_v48  ;;  %v1654_v42 = vsel %vm423_vm1, %v1644_v48, %v1636_v28 }
 0x4f2   : > { %v1671_v59 = vmul.f32 %v1662_v30, %v1654_v42  ;;  %v1672_v13 = vmul.f32 %v1666_v32, %v1650_v41 }
 0x4f4   : > { %v1694_v22 = vpop.permute.xlu1 %1693  ;;  %v3217_v39 = vpack.c.bf16 %v1671_v59, %v1669_v43  ;;  %v1688_v14 = vpop.permute.xlu0 %1687  ;;  %v3215_v24 = vpack.c.bf16 %v1672_v13, %v1670_v36 }
 0x4f5   : > { %v1701_v58 = vsel %vm446_vm0, %v1686_v47, %v1694_v22  ;;  %v1705_v11 = vsel %vm446_vm0, %v1694_v22, %v1686_v47 }
 0x4f6   : > { %3216 = vmatprep.subr.bf16.mxu0 %v3215_v24  ;;  %v1722_v12 = vmul.f32 %v1718_v15, %v1701_v58  ;;  %v1721_v48 = vmul.f32 %v1714_v35, %v1705_v11 }
 0x4f7   : > { %3218 = vmatpush1.bf16.msra.mxu0 %v3217_v39 }
 0x4f8   : > { %v4273_v44 = vpop.permute.xlu1 %1745  ;;  %v1696_v45 = vpop.permute.xlu0 %1695 }
 0x4f9   : > { %v1702_v0 = vsel %vm446_vm0, %v1688_v14, %v1696_v45  ;;  %v1706_v18 = vsel %vm446_vm0, %v1696_v45, %v1688_v14 }
 0x4fa   : > { %v1724_v19 = vmul.f32 %v1718_v15, %v1702_v0  ;;  %v1723_v29 = vmul.f32 %v1714_v35, %v1706_v18  ;;  %v3149_v18 = vld [vmem:[%s4954_s1 + $0x4] ss:$8 sm:$0x3] }
 0x4fc   : > { %v4275_v5 = vpop.permute.xlu1 %1753  ;;  %v1748_v60 = vpop.permute.xlu0 %1747  ;;  %v3223_v40 = vpack.c.bf16 %v1724_v19, %v1722_v12  ;;  %v3225_v43 = vpack.c.bf16 %v1723_v29, %v1721_v48 }
 0x500   : > { %v1638_v50 = vpop.permute.xlu1 %1637  ;;  %v1756_v55 = vpop.permute.xlu0 %1755 }
 0x501   : > { %v1766_v62 = vsel %vm472_vm2, %v1756_v55, %v1748_v60 }
 0x504   : > { %v1646_v52 = vpop.permute.xlu1 %1645  ;;  %v1640_v54 = vpop.permute.xlu0 %1639 }
 0x505   : > { %v1651_v1 = vsel %vm423_vm1, %v1638_v50, %v1646_v52  ;;  %v1655_v4 = vsel %vm423_vm1, %v1646_v52, %v1638_v50  ;;  %v3148_v52 = vld [vmem:[%s4954_s1 + $0x3] ss:$8 sm:$0x3] }
 0x506   : > { %v1673_v3 = vmul.f32 %v1662_v30, %v1655_v4  ;;  %v1674_v46 = vmul.f32 %v1666_v32, %v1651_v1  ;;  %v1778_v0 = vrot.slane %v3148_v52, %v3618_v10  ;;  %v1765_v1 = vsel %vm472_vm2, %v4275_v5, %v4273_v44 }
 0x507   : > { %v1762_v4 = vsel %vm472_vm2, %v1748_v60, %v1756_v55 }
 0x508   : > { %v1690_v2 = vpop.permute.xlu1 %1689  ;;  %v1648_v53 = vpop.permute.xlu0 %1647  ;;  %v1784_v58 = vmul.f32 %v1778_v0, %v1766_v62  ;;  %v1782_v23 = vmul.f32 %v1778_v0, %v1765_v1  ;;  %v1856_v62 = vld [vmem:[%s4960_s7 + $0x38] sm:$0xff] }
 0x509   : > { %v1652_v20 = vsel %vm423_vm1, %v1640_v54, %v1648_v53  ;;  %v1656_v51 = vsel %vm423_vm1, %v1648_v53, %v1640_v54  ;;  %v1761_v53 = vsel %vm472_vm2, %v4273_v44, %v4275_v5  ;;  %v1830_v5 = vrot.slane %v3149_v18, %v3618_v10  ;;  %v1860_v1 = vld [vmem:[%s4960_s7 + $0x58] sm:$0xff] }
 0x50a   : > { %v1675_v27 = vmul.f32 %v1662_v30, %v1656_v51  ;;  %v1676_v31 = vmul.f32 %v1666_v32, %v1652_v20  ;;  %v3239_v61 = vpack.c.bf16 %v1784_v58, %v1782_v23  ;;  %v1861_v58 = vld [vmem:[%s4960_s7 + $0x60] sm:$0xff]  ;;  %v1866_v23 = vld [vmem:[%s4960_s7 + $0x88] sm:$0xff] }
 0x50c   : > { %v1698_v37 = vpop.permute.xlu1 %1697  ;;  %v3221_v38 = vpack.c.bf16 %v1675_v27, %v1673_v3  ;;  %v1692_v34 = vpop.permute.xlu0 %1691  ;;  %v3219_v28 = vpack.c.bf16 %v1676_v31, %v1674_v46  ;;  %v1826_v31 = vrot.slane %v3149_v18, %v3615_v9  ;;  %v1870_v18 = vld [vmem:[%s4960_s7 + $0xa8] sm:$0xff] }
 0x50d   : > { %v1703_v41 = vsel %vm446_vm0, %v1690_v2, %v1698_v37  ;;  %v1707_v30 = vsel %vm446_vm0, %v1698_v37, %v1690_v2  ;;  %v1774_v2 = vrot.slane %v3148_v52, %v3615_v9  ;;  %v1853_v52 = vld [vmem:[%s4960_s7 + $0x20] sm:$0xff] }
 0x50e   : > { %3220 = vmatprep.subr.bf16.mxu0 %v3219_v28  ;;  %v1725_v59 = vmul.f32 %v1714_v35, %v1707_v30  ;;  %v1726_v13 = vmul.f32 %v1718_v15, %v1703_v41 }
 0x50f   : > { %3222 = vmatpush1.bf16.msra.mxu0 %v3221_v38  ;;  %v1781_v44 = vmul.f32 %v1774_v2, %v1761_v53  ;;  %v1864_v53 = vld [vmem:[%s4960_s7 + $0x78] sm:$0xff] }
 0x510   : > { %v1798_v32 = vpop.permute.xlu1 %1797  ;;  %3224 = vmatprep.subr.bf16.mxu0 %v3223_v40  ;;  %v1700_v42 = vpop.permute.xlu0 %1699 }
 0x511   : > { %v1704_v47 = vsel %vm446_vm0, %v1692_v34, %v1700_v42  ;;  %v1708_v36 = vsel %vm446_vm0, %v1700_v42, %v1692_v34 }
 0x512   : > { %v1727_v22 = vmul.f32 %v1714_v35, %v1708_v36  ;;  %v1728_v39 = vmul.f32 %v1718_v15, %v1704_v47 }
 0x513   : > { %3226 = vmatpush1.bf16.msra.mxu0 %v3225_v43 }
 0x514   : > { %v1750_v14 = vpop.permute.xlu1 %1749  ;;  %v3229_v24 = vpack.c.bf16 %v1727_v22, %v1725_v59  ;;  %v1800_v45 = vpop.permute.xlu0 %1799  ;;  %v3227_v50 = vpack.c.bf16 %v1728_v39, %v1726_v13 }
 0x516   : > { %3228 = vmatprep.subr.bf16.mxu0 %v3227_v50  ;;  %v1854_v50 = vld [vmem:[%s4960_s7 + $0x28] sm:$0xff] }
 0x517   : > { %3230 = vmatpush1.bf16.msra.mxu0 %v3229_v24  ;;  %v1852_v24 = vld [vmem:[%s4960_s7 + $0x18] sm:$0xff] }
 0x518   : > { %v1758_v54 = vpop.permute.xlu1 %1757  ;;  %3232 = vmatprep.subr.bf16.mxu0 %v3231_v56  ;;  %v1808_v15 = vpop.permute.xlu0 %1807  ;;  %v1783_v56 = vmul.f32 %v1774_v2, %v1762_v4  ;;  %v1859_v4 = vld [vmem:[%s4960_s7 + $0x50] sm:$0xff] }
 0x519   : > { %v1763_v55 = vsel %vm472_vm2, %v1750_v14, %v1758_v54  ;;  %v1767_v33 = vsel %vm472_vm2, %v1758_v54, %v1750_v14  ;;  %v1818_v51 = vsel %vm496_vm3, %v1808_v15, %v1800_v45  ;;  %v1814_v35 = vsel %vm496_vm3, %v1800_v45, %v1808_v15  ;;  %v1849_v14 = vld [vmem:[%s4960_s7] sm:$0xff]  ;;  %v1851_v45 = vld [vmem:[%s4960_s7 + $0x10] sm:$0xff] }
 0x51a   : > { %v3241_v25 = vpack.c.bf16 %v1783_v56, %v1781_v44  ;;  %v1786_v20 = vmul.f32 %v1778_v0, %v1767_v33  ;;  %v1836_v37 = vmul.f32 %v1830_v5, %v1818_v51  ;;  %v1835_v40 = vmul.f32 %v1826_v31, %v1814_v35  ;;  %v1855_v54 = vld [vmem:[%s4960_s7 + $0x30] sm:$0xff]  ;;  %v1857_v15 = vld [vmem:[%s4960_s7 + $0x40] sm:$0xff]  ;;  %v1872_v33 = vld [vmem:[%s4960_s7 + $0xb8] sm:$0xff] }
 0x51b   : > { %3234 = vmatpush1.bf16.msra.mxu0 %v3233_v63  ;;  %v1865_v56 = vld [vmem:[%s4960_s7 + $0x80] sm:$0xff]  ;;  %v1879_v51 = vld [vmem:[%s4960_s7 + $0xf0] sm:$0xff] }
 0x51c   : > { %v1806_v49 = vpop.permute.xlu1 %1805  ;;  %3236 = vmatprep.subr.bf16.mxu0 %v3235_v16  ;;  %v1752_v60 = vpop.permute.xlu0 %1751  ;;  %v1785_v16 = vmul.f32 %v1774_v2, %v1763_v55  ;;  %v1867_v55 = vld [vmem:[%s4960_s7 + $0x90] sm:$0xff]  ;;  %v1869_v44 = vld [vmem:[%s4960_s7 + $0xa0] sm:$0xff] }
 0x51d   : > { %v1817_v63 = vsel %vm496_vm3, %v1806_v49, %v1798_v32  ;;  %v1813_v26 = vsel %vm496_vm3, %v1798_v32, %v1806_v49  ;;  %v1863_v49 = vld [vmem:[%s4960_s7 + $0x70] sm:$0xff] }
 0x51e   : > { %v1834_v21 = vmul.f32 %v1830_v5, %v1817_v63  ;;  %v1833_v28 = vmul.f32 %v1826_v31, %v1813_v26  ;;  %v1874_v63 = vld [vmem:[%s4960_s7 + $0xc8] sm:$0xff]  ;;  %v1884_v26 = vld [vmem:[%s4960_s7 + $0x118] sm:$0xff]  ;;  %v1887_v35 = vld [vmem:[%s4960_s7 + $0x130] sm:$0xff] }
 0x51f   : > { %3238 = vmatpush1.bf16.msra.mxu0 %v3237_v17 }
 0x520   : > { %v1802_v57 = vpop.permute.xlu1 %1801  ;;  %3240 = vmatprep.subr.bf16.mxu0 %v3239_v61  ;;  %v1760_v19 = vpop.permute.xlu0 %1759  ;;  %v3247_v29 = vpack.c.bf16 %v1836_v37, %v1834_v21  ;;  %v3249_v32 = vpack.c.bf16 %v1835_v40, %v1833_v28  ;;  %v1871_v61 = vld [vmem:[%s4960_s7 + $0xb0] sm:$0xff] }
 0x521   : > { %v1764_v3 = vsel %vm472_vm2, %v1752_v60, %v1760_v19  ;;  %v1768_v46 = vsel %vm472_vm2, %v1760_v19, %v1752_v60  ;;  %v1868_v60 = vld [vmem:[%s4960_s7 + $0x98] sm:$0xff]  ;;  %v1877_v19 = vld [vmem:[%s4960_s7 + $0xe0] sm:$0xff]  ;;  %v1883_v21 = vld [vmem:[%s4960_s7 + $0x110] sm:$0xff] }
 0x522   : > { %v1787_v17 = vmul.f32 %v1774_v2, %v1764_v3  ;;  %v1788_v27 = vmul.f32 %v1778_v0, %v1768_v46  ;;  %v1858_v0 = vld [vmem:[%s4960_s7 + $0x48] sm:$0xff]  ;;  %v1881_v46 = vld [vmem:[%s4960_s7 + $0x100] sm:$0xff] }
 0x523   : > { %3242 = vmatpush1.bf16.msra.mxu0 %v3241_v25  ;;  %v1862_v2 = vld [vmem:[%s4960_s7 + $0x68] sm:$0xff]  ;;  %v1876_v25 = vld [vmem:[%s4960_s7 + $0xd8] sm:$0xff] }
 0x524   : > { %v3245_v11 = vpack.c.bf16 %v1787_v17, %v1785_v16  ;;  %v1810_v12 = vpop.permute.xlu1 %1809  ;;  %v1804_v38 = vpop.permute.xlu0 %1803  ;;  %v3243_v34 = vpack.c.bf16 %v1788_v27, %v1786_v20  ;;  %v1875_v16 = vld [vmem:[%s4960_s7 + $0xd0] sm:$0xff]  ;;  %v1880_v20 = vld [vmem:[%s4960_s7 + $0xf8] sm:$0xff]  ;;  %v1882_v3 = vld [vmem:[%s4960_s7 + $0x108] sm:$0xff] }
 0x525   : > { %v1815_v48 = vsel %vm496_vm3, %v1802_v57, %v1810_v12  ;;  %v1819_v41 = vsel %vm496_vm3, %v1810_v12, %v1802_v57  ;;  %v1873_v57 = vld [vmem:[%s4960_s7 + $0xc0] sm:$0xff]  ;;  %v1886_v17 = vld [vmem:[%s4960_s7 + $0x128] sm:$0xff] }
 0x526   : > { %3244 = vmatprep.subr.bf16.mxu0 %v3243_v34  ;;  %v1837_v47 = vmul.f32 %v1826_v31, %v1815_v48  ;;  %v1838_v36 = vmul.f32 %v1830_v5, %v1819_v41  ;;  %v1885_v27 = vld [vmem:[%s4960_s7 + $0x120] sm:$0xff] }
 0x527   : > { %3246 = vmatpush1.bf16.msra.mxu0 %v3245_v11 }
 0x528   : > { %3248 = vmatprep.subr.bf16.mxu0 %v3247_v29  ;;  %v1812_v30 = vpop.permute.xlu0 %1811 }
 0x529   : > { %v1816_v42 = vsel %vm496_vm3, %v1804_v38, %v1812_v30  ;;  %v1820_v43 = vsel %vm496_vm3, %v1812_v30, %v1804_v38 }
 0x52a   : > { %v1839_v59 = vmul.f32 %v1826_v31, %v1816_v42  ;;  %v1840_v13 = vmul.f32 %v1830_v5, %v1820_v43  ;;  %v1878_v5 = vld [vmem:[%s4960_s7 + $0xe8] sm:$0xff]  ;;  %v1888_v31 = vld [vmem:[%s4960_s7 + $0x138] sm:$0xff] }
 0x52b   : > { %3250 = vmatpush1.bf16.msra.mxu0 %v3249_v32 }
 0x52c   : > { %v3253_v22 = vpack.c.bf16 %v1839_v59, %v1837_v47  ;;  %v3251_v39 = vpack.c.bf16 %v1840_v13, %v1838_v36 }
 0x52e   : > { %3252 = vmatprep.subr.bf16.mxu0 %v3251_v39 }
 0x52f   : > { %3254 = vmatpush1.bf16.msra.mxu0 %v3253_v22 }
 0x532   : > { %2055 = vmatmul.mubr.f32.vlgmr.msra.gmra.mrb[20].mxu0 %v1849_v14 }
 0x533   : > { %3151 = vmatprep.mubr.msk.f32.mxu0 %vm1929_vm10, %v1852_v24 }
 0x536   : > { %2061 = vmatmul.mubr.f32.gmra.mrb[22].mxu0 %v1851_v45 }
 0x537   : > { %3152 = vmatprep.mubr.msk.f32.mxu0 %vm1929_vm10, %v1854_v50 }
 0x53a   : > { %2067 = vmatmul.mubr.f32.gmra.mrb[24].mxu0 %v1853_v52 }
 0x53b   : > { %3153 = vmatprep.mubr.msk.f32.mxu0 %vm1929_vm10, %v1856_v62 }
 0x53e   : > { %2073 = vmatmul.mubr.f32.gmra.mrb[26].mxu0 %v1855_v54 }
 0x53f   : > { %3154 = vmatprep.mubr.msk.f32.mxu0 %vm1929_vm10, %v1858_v0 }
 0x542   : > { %2079 = vmatmul.mubr.f32.gmra.mrb[28].mxu0 %v1857_v15 }
 0x543   : > { %3155 = vmatprep.mubr.msk.f32.mxu0 %vm1929_vm10, %v1860_v1 }
 0x546   : > { %2085 = vmatmul.mubr.f32.gmra.mrb[30].mxu0 %v1859_v4 }
 0x547   : > { %3156 = vmatprep.mubr.msk.f32.mxu0 %vm1929_vm10, %v1862_v2 }
 0x54a   : > { %2091 = vmatmul.mubr.f32.gmra.mrb[32].mxu0 %v1861_v58 }
 0x54b   : > { %3157 = vmatprep.mubr.msk.f32.mxu0 %vm1929_vm10, %v1864_v53 }
 0x54e   : > { %2097 = vmatmul.mubr.f32.gmra.mrb[34].mxu0 %v1863_v49 }
 0x54f   : > { %3158 = vmatprep.mubr.msk.f32.mxu0 %vm1929_vm10, %v1866_v23 }
 0x552   : > { %2103 = vmatmul.mubr.f32.gmra.mrb[36].mxu0 %v1865_v56 }
 0x553   : > { %3159 = vmatprep.mubr.msk.f32.mxu0 %vm1929_vm10, %v1868_v60 }
 0x556   : > { %2109 = vmatmul.mubr.f32.gmra.mrb[38].mxu0 %v1867_v55 }
 0x557   : > { %3160 = vmatprep.mubr.msk.f32.mxu0 %vm1929_vm10, %v1870_v18 }
 0x55a   : > { %2115 = vmatmul.mubr.f32.gmra.mrb[40].mxu0 %v1869_v44  ;;  %v4544_v44 = vpop.permute.xlu1 %2469 }
 0x55b   : > { %3161 = vmatprep.mubr.msk.f32.mxu0 %vm1929_vm10, %v1872_v33  ;;  %v4546_v33 = vpop.permute.xlu0 %2474 }
 0x55e   : > { %2121 = vmatmul.mubr.f32.gmra.mrb[42].mxu0 %v1871_v61  ;;  %v4548_v61 = vpop.permute.xlu1 %2479 }
 0x55f   : > { %3162 = vmatprep.mubr.msk.f32.mxu0 %vm1929_vm10, %v1874_v63  ;;  %v4550_v63 = vpop.permute.xlu0 %2484 }
 0x562   : > { %2127 = vmatmul.mubr.f32.gmra.mrb[44].mxu0 %v1873_v57 }
 0x563   : > { %3163 = vmatprep.mubr.msk.f32.mxu0 %vm1929_vm10, %v1876_v25 }
 0x566   : > { %2133 = vmatmul.mubr.f32.gmra.mrb[46].mxu0 %v1875_v16 }
 0x567   : > { %3164 = vmatprep.mubr.msk.f32.mxu0 %vm1929_vm10, %v1878_v5 }
 0x56a   : > { %2139 = vmatmul.mubr.f32.gmra.mrb[48].mxu0 %v1877_v19 }
 0x56b   : > { %3165 = vmatprep.mubr.msk.f32.mxu0 %vm1929_vm10, %v1880_v20  ;;  %v2255_v20 = vld [vmem:[%s4955_s2] ss:$8 sm:$0x3] }
 0x56e   : > { %2145 = vmatmul.mubr.f32.gmra.mrb[50].mxu0 %v1879_v51  ;;  %v2264_v51 = vrot.slane %v2255_v20, %v3618_v10 }
 0x56f   : > { %3166 = vmatprep.mubr.msk.f32.mxu0 %vm1929_vm10, %v1882_v3 }
 0x572   : > { %2151 = vmatmul.mubr.f32.gmra.mrb[52].mxu0 %v1881_v46 }
 0x573   : > { %3167 = vmatprep.mubr.msk.f32.mxu0 %vm1929_vm10, %v1884_v26 }
 0x576   : > { %2157 = vmatmul.mubr.f32.gmra.mrb[54].mxu0 %v1883_v21 }
 0x577   : > { %3168 = vmatprep.mubr.msk.f32.mxu0 %vm1929_vm10, %v1886_v17 }
 0x57a   : > { %2163 = vmatmul.mubr.f32.gmra.mrb[56].mxu0 %v1885_v27 }
 0x57b   : > { %3169 = vmatprep.mubr.msk.f32.mxu0 %vm1929_vm10, %v1888_v31 }
 0x57e   : > { %2169 = vmatmul.mubr.f32.gmra.mrb[58].mxu0 %v1887_v35 }
 0x605   : > { %v2056_v37 = vpop.f32.mrb[20].mxu0 }
 0x606   : > { %2231 = vrot.lane.b32.xlu1 %v2056_v37, %s3425_s13  ;;  %v2058_v11 = vpop.f32.mrb[21].mxu0 }
 0x609   : > { %v2062_v12 = vpop.f32.mrb[22].mxu0 }
 0x60a   : > { %2239 = vrot.lane.b32.xlu1 %v2058_v11, %s3425_s13  ;;  %2233 = vrot.lane.b32.xlu0 %v2062_v12, %s3425_s13  ;;  %v2064_v38 = vpop.f32.mrb[23].mxu0 }
 0x60d   : > { %v2068_v34 = vpop.f32.mrb[24].mxu0 }
 0x60e   : > { %2241 = vrot.lane.b32.xlu0 %v2064_v38, %s3425_s13  ;;  %2235 = vrot.lane.b32.xlu1 %v2068_v34, %s3425_s13  ;;  %v2070_v28 = vpop.f32.mrb[25].mxu0 }
 0x611   : > { %v2074_v29 = vpop.f32.mrb[26].mxu0 }
 0x612   : > { %2243 = vrot.lane.b32.xlu1 %v2070_v28, %s3425_s13  ;;  %2237 = vrot.lane.b32.xlu0 %v2074_v29, %s3425_s13  ;;  %v2076_v40 = vpop.f32.mrb[27].mxu0 }
 0x615   : > { %v2080_v48 = vpop.f32.mrb[28].mxu0 }
 0x616   : > { %2245 = vrot.lane.b32.xlu0 %v2076_v40, %s3425_s13  ;;  %2291 = vrot.lane.b32.xlu1 %v2080_v48, %s3426_s14  ;;  %v2082_v41 = vpop.f32.mrb[29].mxu0 }
 0x619   : > { %v2086_v30 = vpop.f32.mrb[30].mxu0 }
 0x61a   : > { %2299 = vrot.lane.b32.xlu1 %v2082_v41, %s3426_s14  ;;  %2293 = vrot.lane.b32.xlu0 %v2086_v30, %s3426_s14  ;;  %v2088_v32 = vpop.f32.mrb[31].mxu0 }
 0x61d   : > { %v2092_v42 = vpop.f32.mrb[32].mxu0 }
 0x61e   : > { %2301 = vrot.lane.b32.xlu0 %v2088_v32, %s3426_s14  ;;  %2295 = vrot.lane.b32.xlu1 %v2092_v42, %s3426_s14  ;;  %v2094_v43 = vpop.f32.mrb[33].mxu0  ;;  %v2260_v42 = vrot.slane %v2255_v20, %v3615_v9 }
 0x621   : > { %v2098_v47 = vpop.f32.mrb[34].mxu0 }
 0x622   : > { %2303 = vrot.lane.b32.xlu1 %v2094_v43, %s3426_s14  ;;  %2297 = vrot.lane.b32.xlu0 %v2098_v47, %s3426_s14  ;;  %v2100_v36 = vpop.f32.mrb[35].mxu0  ;;  %v3170_v43 = vld [vmem:[%s4955_s2 + $0x1] ss:$8 sm:$0x3] }
 0x625   : > { %v4515_v59 = vpop.f32.mrb[36].mxu0 }
 0x626   : > { %2305 = vrot.lane.b32.xlu0 %v2100_v36, %s3426_s14  ;;  %v4518_v13 = vpop.f32.mrb[37].mxu0  ;;  %v3171_v36 = vld [vmem:[%s4955_s2 + $0x3] ss:$8 sm:$0x3] }
 0x629   : > { %v4520_v22 = vpop.f32.mrb[38].mxu0 }
 0x62a   : > { %v4522_v39 = vpop.f32.mrb[39].mxu0 }
 0x62d   : > { %v4524_v14 = vpop.f32.mrb[40].mxu0 }
 0x62e   : > { %v2118_v24 = vpop.f32.mrb[41].mxu0 }
 0x631   : > { %v4526_v45 = vpop.f32.mrb[42].mxu0 }
 0x632   : > { %v2124_v50 = vpop.f32.mrb[43].mxu0 }
 0x635   : > { %v2128_v52 = vpop.f32.mrb[44].mxu0 }
 0x636   : > { %2351 = vrot.lane.b32.xlu1 %v2128_v52, %s3427_s15  ;;  %v2130_v62 = vpop.f32.mrb[45].mxu0  ;;  %v3172_v52 = vld [vmem:[%s4955_s2 + $0x4] ss:$8 sm:$0x3] }
 0x639   : > { %v2134_v54 = vpop.f32.mrb[46].mxu0 }
 0x63a   : > { %2359 = vrot.lane.b32.xlu1 %v2130_v62, %s3427_s15  ;;  %2353 = vrot.lane.b32.xlu0 %v2134_v54, %s3427_s15  ;;  %v2136_v0 = vpop.f32.mrb[47].mxu0 }
 0x63d   : > { %v2140_v15 = vpop.f32.mrb[48].mxu0 }
 0x63e   : > { %2361 = vrot.lane.b32.xlu0 %v2136_v0, %s3427_s15  ;;  %2355 = vrot.lane.b32.xlu1 %v2140_v15, %s3427_s15  ;;  %v2142_v1 = vpop.f32.mrb[49].mxu0  ;;  %v4585_v0 = vrot.slane %v3170_v43, %v3615_v9  ;;  %v4588_v15 = vrot.slane %v3170_v43, %v3618_v10 }
 0x641   : > { %v2146_v4 = vpop.f32.mrb[50].mxu0 }
 0x642   : > { %2363 = vrot.lane.b32.xlu1 %v2142_v1, %s3427_s15  ;;  %2357 = vrot.lane.b32.xlu0 %v2146_v4, %s3427_s15  ;;  %v2148_v2 = vpop.f32.mrb[51].mxu0 }
 0x645   : > { %v2152_v58 = vpop.f32.mrb[52].mxu0 }
 0x646   : > { %2365 = vrot.lane.b32.xlu0 %v2148_v2, %s3427_s15  ;;  %2411 = vrot.lane.b32.xlu1 %v2152_v58, %s3428_s21  ;;  %v2154_v53 = vpop.f32.mrb[53].mxu0  ;;  %v4595_v58 = vrot.slane %v3171_v36, %v3615_v9 }
 0x649   : > { %v2158_v49 = vpop.f32.mrb[54].mxu0 }
 0x64a   : > { %2419 = vrot.lane.b32.xlu1 %v2154_v53, %s3428_s21  ;;  %2413 = vrot.lane.b32.xlu0 %v2158_v49, %s3428_s21  ;;  %v2160_v23 = vpop.f32.mrb[55].mxu0 }
 0x64d   : > { %v2164_v56 = vpop.f32.mrb[56].mxu0 }
 0x64e   : > { %2421 = vrot.lane.b32.xlu0 %v2160_v23, %s3428_s21  ;;  %2415 = vrot.lane.b32.xlu1 %v2164_v56, %s3428_s21  ;;  %v2166_v60 = vpop.f32.mrb[57].mxu0  ;;  %v4602_v23 = vrot.slane %v3171_v36, %v3618_v10  ;;  %v4605_v56 = vrot.slane %v3172_v52, %v3615_v9 }
 0x651   : > { %v2170_v55 = vpop.f32.mrb[58].mxu0 }
 0x652   : > { %2423 = vrot.lane.b32.xlu1 %v2166_v60, %s3428_s21  ;;  %2417 = vrot.lane.b32.xlu0 %v2170_v55, %s3428_s21  ;;  %v2172_v18 = vpop.f32.mrb[59].mxu0 }
 0x656   : > { %2425 = vrot.lane.b32.xlu0 %v2172_v18, %s3428_s21 }
 0x678   : > { %v2232_v57 = vpop.permute.xlu1 %2231 }
 0x67c   : > { %v2240_v25 = vpop.permute.xlu1 %2239  ;;  %v2234_v16 = vpop.permute.xlu0 %2233 }
 0x67d   : > { %v2251_v47 = vsel %vm728_vm5, %v2240_v25, %v2232_v57  ;;  %v2247_v62 = vsel %vm728_vm5, %v2232_v57, %v2240_v25 }
 0x67e   : > { %v2267_v1 = vmul.f32 %v2260_v42, %v2251_v47  ;;  %v2268_v60 = vmul.f32 %v2264_v51, %v2247_v62 }
 0x680   : > { %v2236_v5 = vpop.permute.xlu1 %2235  ;;  %v2242_v19 = vpop.permute.xlu0 %2241 }
 0x681   : > { %v2252_v54 = vsel %vm728_vm5, %v2242_v19, %v2234_v16  ;;  %v2248_v4 = vsel %vm728_vm5, %v2234_v16, %v2242_v19 }
 0x682   : > { %v2269_v55 = vmul.f32 %v2260_v42, %v2252_v54 }
 0x684   : > { %v2244_v3 = vpop.permute.xlu1 %2243  ;;  %v2238_v46 = vpop.permute.xlu0 %2237  ;;  %v2277_v47 = vadd.f32 %v2269_v55, %v4520_v22 }
 0x685   : > { %v2249_v26 = vsel %vm728_vm5, %v2236_v5, %v2244_v3  ;;  %v2253_v2 = vsel %vm728_vm5, %v2244_v3, %v2236_v5  ;;  %v2270_v5 = vmul.f32 %v2264_v51, %v2248_v4 }
 0x686   : > { %v2272_v21 = vmul.f32 %v2264_v51, %v2249_v26  ;;  %v2271_v19 = vmul.f32 %v2260_v42, %v2253_v2 }
 0x687   : > { %v2278_v36 = vadd.f32 %v2270_v5, %v4522_v39 }
 0x688   : > { %v4558_v17 = vadd.f32 %v2272_v21, %v2118_v24  ;;  %v2246_v27 = vpop.permute.xlu0 %2245  ;;  %v2292_v11 = vpop.permute.xlu1 %2291 }
 0x689   : > { %v2250_v31 = vsel %vm728_vm5, %v2238_v46, %v2246_v27  ;;  %v2254_v53 = vsel %vm728_vm5, %v2246_v27, %v2238_v46  ;;  %v2275_v46 = vadd.f32 %v2267_v1, %v4515_v59  ;;  %v4618_v27 = vrot.slane %v3172_v52, %v3618_v10 }
 0x68a   : > { %v2274_v35 = vmul.f32 %v2264_v51, %v2250_v31  ;;  %v2273_v26 = vmul.f32 %v2260_v42, %v2254_v53  ;;  %v2279_v52 = vadd.f32 %v2271_v19, %v4524_v14 }
 0x68c   : > { %v4562_v37 = vadd.f32 %v2274_v35, %v2124_v50  ;;  %v2294_v12 = vpop.permute.xlu0 %2293  ;;  %v2300_v38 = vpop.permute.xlu1 %2299 }
 0x68d   : > { %v2311_v49 = vsel %vm765_vm6, %v2300_v38, %v2292_v11  ;;  %v2307_v18 = vsel %vm765_vm6, %v2292_v11, %v2300_v38 }
 0x68e   : > { %v2327_v21 = vmul.f32 %v4585_v0, %v2311_v49  ;;  %v2328_v31 = vmul.f32 %v4588_v15, %v2307_v18 }
 0x690   : > { %v2302_v34 = vpop.permute.xlu0 %2301  ;;  %v2296_v28 = vpop.permute.xlu1 %2295 }
 0x691   : > { %v2312_v57 = vsel %vm765_vm6, %v2302_v34, %v2294_v12  ;;  %v2308_v20 = vsel %vm765_vm6, %v2294_v12, %v2302_v34  ;;  %v2276_v12 = vadd.f32 %v2268_v60, %v4518_v13  ;;  %v2281_v13 = vadd.f32 %v2273_v26, %v4526_v45 }
 0x692   : > { %v2329_v35 = vmul.f32 %v4585_v0, %v2312_v57  ;;  %v2330_v59 = vmul.f32 %v4588_v15, %v2308_v20 }
 0x693   : > { %v2336_v54 = vadd.f32 %v2328_v31, %v2276_v12 }
 0x694   : > { %v4564_v29 = vpop.permute.xlu0 %2297  ;;  %v2304_v40 = vpop.permute.xlu1 %2303  ;;  %v2337_v1 = vadd.f32 %v2329_v35, %v2277_v47  ;;  %v2338_v39 = vadd.f32 %v2330_v59, %v2278_v36 }
 0x695   : > { %v2313_v3 = vsel %vm765_vm6, %v2304_v40, %v2296_v28  ;;  %v2309_v38 = vsel %vm765_vm6, %v2296_v28, %v2304_v40  ;;  %v2335_v40 = vadd.f32 %v2327_v21, %v2275_v46 }
 0x696   : > { %v2331_v34 = vmul.f32 %v4585_v0, %v2313_v3  ;;  %v2332_v22 = vmul.f32 %v4588_v15, %v2309_v38 }
 0x698   : > { %v4566_v48 = vpop.permute.xlu0 %2305  ;;  %v2339_v4 = vadd.f32 %v2331_v34, %v2279_v52  ;;  %v2340_v19 = vadd.f32 %v2332_v22, %v4558_v17 }
 0x699   : > { %v2310_v20 = vsel %vm765_vm6, %v4564_v29, %v4566_v48 }
 0x6a8   : > { %v2352_v41 = vpop.permute.xlu1 %2351 }
 0x6ac   : > { %v2360_v30 = vpop.permute.xlu1 %2359  ;;  %v2354_v32 = vpop.permute.xlu0 %2353 }
 0x6ad   : > { %v2367_v51 = vsel %vm803_vm7, %v2352_v41, %v2360_v30  ;;  %v2371_v11 = vsel %vm803_vm7, %v2360_v30, %v2352_v41 }
 0x6ae   : > { %v2387_v30 = vmul.f32 %v4595_v58, %v2367_v51  ;;  %v2388_v62 = vmul.f32 %v4602_v23, %v2371_v11 }
 0x6b0   : > { %v2356_v24 = vpop.permute.xlu1 %2355  ;;  %v2362_v50 = vpop.permute.xlu0 %2361  ;;  %v2395_v55 = vadd.f32 %v2387_v30, %v2335_v40  ;;  %v2396_v18 = vadd.f32 %v2388_v62, %v2336_v54 }
 0x6b1   : > { %v2368_v41 = vsel %vm803_vm7, %v2354_v32, %v2362_v50  ;;  %v2372_v28 = vsel %vm803_vm7, %v2362_v50, %v2354_v32 }
 0x6b2   : > { %v2389_v14 = vmul.f32 %v4595_v58, %v2368_v41  ;;  %v2390_v49 = vmul.f32 %v4602_v23, %v2372_v28 }
 0x6b4   : > { %v2364_v25 = vpop.permute.xlu1 %2363  ;;  %v2358_v16 = vpop.permute.xlu0 %2357  ;;  %v2397_v3 = vadd.f32 %v2389_v14, %v2337_v1  ;;  %v2398_v17 = vadd.f32 %v2390_v49, %v2338_v39 }
 0x6b5   : > { %v2369_v2 = vsel %vm803_vm7, %v2356_v24, %v2364_v25  ;;  %v2373_v60 = vsel %vm803_vm7, %v2364_v25, %v2356_v24  ;;  %v2314_v24 = vsel %vm765_vm6, %v4566_v48, %v4564_v29 }
 0x6b6   : > { %v2391_v25 = vmul.f32 %v4595_v58, %v2369_v2  ;;  %v2392_v46 = vmul.f32 %v4602_v23, %v2373_v60  ;;  %v2333_v34 = vmul.f32 %v4585_v0, %v2314_v24 }
 0x6b8   : > { %v2412_v42 = vpop.permute.xlu1 %2411  ;;  %v2366_v43 = vpop.permute.xlu0 %2365  ;;  %v2399_v47 = vadd.f32 %v2391_v25, %v2339_v4  ;;  %v2400_v52 = vadd.f32 %v2392_v46, %v2340_v19  ;;  %v2720_v46 = vld [vmem:[#allocation6 + $0x8] sm:$0xff] }
 0x6b9   : > { %v2370_v51 = vsel %vm803_vm7, %v2358_v16, %v2366_v43  ;;  %v2374_v29 = vsel %vm803_vm7, %v2366_v43, %v2358_v16  ;;  %3176 = vmatprep.mubr.msk.f32.mxu1 %vm1929_vm10, %v2720_v46 }
 0x6ba   : > { %v2393_v43 = vmul.f32 %v4595_v58, %v2370_v51  ;;  %v2394_v40 = vmul.f32 %v4602_v23, %v2374_v29  ;;  %v2341_v58 = vadd.f32 %v2333_v34, %v2281_v13 }
 0x6bc   : > { %v2420_v45 = vpop.permute.xlu1 %2419  ;;  %v2414_v53 = vpop.permute.xlu0 %2413  ;;  %v2401_v60 = vadd.f32 %v2393_v43, %v2341_v58 }
 0x6bd   : > { %v2427_v32 = vsel %vm841_vm8, %v2412_v42, %v2420_v45  ;;  %v2431_v50 = vsel %vm841_vm8, %v2420_v45, %v2412_v42  ;;  %v2334_v42 = vmul.f32 %v4588_v15, %v2310_v20 }
 0x6be   : > { %v2447_v57 = vmul.f32 %v4605_v56, %v2427_v32  ;;  %v2448_v5 = vmul.f32 %v4618_v27, %v2431_v50 }
 0x6bf   : > { %v2342_v23 = vadd.f32 %v2334_v42, %v4562_v37 }
 0x6c0   : > { %v2455_v26 = vadd.f32 %v2447_v57, %v2395_v55  ;;  %v2456_v21 = vadd.f32 %v2448_v5, %v2396_v18  ;;  %v2416_v31 = vpop.permute.xlu1 %2415  ;;  %v2422_v35 = vpop.permute.xlu0 %2421 }
 0x6c1   : > { %v2428_v11 = vsel %vm841_vm8, %v2414_v53, %v2422_v35  ;;  %v2432_v12 = vsel %vm841_vm8, %v2422_v35, %v2414_v53  ;;  %v2402_v32 = vadd.f32 %v2394_v40, %v2342_v23 }
 0x6c2   : > { %v2487_v48 = vadd.f32 %v4544_v44, %v2455_v26  ;;  %v2449_v59 = vmul.f32 %v4605_v56, %v2428_v11  ;;  %v2450_v38 = vmul.f32 %v4618_v27, %v2432_v12  ;;  %v2488_v36 = vadd.f32 %v4544_v44, %v2456_v21  ;;  %v2987_v26 = vld [vmem:[%s4963_s10] sm:$0xff] }
 0x6c4   : > { %v4679_v41 = vmax.f32 %v2487_v48, 0.0  ;;  %v2457_v30 = vadd.f32 %v2449_v59, %v2397_v3  ;;  %v2458_v62 = vadd.f32 %v2450_v38, %v2398_v17  ;;  %v2424_v28 = vpop.permute.xlu1 %2423  ;;  %v2418_v16 = vpop.permute.xlu0 %2417  ;;  %v4694_v39 = vmax.f32 %v2488_v36, 0.0 }
 0x6c5   : > { %v2429_v54 = vsel %vm841_vm8, %v2416_v31, %v2424_v28  ;;  %v2433_v0 = vsel %vm841_vm8, %v2424_v28, %v2416_v31  ;;  %v2527_v31 = vld [vmem:[%s4954_s1] ss:$8 sm:$0x3] }
 0x6c6   : > { %v2489_v15 = vadd.f32 %v4546_v33, %v2457_v30  ;;  %v2490_v44 = vadd.f32 %v4546_v33, %v2458_v62  ;;  %v2451_v1 = vmul.f32 %v4605_v56, %v2429_v54  ;;  %v2452_v22 = vmul.f32 %v4618_v27, %v2433_v0  ;;  %2503 = vrot.lane.b32.xlu1 %v4679_v41, %s3420_s22 }
 0x6c7   : > { %v2532_v51 = vrot.slane %v2527_v31, %v3615_v9  ;;  %v2536_v11 = vrot.slane %v2527_v31, %v3618_v10 }
 0x6c8   : > { %v4696_v4 = vmax.f32 %v2489_v15, 0.0  ;;  %v4698_v14 = vmax.f32 %v2490_v44, 0.0  ;;  %v2459_v2 = vadd.f32 %v2451_v1, %v2399_v47  ;;  %v2460_v45 = vadd.f32 %v2452_v22, %v2400_v52  ;;  %v2426_v53 = vpop.permute.xlu0 %2425  ;;  %v3173_v22 = vld [vmem:[%s4954_s1 + $0x1] ss:$8 sm:$0x3] }
 0x6c9   : > { %v2430_v33 = vsel %vm841_vm8, %v2418_v16, %v2426_v53  ;;  %v2434_v49 = vsel %vm841_vm8, %v2426_v53, %v2418_v16 }
 0x6ca   : > { %v2453_v13 = vmul.f32 %v4605_v56, %v2430_v33  ;;  %v2454_v37 = vmul.f32 %v4618_v27, %v2434_v49  ;;  %2511 = vrot.lane.b32.xlu1 %v4694_v39, %s3420_s22  ;;  %2505 = vrot.lane.b32.xlu0 %v4696_v4, %s3420_s22  ;;  %v3271_v50 = vpack.c.bf16 %v4698_v14, %v4694_v39 }
 0x6cb   : > { %v3273_v55 = vpack.c.bf16 %v4696_v4, %v4679_v41  ;;  %v2491_v18 = vadd.f32 %v4548_v61, %v2459_v2  ;;  %v2492_v57 = vadd.f32 %v4548_v61, %v2460_v45  ;;  %v2588_v2 = vrot.slane %v3173_v22, %v3618_v10 }
 0x6cc   : > { %v2461_v5 = vadd.f32 %v2453_v13, %v2401_v60  ;;  %v2462_v56 = vadd.f32 %v2454_v37, %v2402_v32 }
 0x6cd   : > { %v4722_v20 = vmax.f32 %v2491_v18, 0.0  ;;  %v4724_v24 = vmax.f32 %v2492_v57, 0.0 }
 0x6ce   : > { %v2493_v27 = vadd.f32 %v4550_v63, %v2461_v5  ;;  %v2494_v19 = vadd.f32 %v4550_v63, %v2462_v56  ;;  %2555 = vrot.lane.b32.xlu1 %v4679_v41, %s3419_s18  ;;  %2513 = vrot.lane.b32.xlu0 %v4698_v14, %s3420_s22 }
 0x6d0   : > { %v4726_v25 = vmax.f32 %v2493_v27, 0.0  ;;  %v4728_v3 = vmax.f32 %v2494_v19, 0.0  ;;  %v2584_v19 = vrot.slane %v3173_v22, %v3615_v9 }
 0x6d2   : > { %2563 = vrot.lane.b32.xlu1 %v4694_v39, %s3419_s18  ;;  %v3275_v61 = vpack.c.bf16 %v4728_v3, %v4724_v24  ;;  %v3277_v63 = vpack.c.bf16 %v4726_v25, %v4722_v20  ;;  %2557 = vrot.lane.b32.xlu0 %v4696_v4, %s3419_s18 }
 0x6d6   : > { %2615 = vrot.lane.b32.xlu1 %v4679_v41, %s3422_s25  ;;  %2565 = vrot.lane.b32.xlu0 %v4698_v14, %s3419_s18 }
 0x6da   : > { %2623 = vrot.lane.b32.xlu1 %v4694_v39, %s3422_s25  ;;  %2617 = vrot.lane.b32.xlu0 %v4696_v4, %s3422_s25 }
 0x6de   : > { %2507 = vrot.lane.b32.xlu1 %v4722_v20, %s3420_s22  ;;  %2625 = vrot.lane.b32.xlu0 %v4698_v14, %s3422_s25 }
 0x6e2   : > { %2515 = vrot.lane.b32.xlu1 %v4724_v24, %s3420_s22  ;;  %2509 = vrot.lane.b32.xlu0 %v4726_v25, %s3420_s22 }
 0x6e6   : > { %2559 = vrot.lane.b32.xlu1 %v4722_v20, %s3419_s18  ;;  %2517 = vrot.lane.b32.xlu0 %v4728_v3, %s3420_s22  ;;  %s3104_s22 = sshll.u32 %s4978_s20, 1 }
 0x6ea   : > { %2567 = vrot.lane.b32.xlu1 %v4724_v24, %s3419_s18  ;;  %2561 = vrot.lane.b32.xlu0 %v4726_v25, %s3419_s18 }
 0x6ee   : > { %2667 = vrot.lane.b32.xlu1 %v4679_v41, %s4976_s16  ;;  %2569 = vrot.lane.b32.xlu0 %v4728_v3, %s3419_s18 }
 0x6f2   : > { %2619 = vrot.lane.b32.xlu1 %v4722_v20, %s3422_s25  ;;  %2669 = vrot.lane.b32.xlu0 %v4696_v4, %s4976_s16 }
 0x6f6   : > { %2627 = vrot.lane.b32.xlu1 %v4724_v24, %s3422_s25  ;;  %2677 = vrot.lane.b32.xlu0 %v4698_v14, %s4976_s16 }
 0x6fa   : > { %2675 = vrot.lane.b32.xlu1 %v4694_v39, %s4976_s16  ;;  %2621 = vrot.lane.b32.xlu0 %v4726_v25, %s3422_s25 }
 0x6fe   : > { %2671 = vrot.lane.b32.xlu1 %v4722_v20, %s4976_s16  ;;  %2629 = vrot.lane.b32.xlu0 %v4728_v3, %s3422_s25 }
 0x702   : > { %2679 = vrot.lane.b32.xlu1 %v4724_v24, %s4976_s16  ;;  %2673 = vrot.lane.b32.xlu0 %v4726_v25, %s4976_s16 }
 0x706   : > { %2990 = vperm.xlu1 %3340, %v2987_v26   ;;  %2681 = vrot.lane.b32.xlu0 %v4728_v3, %s4976_s16  ;;  %s414_s16 = scalar_lea.vmem %s4964_s11, %s3104_s22 }
 0x738   : > { %v2504_v21 = vpop.permute.xlu1 %2503 }
 0x73c   : > { %v2512_v35 = vpop.permute.xlu1 %2511  ;;  %v2506_v17 = vpop.permute.xlu0 %2505 }
 0x73d   : > { %v2519_v12 = vsel %vm423_vm1, %v2504_v21, %v2512_v35  ;;  %v2523_v29 = vsel %vm423_vm1, %v2512_v35, %v2504_v21 }
 0x73e   : > { %v2539_v42 = vmul.f32 %v2532_v51, %v2523_v29  ;;  %v2540_v47 = vmul.f32 %v2536_v11, %v2519_v12 }
 0x740   : > { %v2556_v48 = vpop.permute.xlu1 %2555  ;;  %v2514_v59 = vpop.permute.xlu0 %2513 }
 0x741   : > { %v2520_v38 = vsel %vm423_vm1, %v2506_v17, %v2514_v59  ;;  %v2524_v34 = vsel %vm423_vm1, %v2514_v59, %v2506_v17 }
 0x742   : > { %v2541_v36 = vmul.f32 %v2532_v51, %v2524_v34  ;;  %v2542_v52 = vmul.f32 %v2536_v11, %v2520_v38 }
 0x744   : > { %v2564_v30 = vpop.permute.xlu1 %2563  ;;  %v3257_v62 = vpack.c.bf16 %v2541_v36, %v2539_v42  ;;  %v2558_v28 = vpop.permute.xlu0 %2557  ;;  %v3255_v16 = vpack.c.bf16 %v2542_v52, %v2540_v47 }
 0x745   : > { %v2571_v49 = vsel %vm446_vm0, %v2556_v48, %v2564_v30  ;;  %v2575_v26 = vsel %vm446_vm0, %v2564_v30, %v2556_v48 }
 0x746   : > { %3256 = vmatprep.subr.bf16.mxu1 %v3255_v16  ;;  %v2592_v21 = vmul.f32 %v2588_v2, %v2571_v49  ;;  %v2591_v59 = vmul.f32 %v2584_v19, %v2575_v26 }
 0x747   : > { %3258 = vmatpush1.bf16.msra.mxu1 %v3257_v62 }
 0x748   : > { %v4805_v43 = vpop.permute.xlu1 %2615  ;;  %v2566_v40 = vpop.permute.xlu0 %2565 }
 0x749   : > { %v2572_v23 = vsel %vm446_vm0, %v2558_v28, %v2566_v40  ;;  %v2576_v32 = vsel %vm446_vm0, %v2566_v40, %v2558_v28 }
 0x74a   : > { %v2594_v13 = vmul.f32 %v2588_v2, %v2572_v23  ;;  %v2593_v12 = vmul.f32 %v2584_v19, %v2576_v32  ;;  %v3175_v32 = vld [vmem:[%s4954_s1 + $0x4] ss:$8 sm:$0x3] }
 0x74c   : > { %v4807_v54 = vpop.permute.xlu1 %2623  ;;  %v2618_v0 = vpop.permute.xlu0 %2617  ;;  %v3263_v29 = vpack.c.bf16 %v2594_v13, %v2592_v21  ;;  %v3265_v42 = vpack.c.bf16 %v2593_v12, %v2591_v59 }
 0x750   : > { %v2508_v15 = vpop.permute.xlu1 %2507  ;;  %v2626_v44 = vpop.permute.xlu0 %2625 }
 0x751   : > { %v2636_v22 = vsel %vm472_vm2, %v2626_v44, %v2618_v0 }
 0x754   : > { %v2516_v1 = vpop.permute.xlu1 %2515  ;;  %v2510_v58 = vpop.permute.xlu0 %2509 }
 0x755   : > { %v2521_v45 = vsel %vm423_vm1, %v2508_v15, %v2516_v1  ;;  %v2525_v53 = vsel %vm423_vm1, %v2516_v1, %v2508_v15  ;;  %v3174_v1 = vld [vmem:[%s4954_s1 + $0x3] ss:$8 sm:$0x3] }
 0x756   : > { %v2543_v57 = vmul.f32 %v2532_v51, %v2525_v53  ;;  %v2544_v5 = vmul.f32 %v2536_v11, %v2521_v45  ;;  %v2648_v23 = vrot.slane %v3174_v1, %v3618_v10  ;;  %v2635_v45 = vsel %vm472_vm2, %v4807_v54, %v4805_v43 }
 0x757   : > { %v2632_v53 = vsel %vm472_vm2, %v2618_v0, %v2626_v44 }
 0x758   : > { %v2560_v33 = vpop.permute.xlu1 %2559  ;;  %v2518_v60 = vpop.permute.xlu0 %2517  ;;  %v2654_v49 = vmul.f32 %v2648_v23, %v2636_v22  ;;  %v2652_v14 = vmul.f32 %v2648_v23, %v2635_v45  ;;  %v2726_v22 = vld [vmem:[#allocation6 + $0x38] sm:$0xff] }
 0x759   : > { %v2522_v37 = vsel %vm423_vm1, %v2510_v58, %v2518_v60  ;;  %v2526_v18 = vsel %vm423_vm1, %v2518_v60, %v2510_v58  ;;  %v2631_v60 = vsel %vm472_vm2, %v4805_v43, %v4807_v54  ;;  %v2700_v54 = vrot.slane %v3175_v32, %v3618_v10 }
 0x75a   : > { %v2545_v56 = vmul.f32 %v2532_v51, %v2526_v18  ;;  %v2546_v27 = vmul.f32 %v2536_v11, %v2522_v37  ;;  %v3279_v4 = vpack.c.bf16 %v2654_v49, %v2652_v14 }
 0x75c   : > { %v2568_v46 = vpop.permute.xlu1 %2567  ;;  %v3261_v31 = vpack.c.bf16 %v2545_v56, %v2543_v57  ;;  %v2562_v35 = vpop.permute.xlu0 %2561  ;;  %v3259_v17 = vpack.c.bf16 %v2546_v27, %v2544_v5  ;;  %v2696_v27 = vrot.slane %v3175_v32, %v3615_v9 }
 0x75d   : > { %v2573_v38 = vsel %vm446_vm0, %v2560_v33, %v2568_v46  ;;  %v2577_v51 = vsel %vm446_vm0, %v2568_v46, %v2560_v33  ;;  %v2644_v33 = vrot.slane %v3174_v1, %v3615_v9  ;;  %v2723_v1 = vld [vmem:[#allocation6 + $0x20] sm:$0xff] }
 0x75e   : > { %3260 = vmatprep.subr.bf16.mxu1 %v3259_v17  ;;  %v2595_v36 = vmul.f32 %v2584_v19, %v2577_v51  ;;  %v2596_v52 = vmul.f32 %v2588_v2, %v2573_v38 }
 0x75f   : > { %3262 = vmatpush1.bf16.msra.mxu1 %v3261_v31  ;;  %v2651_v43 = vmul.f32 %v2644_v33, %v2631_v60 }
 0x760   : > { %v2668_v11 = vpop.permute.xlu1 %2667  ;;  %3264 = vmatprep.subr.bf16.mxu1 %v3263_v29  ;;  %v2570_v34 = vpop.permute.xlu0 %2569 }
 0x761   : > { %v2574_v48 = vsel %vm446_vm0, %v2562_v35, %v2570_v34  ;;  %v2578_v47 = vsel %vm446_vm0, %v2570_v34, %v2562_v35 }
 0x762   : > { %v2597_v30 = vmul.f32 %v2584_v19, %v2578_v47  ;;  %v2598_v62 = vmul.f32 %v2588_v2, %v2574_v48 }
 0x763   : > { %3266 = vmatpush1.bf16.msra.mxu1 %v3265_v42 }
 0x764   : > { %v2620_v28 = vpop.permute.xlu1 %2619  ;;  %v3269_v16 = vpack.c.bf16 %v2597_v30, %v2595_v36  ;;  %v2670_v40 = vpop.permute.xlu0 %2669  ;;  %v3267_v15 = vpack.c.bf16 %v2598_v62, %v2596_v52 }
 0x766   : > { %3268 = vmatprep.subr.bf16.mxu1 %v3267_v15  ;;  %v2724_v15 = vld [vmem:[#allocation6 + $0x28] sm:$0xff] }
 0x767   : > { %3270 = vmatpush1.bf16.msra.mxu1 %v3269_v16  ;;  %v2722_v16 = vld [vmem:[#allocation6 + $0x18] sm:$0xff] }
 0x768   : > { %v2628_v58 = vpop.permute.xlu1 %2627  ;;  %3272 = vmatprep.subr.bf16.mxu1 %v3271_v50  ;;  %v2678_v2 = vpop.permute.xlu0 %2677  ;;  %v2653_v50 = vmul.f32 %v2644_v33, %v2632_v53 }
 0x769   : > { %v2633_v44 = vsel %vm472_vm2, %v2620_v28, %v2628_v58  ;;  %v2637_v41 = vsel %vm472_vm2, %v2628_v58, %v2620_v28  ;;  %v2688_v18 = vsel %vm496_vm3, %v2678_v2, %v2670_v40  ;;  %v2684_v19 = vsel %vm496_vm3, %v2670_v40, %v2678_v2  ;;  %v2719_v28 = vld [vmem:[#allocation6] sm:$0xff]  ;;  %v2721_v40 = vld [vmem:[#allocation6 + $0x10] sm:$0xff] }
 0x76a   : > { %v3281_v3 = vpack.c.bf16 %v2653_v50, %v2651_v43  ;;  %v2656_v37 = vmul.f32 %v2648_v23, %v2637_v41  ;;  %v2706_v46 = vmul.f32 %v2700_v54, %v2688_v18  ;;  %v2705_v29 = vmul.f32 %v2696_v27, %v2684_v19  ;;  %v2725_v58 = vld [vmem:[#allocation6 + $0x30] sm:$0xff]  ;;  %v2727_v2 = vld [vmem:[#allocation6 + $0x40] sm:$0xff] }
 0x76b   : > { %3274 = vmatpush1.bf16.msra.mxu1 %v3273_v55 }
 0x76c   : > { %v2676_v39 = vpop.permute.xlu1 %2675  ;;  %3276 = vmatprep.subr.bf16.mxu1 %v3275_v61  ;;  %v2622_v0 = vpop.permute.xlu0 %2621  ;;  %v2655_v61 = vmul.f32 %v2644_v33, %v2633_v44 }
 0x76d   : > { %v2687_v55 = vsel %vm496_vm3, %v2676_v39, %v2668_v11  ;;  %v2683_v20 = vsel %vm496_vm3, %v2668_v11, %v2676_v39 }
 0x76e   : > { %v2704_v25 = vmul.f32 %v2700_v54, %v2687_v55  ;;  %v2703_v17 = vmul.f32 %v2696_v27, %v2683_v20  ;;  %v3181_v55 = vld [vmem:[%s4955_s2 + $0x1] ss:$8 sm:$0x3] }
 0x76f   : > { %3278 = vmatpush1.bf16.msra.mxu1 %v3277_v63 }
 0x770   : > { %v2672_v24 = vpop.permute.xlu1 %2671  ;;  %3280 = vmatprep.subr.bf16.mxu1 %v3279_v4  ;;  %v2630_v13 = vpop.permute.xlu0 %2629  ;;  %v3287_v12 = vpack.c.bf16 %v2706_v46, %v2704_v25  ;;  %v3289_v11 = vpack.c.bf16 %v2705_v29, %v2703_v17  ;;  %v2899_v4 = vld [vmem:[%s4955_s2] ss:$8 sm:$0x3] }
 0x771   : > { %v2634_v57 = vsel %vm472_vm2, %v2622_v0, %v2630_v13  ;;  %v2638_v5 = vsel %vm472_vm2, %v2630_v13, %v2622_v0  ;;  %v3182_v13 = vld [vmem:[%s4955_s2 + $0x3] ss:$8 sm:$0x3] }
 0x772   : > { %v2657_v63 = vmul.f32 %v2644_v33, %v2634_v57  ;;  %v2658_v56 = vmul.f32 %v2648_v23, %v2638_v5  ;;  %v2728_v23 = vld [vmem:[#allocation6 + $0x48] sm:$0xff]  ;;  %v2928_v57 = vrot.slane %v3181_v55, %v3615_v9  ;;  %v2932_v5 = vrot.slane %v3181_v55, %v3618_v10 }
 0x773   : > { %3282 = vmatpush1.bf16.msra.mxu1 %v3281_v3  ;;  %v2908_v3 = vrot.slane %v2899_v4, %v3618_v10  ;;  %v2956_v46 = vrot.slane %v3182_v13, %v3618_v10 }
 0x774   : > { %v3285_v26 = vpack.c.bf16 %v2657_v63, %v2655_v61  ;;  %v2680_v21 = vpop.permute.xlu1 %2679  ;;  %v2674_v31 = vpop.permute.xlu0 %2673  ;;  %v3283_v35 = vpack.c.bf16 %v2658_v56, %v2656_v37  ;;  %v2952_v63 = vrot.slane %v3182_v13, %v3615_v9  ;;  %v3183_v56 = vld [vmem:[%s4955_s2 + $0x4] ss:$8 sm:$0x3] }
 0x775   : > { %v2685_v59 = vsel %vm496_vm3, %v2672_v24, %v2680_v21  ;;  %v2689_v38 = vsel %vm496_vm3, %v2680_v21, %v2672_v24  ;;  %v2904_v24 = vrot.slane %v2899_v4, %v3615_v9  ;;  %v2976_v17 = vrot.slane %v3183_v56, %v3615_v9 }
 0x776   : > { %3284 = vmatprep.subr.bf16.mxu1 %v3283_v35  ;;  %v2707_v48 = vmul.f32 %v2696_v27, %v2685_v59  ;;  %v2708_v47 = vmul.f32 %v2700_v54, %v2689_v38  ;;  %v2980_v59 = vrot.slane %v3183_v56, %v3618_v10  ;;  %v3429_v38 = vmov 1966171168  }
 0x777   : > { %3286 = vmatpush1.bf16.msra.mxu1 %v3285_v26 }
 0x778   : > { %3288 = vmatprep.subr.bf16.mxu1 %v3287_v12  ;;  %v2682_v51 = vpop.permute.xlu0 %2681 }
 0x779   : > { %v2686_v34 = vsel %vm496_vm3, %v2674_v31, %v2682_v51  ;;  %v2690_v42 = vsel %vm496_vm3, %v2682_v51, %v2674_v31  ;;  %v2999_v51 = vunpack.c.l.s4 %v3429_v38 }
 0x77a   : > { %v2709_v36 = vmul.f32 %v2696_v27, %v2686_v34  ;;  %v2710_v52 = vmul.f32 %v2700_v54, %v2690_v42 }
 0x77b   : > { %3290 = vmatpush1.bf16.msra.mxu1 %v3289_v11  ;;  %v3000_v9 = vunpack.c.0.s8 %v2999_v51 }
 0x77c   : > { %v3293_v30 = vpack.c.bf16 %v2709_v36, %v2707_v48  ;;  %v3291_v62 = vpack.c.bf16 %v2710_v52, %v2708_v47 }
 0x77e   : > { %3292 = vmatprep.subr.bf16.mxu1 %v3291_v62 }
 0x77f   : > { %3294 = vmatpush1.bf16.msra.mxu1 %v3293_v30 }
 0x782   : > { %2849 = vmatmul.mubr.f32.vlgmr.msra.gmra.mrb[40].mxu1 %v2719_v28 }
 0x783   : > { %3177 = vmatprep.mubr.msk.f32.mxu1 %vm1929_vm10, %v2722_v16 }
 0x785   : > { %v2991_v32 = vpop.permute.xlu1 %2990 }
 0x786   : > { %2855 = vmatmul.mubr.f32.gmra.mrb[42].mxu1 %v2721_v40 }
 0x787   : > { %3178 = vmatprep.mubr.msk.f32.mxu1 %vm1929_vm10, %v2724_v15 }
 0x78a   : > { %2861 = vmatmul.mubr.f32.gmra.mrb[44].mxu1 %v2723_v1 }
 0x78b   : > { %3179 = vmatprep.mubr.msk.f32.mxu1 %vm1929_vm10, %v2726_v22 }
 0x78e   : > { %2867 = vmatmul.mubr.f32.gmra.mrb[46].mxu1 %v2725_v58  ;;  %v3003_v58 = vsub.s32 %v3000_v9, %v3609_v7 }
 0x78f   : > { %3180 = vmatprep.mubr.msk.f32.mxu1 %vm1929_vm10, %v2728_v23 }
 0x792   : > { %2873 = vmatmul.mubr.f32.gmra.mrb[48].mxu1 %v2727_v2 }
 0x855   : > { %v2850_v45 = vpop.f32.mrb[40].mxu1 }
 0x856   : > { %v2852_v53 = vpop.f32.mrb[41].mxu1  ;;  %2893 = vrot.lane.b32.xlu1 %v2850_v45, %s3425_s13 }
 0x857   : > { %2895 = vrot.lane.b32.xlu0 %v2852_v53, %s3425_s13 }
 0x859   : > { %v2856_v33 = vpop.f32.mrb[42].mxu1 }
 0x85a   : > { %v2858_v49 = vpop.f32.mrb[43].mxu1  ;;  %2917 = vrot.lane.b32.xlu1 %v2856_v33, %s3426_s14 }
 0x85b   : > { %2919 = vrot.lane.b32.xlu0 %v2858_v49, %s3426_s14 }
 0x85d   : > { %v2862_v60 = vpop.f32.mrb[44].mxu1 }
 0x85e   : > { %v2864_v39 = vpop.f32.mrb[45].mxu1 }
 0x861   : > { %v2868_v14 = vpop.f32.mrb[46].mxu1 }
 0x862   : > { %v2870_v50 = vpop.f32.mrb[47].mxu1  ;;  %2941 = vrot.lane.b32.xlu1 %v2868_v14, %s3427_s15 }
 0x863   : > { %2943 = vrot.lane.b32.xlu0 %v2870_v50, %s3427_s15 }
 0x865   : > { %v2874_v0 = vpop.f32.mrb[48].mxu1 }
 0x866   : > { %v2876_v44 = vpop.f32.mrb[49].mxu1 }
 0x867   : > { %2965 = vrot.lane.b32.xlu0 %v2874_v0, %s3428_s21  ;;  %2967 = vrot.lane.b32.xlu1 %v2876_v44, %s3428_s21 }
 0x8c8   : > { %v2894_v43 = vpop.permute.xlu1 %2893 }
 0x8c9   : > { %v2896_v41 = vpop.permute.xlu0 %2895 }
 0x8ca   : > { %v2897_v37 = vsel %vm728_vm5, %v2894_v43, %v2896_v41  ;;  %v2898_v18 = vsel %vm728_vm5, %v2896_v41, %v2894_v43 }
 0x8cb   : > { %v2911_v27 = vmul.f32 %v2904_v24, %v2898_v18  ;;  %v2912_v19 = vmul.f32 %v2908_v3, %v2897_v37 }
 0x8cc   : > { %v2918_v61 = vpop.permute.xlu1 %2917 }
 0x8cd   : > { %v2920_v54 = vpop.permute.xlu0 %2919  ;;  %v2913_v11 = vadd.f32 %v2911_v27, %v2862_v60  ;;  %v2914_v34 = vadd.f32 %v2912_v19, %v2864_v39 }
 0x8ce   : > { %v2921_v20 = vsel %vm765_vm6, %v2918_v61, %v2920_v54  ;;  %v2922_v25 = vsel %vm765_vm6, %v2920_v54, %v2918_v61 }
 0x8cf   : > { %v2935_v21 = vmul.f32 %v2928_v57, %v2922_v25  ;;  %v2936_v31 = vmul.f32 %v2932_v5, %v2921_v20 }
 0x8d1   : > { %v2937_v47 = vadd.f32 %v2935_v21, %v2913_v11  ;;  %v2938_v36 = vadd.f32 %v2936_v31, %v2914_v34 }
 0x8d4   : > { %v2942_v26 = vpop.permute.xlu1 %2941 }
 0x8d5   : > { %v2944_v35 = vpop.permute.xlu0 %2943 }
 0x8d6   : > { %v2945_v12 = vsel %vm803_vm7, %v2942_v26, %v2944_v35  ;;  %v2946_v29 = vsel %vm803_vm7, %v2944_v35, %v2942_v26 }
 0x8d7   : > { %v2959_v42 = vmul.f32 %v2952_v63, %v2945_v12  ;;  %v2960_v48 = vmul.f32 %v2956_v46, %v2946_v29 }
 0x8d9   : > { %v2966_v52 = vpop.permute.xlu0 %2965  ;;  %v2968_v30 = vpop.permute.xlu1 %2967  ;;  %v2961_v16 = vadd.f32 %v2959_v42, %v2937_v47  ;;  %v2962_v10 = vadd.f32 %v2960_v48, %v2938_v36 }
 0x8da   : > { %v2969_v62 = vsel %vm841_vm8, %v2966_v52, %v2968_v30  ;;  %v2970_v28 = vsel %vm841_vm8, %v2968_v30, %v2966_v52 }
 0x8db   : > { %v2983_v40 = vmul.f32 %v2976_v17, %v2969_v62  ;;  %v2984_v15 = vmul.f32 %v2980_v59, %v2970_v28 }
 0x8dd   : > { %v2985_v1 = vadd.f32 %v2983_v40, %v2961_v16  ;;  %v2986_v22 = vadd.f32 %v2984_v15, %v2962_v10 }
 0x8df   : > { %v2993_v23 = vadd.f32 %v2991_v32, %v2985_v1  ;;  %v2994_v2 = vadd.f32 %v2991_v32, %v2986_v22 }
 0x8e1   : > { %v2997_v45 = vcombine.low %v2993_v23, %v2994_v2 }
 0x8e3   : > { %v3004_v53 = vrot.slane %v2997_v45, %v3003_v58 }
 0x8e5   : > { %v3011_v8 = vrot.slane %v3004_v53, %v3003_v58 }
 0x8e7   : > { %3017 = vst.msk [vmem:[%s414_s16] sm:$0x3] %vm3015_vm11, %v3011_v8 }
 0x8e8 PF: > { %s23_s17 = sadd.s32 1, %s3411_s17  }
 0x8e9   : > { %p20_p5 = scmp.ge.s32.totalorder %s23_s17, 4  }
 0x8eb   :  { %22 = sbr.rel (!%p20_p5) target bundleno = 2 (0x2), region = 109 }
 0x8f2   :  { %3037 = vsyncpa [#allocation5], 1 }
 0x8f3   :  { %3039 = vsyncpa [#allocation5 + $0x1], 1 }
 0x8f4   :  { %3040 = vsyncpa [#allocation7], 1 }

</bundles_post_ra>
